<compile_context>
chip_gen: v5e
topology: v5e:2x2
jax: 0.10.0
libtpu: 0.0.40
codegen_flags: <defaults>
</compile_context>

<pallas_src>
import functools
import math

import jax
import jax.numpy as jnp
from jax import lax
from jax.experimental import pallas as pl
from jax.experimental.pallas import tpu as pltpu

# geomloss SamplesLoss('sinkhorn', p=2) defaults: blur=0.05, scaling=0.5, debias=True,
# cost C(x, y) = ||x - y||**2 / 2, eps = blur**p.
P = 2
BLUR = 0.05
SCALING = 0.5
EPS_FINAL = BLUR ** P            # 0.0025
EPS_RATIO = SCALING ** P         # eps multiplies by scaling**p each annealing step
# Static trip count: starting at diameter**2 and annealing x0.25/step, 10 iterations reach
# blur**p for any cloud with diameter <~ 25; remaining iterations are clamped at blur**p.
N_SINKHORN_ITERS = 10


def _pairwise_sqdist(a, bt):
    """a: (BB, N, 3) points, bt: (BB, 3, M) transposed points -> (BB, N, M) sq. distances.

    Direct VPU form sum_k (a_ik - b_kj)^2: no MXU pass (K=3 would waste it), no
    a^2 + b^2 - 2ab cancellation, no clamp, no in-kernel transpose.
    """
    bb, n, _ = a.shape
    m = bt.shape[2]
    d2 = jnp.zeros((bb, n, m), jnp.float32)
    for k in range(3):                                    # static, tiny
        diff = a[:, :, k:k + 1] - bt[:, k:k + 1, :]       # (BB,N,1) - (BB,1,M) -> (BB,N,M)
        d2 = d2 + diff * diff
    return d2


def _lse_rows(z, exp_dtype):
    # logsumexp over axis=2 (lanes), keepdims -> (BB, N, 1); exp optionally in bf16.
    m = jnp.max(z, axis=2, keepdims=True)
    p = jnp.exp((z - m).astype(exp_dtype)).astype(jnp.float32)
    return m + jnp.log(jnp.sum(p, axis=2, keepdims=True))


def _lse_cols(z, exp_dtype):
    # logsumexp over axis=1 (sublanes), keepdims -> (BB, 1, M).
    m = jnp.max(z, axis=1, keepdims=True)
    p = jnp.exp((z - m).astype(exp_dtype)).astype(jnp.float32)
    return m + jnp.log(jnp.sum(p, axis=1, keepdims=True))


def _loss_kernel(x_ref, y_ref, xt_ref, yt_ref, chamfer_ref, sinkhorn_ref, *,
                 exp_dtype, store_dtype, num_iters):
    x = x_ref[...]       # (BB, N, 3)
    y = y_ref[...]       # (BB, N, 3)
    xt = xt_ref[...]     # (BB, 3, N)
    yt = yt_ref[...]     # (BB, 3, N)
    bb, n, _ = x.shape
    log_n = math.log(n)                                   # static Python constant

    d2_xy = _pairwise_sqdist(x, yt)                       # (BB, N, N) f32
    d2_xx = _pairwise_sqdist(x, xt)
    d2_yy = _pairwise_sqdist(y, yt)

    # ---- Chamfer (pytorch3d: squared dists, mean over points, x->y + y->x), per batch ----
    cham = (jnp.mean(jnp.min(d2_xy, axis=2, keepdims=True), axis=1, keepdims=True) +
            jnp.mean(jnp.min(d2_xy, axis=1, keepdims=True), axis=2, keepdims=True))  # (BB,1,1)

    # ---- Debiased Sinkhorn divergence (log domain, uniform 1/N weights) ----
    # eps annealing starts at the squared diameter (geomloss-style), per batch element.
    diam2 = jnp.max(jnp.max(d2_xy, axis=2, keepdims=True), axis=1, keepdims=True)     # (BB,1,1)
    eps0 = jnp.maximum(diam2, EPS_FINAL)

    # Keep cost matrices resident in bf16 on v6e/v7x (halves the dominant VMEM buffers);
    # the 0.5 cost factor is folded into the per-iteration scale, so no c_* copies exist.
    d2_xy_r = d2_xy.astype(store_dtype)
    d2_xx_r = d2_xx.astype(store_dtype)
    d2_yy_r = d2_yy.astype(store_dtype)

    f0 = jnp.zeros((bb, n, 1), jnp.float32)    # cross potential on x
    g0 = jnp.zeros((bb, 1, n), jnp.float32)    # cross potential on y
    ax0 = jnp.zeros((bb, 1, n), jnp.float32)   # symmetric debias potential for OT(x, x)
    ay0 = jnp.zeros((bb, 1, n), jnp.float32)   # symmetric debias potential for OT(y, y)

    def body(_, carry):
        eps, f, g, ax, ay = carry
        inv_eps = 1.0 / eps                # (BB,1,1): one tiny reciprocal per iteration
        inv2eps = 0.5 * inv_eps            # folds the C = d2/2 factor into the scale
        # Hoisted scaling: one (BB,N,N) multiply per cost per iteration (bf16*f32 -> f32),
        # instead of an (N,N) divide inside every softmin and separate 0.5*d2 buffers.
        ce_xy = d2_xy_r * inv2eps
        ce_xx = d2_xx_r * inv2eps
        ce_yy = d2_yy_r * inv2eps

        # Cross term: alternating dual updates.
        f = -eps * (_lse_rows(g * inv_eps - ce_xy, exp_dtype) - log_n)    # (BB, N, 1)
        g = -eps * (_lse_cols(f * inv_eps - ce_xy, exp_dtype) - log_n)    # (BB, 1, N)

        # Self terms: symmetric averaged update -> one softmin each instead of two.
        tx = -eps * (_lse_rows(ax * inv_eps - ce_xx, exp_dtype) - log_n)  # (BB, N, 1)
        ax = 0.5 * (ax + jnp.swapaxes(tx, 1, 2))
        ty = -eps * (_lse_rows(ay * inv_eps - ce_yy, exp_dtype) - log_n)  # (BB, N, 1)
        ay = 0.5 * (ay + jnp.swapaxes(ty, 1, 2))

        eps = jnp.maximum(eps * EPS_RATIO, EPS_FINAL)
        return eps, f, g, ax, ay

    _, f, g, ax, ay = lax.fori_loop(0, num_iters, body, (eps0, f0, g0, ax0, ay0))

    # S_eps(x, y) ≈ <1/N, f> + <1/N, g> - <1/N, a_x> - <1/N, a_y>, per batch element.
    sinkhorn = (jnp.mean(f, axis=1, keepdims=True) +
                jnp.mean(g, axis=2, keepdims=True) -
                jnp.mean(ax, axis=2, keepdims=True) -
                jnp.mean(ay, axis=2, keepdims=True))                       # (BB,1,1)

    chamfer_ref[...] = jnp.broadcast_to(cham, chamfer_ref.shape).astype(jnp.float32)
    sinkhorn_ref[...] = jnp.broadcast_to(sinkhorn, sinkhorn_ref.shape).astype(jnp.float32)


def _pick_dtypes():
    """(exp_dtype, cost_store_dtype): bf16 on v6e/v7x (bf16 EUP/VPU), f32 on v5e/unknown."""
    try:
        kind = jax.devices()[0].device_kind.lower()
    except Exception:
        return jnp.float32, jnp.float32
    if any(tag in kind for tag in ("v6", "v7", "7x")):
        return jnp.bfloat16, jnp.bfloat16
    return jnp.float32, jnp.float32


def _vmem_capacity_bytes():
    try:
        return int(pltpu.get_tpu_info().vmem_capacity_bytes)
    except Exception:
        return 128 << 20   # v5e/v6e physical; conservative fallback


def point_cloud_loss(y_true, y_pred, emd_weight=0.5, num_sinkhorn_iters=N_SINKHORN_ITERS):
    """JAX/Pallas equivalent of PointCloudLoss.forward(y_true, y_pred)."""
    if not 0.0 <= emd_weight <= 1.0:
        raise ValueError("emd_weight must be between 0 and 1")
    assert y_true.shape == y_pred.shape
    assert y_true.ndim == 3 and y_true.shape[2] == 3
    b, n, _ = y_true.shape

    exp_dtype, store_dtype = _pick_dtypes()
    store_bytes = jnp.dtype(store_dtype).itemsize

    # ---- VMEM budget and batch-block size ----
    vmem_cap = _vmem_capacity_bytes()
    # Never request more than physical VMEM (v7x: 64 MiB); leave pipeline/compiler headroom.
    budget = max(min(vmem_cap - (16 << 20), 100 << 20), 8 << 20)
    # Per batch element: 3 resident cost matrices + ~8 (N,N) f32 temporaries at peak,
    # plus the double-buffered input windows ((bb,n,3) pads lanes 3->128, (bb,3,n) pads
    # sublanes 3->8).
    per_elem = n * n * (3 * store_bytes + 8 * 4) + 2 * 2 * (n * 128 + 8 * n) * 4
    bb = int(max(1, min(8, b, budget // max(per_elem, 1))))
    num_blocks = -(-b // bb)
    b_pad = num_blocks * bb

    x = y_true.astype(jnp.float32)
    y = y_pred.astype(jnp.float32)
    if b_pad != b:
        # Zero-padded clouds are numerically benign (diam2=0 -> eps clamps); sliced out below.
        pad = ((0, b_pad - b), (0, 0), (0, 0))
        x = jnp.pad(x, pad)
        y = jnp.pad(y, pad)
    # Pre-transposed (B, 3, N) copies: the kernel builds pairwise distances with pure VPU
    # broadcasts and needs no in-kernel (N,3) transposes; this transpose is tiny XLA work.
    xt = jnp.swapaxes(x, 1, 2)
    yt = jnp.swapaxes(y, 1, 2)

    kernel = functools.partial(_loss_kernel,
                               exp_dtype=exp_dtype,
                               store_dtype=store_dtype,
                               num_iters=num_sinkhorn_iters)

    vmem_est = bb * per_elem + (2 << 20)
    vmem_limit = None
    # Default scoped VMEM is 16 MiB on v5e and 32 MiB on v6e/v7x: raise the limit whenever
    # the estimate comes near the smallest default, capped at the physical budget.
    if vmem_est > (12 << 20):
        vmem_limit = int(min(max(vmem_est + (8 << 20), 32 << 20), budget))

    cost = pl.CostEstimate(
        flops=int(b_pad * n * n * (27 + 20 * num_sinkhorn_iters)),
        transcendentals=int(b_pad * 4 * num_sinkhorn_iters * n * n),
        bytes_accessed=int(4 * b_pad * n * 3 * 4 + 2 * b_pad * 128 * 4))

    chamfer_b, sinkhorn_b = pl.pallas_call(
        kernel,
        out_shape=(jax.ShapeDtypeStruct((b_pad, 1, 128), jnp.float32),
                   jax.ShapeDtypeStruct((b_pad, 1, 128), jnp.float32)),
        grid_spec=pltpu.PrefetchScalarGridSpec(
            num_scalar_prefetch=0,
            grid=(num_blocks,),
            in_specs=[pl.BlockSpec((bb, n, 3), lambda i: (i, 0, 0)),
                      pl.BlockSpec((bb, n, 3), lambda i: (i, 0, 0)),
                      pl.BlockSpec((bb, 3, n), lambda i: (i, 0, 0)),
                      pl.BlockSpec((bb, 3, n), lambda i: (i, 0, 0))],
            out_specs=[pl.BlockSpec((bb, 1, 128), lambda i: (i, 0, 0)),
                       pl.BlockSpec((bb, 1, 128), lambda i: (i, 0, 0))]),
        compiler_params=pltpu.CompilerParams(
            dimension_semantics=("parallel",),       # batch blocks are independent
            vmem_limit_bytes=vmem_limit),
        cost_estimate=cost,
    )(x, y, xt, yt)

    chamfer = jnp.mean(chamfer_b[:b, 0, 0])   # pytorch3d chamfer: batch_reduction="mean"
    emd = sinkhorn_b[:b, 0, 0]                # geomloss SamplesLoss on batched input -> (B,)
    # scalar + (B,) broadcasting, exactly as in the PyTorch forward
    return (1.0 - emd_weight) * chamfer + emd_weight * emd


if __name__ == "__main__":
    B, NPOINTS = 2, 64
    key = jax.random.PRNGKey(0)
    k1, k2 = jax.random.split(key)
    y_true = jax.random.normal(k1, (B, NPOINTS, 3), dtype=jnp.float32)
    y_pred = jax.random.normal(k2, (B, NPOINTS, 3), dtype=jnp.float32)

    loss = point_cloud_loss(y_true, y_pred, emd_weight=0.5)
    loss = jax.block_until_ready(loss)
    assert loss.shape == (B,) and loss.dtype == jnp.float32
    assert bool(jnp.all(jnp.isfinite(loss)))
    print("KERNEL_OK")
</pallas_src>

<mosaic_0001>
module attributes {stable_mosaic.version = 11 : i64} {
  func.func @_loss_kernel(%arg0: i32, %arg1: memref<2x64x3xf32, #tpu.memory_space<vmem>>, %arg2: memref<2x64x3xf32, #tpu.memory_space<vmem>>, %arg3: memref<2x3x64xf32, #tpu.memory_space<vmem>>, %arg4: memref<2x3x64xf32, #tpu.memory_space<vmem>>, %arg5: memref<2x1x128xf32, #tpu.memory_space<vmem>>, %arg6: memref<2x1x128xf32, #tpu.memory_space<vmem>>) attributes {dimension_semantics = [#tpu.dimension_semantics<parallel>], iteration_bounds = array<i64: 1>, scalar_prefetch = 0 : i64, scratch_operands = 0 : i64, tpu.core_type = #tpu.core_type<tc>, window_params = [{transform_indices = @transform_0, window_bounds = array<i64: 2, 64, 3>}, {transform_indices = @transform_1, window_bounds = array<i64: 2, 64, 3>}, {transform_indices = @transform_2, window_bounds = array<i64: 2, 3, 64>}, {transform_indices = @transform_3, window_bounds = array<i64: 2, 3, 64>}, {transform_indices = @transform_4, window_bounds = array<i64: 2, 1, 128>}, {transform_indices = @transform_5, window_bounds = array<i64: 2, 1, 128>}]} {
    %c0 = arith.constant 0 : index
    %c0_0 = arith.constant 0 : index
    %c0_1 = arith.constant 0 : index
    %0 = vector.load %arg1[%c0, %c0_0, %c0_1] : memref<2x64x3xf32, #tpu.memory_space<vmem>>, vector<2x64x3xf32>
    %c0_2 = arith.constant 0 : index
    %c0_3 = arith.constant 0 : index
    %c0_4 = arith.constant 0 : index
    %1 = vector.load %arg2[%c0_2, %c0_3, %c0_4] : memref<2x64x3xf32, #tpu.memory_space<vmem>>, vector<2x64x3xf32>
    %c0_5 = arith.constant 0 : index
    %c0_6 = arith.constant 0 : index
    %c0_7 = arith.constant 0 : index
    %2 = vector.load %arg3[%c0_5, %c0_6, %c0_7] : memref<2x3x64xf32, #tpu.memory_space<vmem>>, vector<2x3x64xf32>
    %c0_8 = arith.constant 0 : index
    %c0_9 = arith.constant 0 : index
    %c0_10 = arith.constant 0 : index
    %3 = vector.load %arg4[%c0_8, %c0_9, %c0_10] : memref<2x3x64xf32, #tpu.memory_space<vmem>>, vector<2x3x64xf32>
    %cst = arith.constant 0.000000e+00 : f32
    %4 = vector.broadcast %cst : f32 to vector<2x64x64xf32>
    %5 = vector.extract_strided_slice %0 {offsets = [0, 0, 0], sizes = [2, 64, 1], strides = [1, 1, 1]} : vector<2x64x3xf32> to vector<2x64x1xf32>
    %6 = vector.extract_strided_slice %3 {offsets = [0, 0, 0], sizes = [2, 1, 64], strides = [1, 1, 1]} : vector<2x3x64xf32> to vector<2x1x64xf32>
    %7 = vector.broadcast %5 : vector<2x64x1xf32> to vector<2x64x64xf32>
    %8 = vector.broadcast %6 : vector<2x1x64xf32> to vector<2x64x64xf32>
    %9 = arith.subf %7, %8 : vector<2x64x64xf32>
    %10 = arith.mulf %9, %9 : vector<2x64x64xf32>
    %11 = arith.addf %4, %10 : vector<2x64x64xf32>
    %12 = vector.extract_strided_slice %0 {offsets = [0, 0, 1], sizes = [2, 64, 1], strides = [1, 1, 1]} : vector<2x64x3xf32> to vector<2x64x1xf32>
    %13 = vector.extract_strided_slice %3 {offsets = [0, 1, 0], sizes = [2, 1, 64], strides = [1, 1, 1]} : vector<2x3x64xf32> to vector<2x1x64xf32>
    %14 = vector.broadcast %12 : vector<2x64x1xf32> to vector<2x64x64xf32>
    %15 = vector.broadcast %13 : vector<2x1x64xf32> to vector<2x64x64xf32>
    %16 = arith.subf %14, %15 : vector<2x64x64xf32>
    %17 = arith.mulf %16, %16 : vector<2x64x64xf32>
    %18 = arith.addf %11, %17 : vector<2x64x64xf32>
    %19 = vector.extract_strided_slice %0 {offsets = [0, 0, 2], sizes = [2, 64, 1], strides = [1, 1, 1]} : vector<2x64x3xf32> to vector<2x64x1xf32>
    %20 = vector.extract_strided_slice %3 {offsets = [0, 2, 0], sizes = [2, 1, 64], strides = [1, 1, 1]} : vector<2x3x64xf32> to vector<2x1x64xf32>
    %21 = vector.broadcast %19 : vector<2x64x1xf32> to vector<2x64x64xf32>
    %22 = vector.broadcast %20 : vector<2x1x64xf32> to vector<2x64x64xf32>
    %23 = arith.subf %21, %22 : vector<2x64x64xf32>
    %24 = arith.mulf %23, %23 : vector<2x64x64xf32>
    %25 = arith.addf %18, %24 : vector<2x64x64xf32>
    %cst_11 = arith.constant 0.000000e+00 : f32
    %26 = vector.broadcast %cst_11 : f32 to vector<2x64x64xf32>
    %27 = vector.extract_strided_slice %0 {offsets = [0, 0, 0], sizes = [2, 64, 1], strides = [1, 1, 1]} : vector<2x64x3xf32> to vector<2x64x1xf32>
    %28 = vector.extract_strided_slice %2 {offsets = [0, 0, 0], sizes = [2, 1, 64], strides = [1, 1, 1]} : vector<2x3x64xf32> to vector<2x1x64xf32>
    %29 = vector.broadcast %27 : vector<2x64x1xf32> to vector<2x64x64xf32>
    %30 = vector.broadcast %28 : vector<2x1x64xf32> to vector<2x64x64xf32>
    %31 = arith.subf %29, %30 : vector<2x64x64xf32>
    %32 = arith.mulf %31, %31 : vector<2x64x64xf32>
    %33 = arith.addf %26, %32 : vector<2x64x64xf32>
    %34 = vector.extract_strided_slice %0 {offsets = [0, 0, 1], sizes = [2, 64, 1], strides = [1, 1, 1]} : vector<2x64x3xf32> to vector<2x64x1xf32>
    %35 = vector.extract_strided_slice %2 {offsets = [0, 1, 0], sizes = [2, 1, 64], strides = [1, 1, 1]} : vector<2x3x64xf32> to vector<2x1x64xf32>
    %36 = vector.broadcast %34 : vector<2x64x1xf32> to vector<2x64x64xf32>
    %37 = vector.broadcast %35 : vector<2x1x64xf32> to vector<2x64x64xf32>
    %38 = arith.subf %36, %37 : vector<2x64x64xf32>
    %39 = arith.mulf %38, %38 : vector<2x64x64xf32>
    %40 = arith.addf %33, %39 : vector<2x64x64xf32>
    %41 = vector.extract_strided_slice %0 {offsets = [0, 0, 2], sizes = [2, 64, 1], strides = [1, 1, 1]} : vector<2x64x3xf32> to vector<2x64x1xf32>
    %42 = vector.extract_strided_slice %2 {offsets = [0, 2, 0], sizes = [2, 1, 64], strides = [1, 1, 1]} : vector<2x3x64xf32> to vector<2x1x64xf32>
    %43 = vector.broadcast %41 : vector<2x64x1xf32> to vector<2x64x64xf32>
    %44 = vector.broadcast %42 : vector<2x1x64xf32> to vector<2x64x64xf32>
    %45 = arith.subf %43, %44 : vector<2x64x64xf32>
    %46 = arith.mulf %45, %45 : vector<2x64x64xf32>
    %47 = arith.addf %40, %46 : vector<2x64x64xf32>
    %cst_12 = arith.constant 0.000000e+00 : f32
    %48 = vector.broadcast %cst_12 : f32 to vector<2x64x64xf32>
    %49 = vector.extract_strided_slice %1 {offsets = [0, 0, 0], sizes = [2, 64, 1], strides = [1, 1, 1]} : vector<2x64x3xf32> to vector<2x64x1xf32>
    %50 = vector.extract_strided_slice %3 {offsets = [0, 0, 0], sizes = [2, 1, 64], strides = [1, 1, 1]} : vector<2x3x64xf32> to vector<2x1x64xf32>
    %51 = vector.broadcast %49 : vector<2x64x1xf32> to vector<2x64x64xf32>
    %52 = vector.broadcast %50 : vector<2x1x64xf32> to vector<2x64x64xf32>
    %53 = arith.subf %51, %52 : vector<2x64x64xf32>
    %54 = arith.mulf %53, %53 : vector<2x64x64xf32>
    %55 = arith.addf %48, %54 : vector<2x64x64xf32>
    %56 = vector.extract_strided_slice %1 {offsets = [0, 0, 1], sizes = [2, 64, 1], strides = [1, 1, 1]} : vector<2x64x3xf32> to vector<2x64x1xf32>
    %57 = vector.extract_strided_slice %3 {offsets = [0, 1, 0], sizes = [2, 1, 64], strides = [1, 1, 1]} : vector<2x3x64xf32> to vector<2x1x64xf32>
    %58 = vector.broadcast %56 : vector<2x64x1xf32> to vector<2x64x64xf32>
    %59 = vector.broadcast %57 : vector<2x1x64xf32> to vector<2x64x64xf32>
    %60 = arith.subf %58, %59 : vector<2x64x64xf32>
    %61 = arith.mulf %60, %60 : vector<2x64x64xf32>
    %62 = arith.addf %55, %61 : vector<2x64x64xf32>
    %63 = vector.extract_strided_slice %1 {offsets = [0, 0, 2], sizes = [2, 64, 1], strides = [1, 1, 1]} : vector<2x64x3xf32> to vector<2x64x1xf32>
    %64 = vector.extract_strided_slice %3 {offsets = [0, 2, 0], sizes = [2, 1, 64], strides = [1, 1, 1]} : vector<2x3x64xf32> to vector<2x1x64xf32>
    %65 = vector.broadcast %63 : vector<2x64x1xf32> to vector<2x64x64xf32>
    %66 = vector.broadcast %64 : vector<2x1x64xf32> to vector<2x64x64xf32>
    %67 = arith.subf %65, %66 : vector<2x64x64xf32>
    %68 = arith.mulf %67, %67 : vector<2x64x64xf32>
    %69 = arith.addf %62, %68 : vector<2x64x64xf32>
    %cst_13 = arith.constant dense<0x7F800000> : vector<2x64xf32>
    %70 = vector.multi_reduction <minimumf>, %25, %cst_13 [2] : vector<2x64x64xf32> to vector<2x64xf32>
    %71 = vector.shape_cast %70 : vector<2x64xf32> to vector<2x64x1xf32>
    %cst_14 = arith.constant dense<0.000000e+00> : vector<2x1xf32>
    %72 = vector.multi_reduction <add>, %71, %cst_14 [1] : vector<2x64x1xf32> to vector<2x1xf32>
    %73 = vector.shape_cast %72 : vector<2x1xf32> to vector<2x1x1xf32>
    %cst_15 = arith.constant 6.400000e+01 : f32
    %74 = vector.broadcast %cst_15 : f32 to vector<2x1x1xf32>
    %75 = arith.divf %73, %74 : vector<2x1x1xf32>
    %cst_16 = arith.constant dense<0x7F800000> : vector<2x64xf32>
    %76 = vector.multi_reduction <minimumf>, %25, %cst_16 [1] : vector<2x64x64xf32> to vector<2x64xf32>
    %77 = vector.shape_cast %76 : vector<2x64xf32> to vector<2x1x64xf32>
    %cst_17 = arith.constant dense<0.000000e+00> : vector<2x1xf32>
    %78 = vector.multi_reduction <add>, %77, %cst_17 [2] : vector<2x1x64xf32> to vector<2x1xf32>
    %79 = vector.shape_cast %78 : vector<2x1xf32> to vector<2x1x1xf32>
    %cst_18 = arith.constant 6.400000e+01 : f32
    %80 = vector.broadcast %cst_18 : f32 to vector<2x1x1xf32>
    %81 = arith.divf %79, %80 : vector<2x1x1xf32>
    %82 = arith.addf %75, %81 : vector<2x1x1xf32>
    %cst_19 = arith.constant dense<0xFF800000> : vector<2x64xf32>
    %83 = vector.multi_reduction <maximumf>, %25, %cst_19 [2] : vector<2x64x64xf32> to vector<2x64xf32>
    %84 = vector.shape_cast %83 : vector<2x64xf32> to vector<2x64x1xf32>
    %cst_20 = arith.constant dense<0xFF800000> : vector<2x1xf32>
    %85 = vector.multi_reduction <maximumf>, %84, %cst_20 [1] : vector<2x64x1xf32> to vector<2x1xf32>
    %86 = vector.shape_cast %85 : vector<2x1xf32> to vector<2x1x1xf32>
    %cst_21 = arith.constant 2.500000e-03 : f32
    %87 = vector.broadcast %cst_21 : f32 to vector<2x1x1xf32>
    %88 = arith.maximumf %86, %87 : vector<2x1x1xf32>
    %cst_22 = arith.constant 0.000000e+00 : f32
    %89 = vector.broadcast %cst_22 : f32 to vector<2x64x1xf32>
    %cst_23 = arith.constant 0.000000e+00 : f32
    %90 = vector.broadcast %cst_23 : f32 to vector<2x1x64xf32>
    %cst_24 = arith.constant 0.000000e+00 : f32
    %91 = vector.broadcast %cst_24 : f32 to vector<2x1x64xf32>
    %cst_25 = arith.constant 0.000000e+00 : f32
    %92 = vector.broadcast %cst_25 : f32 to vector<2x1x64xf32>
    %c0_i32 = arith.constant 0 : i32
    %c10_i32 = arith.constant 10 : i32
    %93 = arith.addi %c0_i32, %c10_i32 : i32
    %c1_i32 = arith.constant 1 : i32
    %94:5 = scf.for %arg7 = %c0_i32 to %93 step %c1_i32 iter_args(%arg8 = %88, %arg9 = %89, %arg10 = %90, %arg11 = %91, %arg12 = %92) -> (vector<2x1x1xf32>, vector<2x64x1xf32>, vector<2x1x64xf32>, vector<2x1x64xf32>, vector<2x1x64xf32>)  : i32 {
      %cst_40 = arith.constant 1.000000e+00 : f32
      %120 = vector.broadcast %cst_40 : f32 to vector<2x1x1xf32>
      %121 = arith.divf %120, %arg8 : vector<2x1x1xf32>
      %cst_41 = arith.constant 5.000000e-01 : f32
      %122 = vector.broadcast %cst_41 : f32 to vector<2x1x1xf32>
      %123 = arith.mulf %122, %121 : vector<2x1x1xf32>
      %124 = vector.broadcast %123 : vector<2x1x1xf32> to vector<2x64x64xf32>
      %125 = arith.mulf %25, %124 : vector<2x64x64xf32>
      %126 = vector.broadcast %123 : vector<2x1x1xf32> to vector<2x64x64xf32>
      %127 = arith.mulf %47, %126 : vector<2x64x64xf32>
      %128 = vector.broadcast %123 : vector<2x1x1xf32> to vector<2x64x64xf32>
      %129 = arith.mulf %69, %128 : vector<2x64x64xf32>
      %cst_42 = arith.constant 0.000000e+00 : f32
      %130 = vector.broadcast %cst_42 : f32 to vector<2x1x1xf32>
      %131 = arith.subf %130, %arg8 : vector<2x1x1xf32>
      %132 = vector.broadcast %121 : vector<2x1x1xf32> to vector<2x1x64xf32>
      %133 = arith.mulf %arg10, %132 : vector<2x1x64xf32>
      %134 = vector.broadcast %133 : vector<2x1x64xf32> to vector<2x64x64xf32>
      %135 = arith.subf %134, %125 : vector<2x64x64xf32>
      %cst_43 = arith.constant dense<0xFF800000> : vector<2x64xf32>
      %136 = vector.multi_reduction <maximumf>, %135, %cst_43 [2] : vector<2x64x64xf32> to vector<2x64xf32>
      %137 = vector.shape_cast %136 : vector<2x64xf32> to vector<2x64x1xf32>
      %138 = vector.broadcast %137 : vector<2x64x1xf32> to vector<2x64x64xf32>
      %139 = arith.subf %135, %138 : vector<2x64x64xf32>
      %140 = math.exp %139 : vector<2x64x64xf32>
      %cst_44 = arith.constant dense<0.000000e+00> : vector<2x64xf32>
      %141 = vector.multi_reduction <add>, %140, %cst_44 [2] : vector<2x64x64xf32> to vector<2x64xf32>
      %142 = vector.shape_cast %141 : vector<2x64xf32> to vector<2x64x1xf32>
      %143 = math.log %142 : vector<2x64x1xf32>
      %144 = arith.addf %137, %143 : vector<2x64x1xf32>
      %cst_45 = arith.constant 4.15888309 : f32
      %145 = vector.broadcast %cst_45 : f32 to vector<2x64x1xf32>
      %146 = arith.subf %144, %145 : vector<2x64x1xf32>
      %147 = vector.broadcast %131 : vector<2x1x1xf32> to vector<2x64x1xf32>
      %148 = arith.mulf %147, %146 : vector<2x64x1xf32>
      %cst_46 = arith.constant 0.000000e+00 : f32
      %149 = vector.broadcast %cst_46 : f32 to vector<2x1x1xf32>
      %150 = arith.subf %149, %arg8 : vector<2x1x1xf32>
      %151 = vector.broadcast %121 : vector<2x1x1xf32> to vector<2x64x1xf32>
      %152 = arith.mulf %148, %151 : vector<2x64x1xf32>
      %153 = vector.broadcast %152 : vector<2x64x1xf32> to vector<2x64x64xf32>
      %154 = arith.subf %153, %125 : vector<2x64x64xf32>
      %cst_47 = arith.constant dense<0xFF800000> : vector<2x64xf32>
      %155 = vector.multi_reduction <maximumf>, %154, %cst_47 [1] : vector<2x64x64xf32> to vector<2x64xf32>
      %156 = vector.shape_cast %155 : vector<2x64xf32> to vector<2x1x64xf32>
      %157 = vector.broadcast %156 : vector<2x1x64xf32> to vector<2x64x64xf32>
      %158 = arith.subf %154, %157 : vector<2x64x64xf32>
      %159 = math.exp %158 : vector<2x64x64xf32>
      %cst_48 = arith.constant dense<0.000000e+00> : vector<2x64xf32>
      %160 = vector.multi_reduction <add>, %159, %cst_48 [1] : vector<2x64x64xf32> to vector<2x64xf32>
      %161 = vector.shape_cast %160 : vector<2x64xf32> to vector<2x1x64xf32>
      %162 = math.log %161 : vector<2x1x64xf32>
      %163 = arith.addf %156, %162 : vector<2x1x64xf32>
      %cst_49 = arith.constant 4.15888309 : f32
      %164 = vector.broadcast %cst_49 : f32 to vector<2x1x64xf32>
      %165 = arith.subf %163, %164 : vector<2x1x64xf32>
      %166 = vector.broadcast %150 : vector<2x1x1xf32> to vector<2x1x64xf32>
      %167 = arith.mulf %166, %165 : vector<2x1x64xf32>
      %cst_50 = arith.constant 0.000000e+00 : f32
      %168 = vector.broadcast %cst_50 : f32 to vector<2x1x1xf32>
      %169 = arith.subf %168, %arg8 : vector<2x1x1xf32>
      %170 = vector.broadcast %121 : vector<2x1x1xf32> to vector<2x1x64xf32>
      %171 = arith.mulf %arg11, %170 : vector<2x1x64xf32>
      %172 = vector.broadcast %171 : vector<2x1x64xf32> to vector<2x64x64xf32>
      %173 = arith.subf %172, %127 : vector<2x64x64xf32>
      %cst_51 = arith.constant dense<0xFF800000> : vector<2x64xf32>
      %174 = vector.multi_reduction <maximumf>, %173, %cst_51 [2] : vector<2x64x64xf32> to vector<2x64xf32>
      %175 = vector.shape_cast %174 : vector<2x64xf32> to vector<2x64x1xf32>
      %176 = vector.broadcast %175 : vector<2x64x1xf32> to vector<2x64x64xf32>
      %177 = arith.subf %173, %176 : vector<2x64x64xf32>
      %178 = math.exp %177 : vector<2x64x64xf32>
      %cst_52 = arith.constant dense<0.000000e+00> : vector<2x64xf32>
      %179 = vector.multi_reduction <add>, %178, %cst_52 [2] : vector<2x64x64xf32> to vector<2x64xf32>
      %180 = vector.shape_cast %179 : vector<2x64xf32> to vector<2x64x1xf32>
      %181 = math.log %180 : vector<2x64x1xf32>
      %182 = arith.addf %175, %181 : vector<2x64x1xf32>
      %cst_53 = arith.constant 4.15888309 : f32
      %183 = vector.broadcast %cst_53 : f32 to vector<2x64x1xf32>
      %184 = arith.subf %182, %183 : vector<2x64x1xf32>
      %185 = vector.broadcast %169 : vector<2x1x1xf32> to vector<2x64x1xf32>
      %186 = arith.mulf %185, %184 : vector<2x64x1xf32>
      %187 = tpu.transpose %186, [0, 2, 1] : vector<2x64x1xf32> -> vector<2x1x64xf32>
      %188 = arith.addf %arg11, %187 : vector<2x1x64xf32>
      %cst_54 = arith.constant 5.000000e-01 : f32
      %189 = vector.broadcast %cst_54 : f32 to vector<2x1x64xf32>
      %190 = arith.mulf %189, %188 : vector<2x1x64xf32>
      %cst_55 = arith.constant 0.000000e+00 : f32
      %191 = vector.broadcast %cst_55 : f32 to vector<2x1x1xf32>
      %192 = arith.subf %191, %arg8 : vector<2x1x1xf32>
      %193 = vector.broadcast %121 : vector<2x1x1xf32> to vector<2x1x64xf32>
      %194 = arith.mulf %arg12, %193 : vector<2x1x64xf32>
      %195 = vector.broadcast %194 : vector<2x1x64xf32> to vector<2x64x64xf32>
      %196 = arith.subf %195, %129 : vector<2x64x64xf32>
      %cst_56 = arith.constant dense<0xFF800000> : vector<2x64xf32>
      %197 = vector.multi_reduction <maximumf>, %196, %cst_56 [2] : vector<2x64x64xf32> to vector<2x64xf32>
      %198 = vector.shape_cast %197 : vector<2x64xf32> to vector<2x64x1xf32>
      %199 = vector.broadcast %198 : vector<2x64x1xf32> to vector<2x64x64xf32>
      %200 = arith.subf %196, %199 : vector<2x64x64xf32>
      %201 = math.exp %200 : vector<2x64x64xf32>
      %cst_57 = arith.constant dense<0.000000e+00> : vector<2x64xf32>
      %202 = vector.multi_reduction <add>, %201, %cst_57 [2] : vector<2x64x64xf32> to vector<2x64xf32>
      %203 = vector.shape_cast %202 : vector<2x64xf32> to vector<2x64x1xf32>
      %204 = math.log %203 : vector<2x64x1xf32>
      %205 = arith.addf %198, %204 : vector<2x64x1xf32>
      %cst_58 = arith.constant 4.15888309 : f32
      %206 = vector.broadcast %cst_58 : f32 to vector<2x64x1xf32>
      %207 = arith.subf %205, %206 : vector<2x64x1xf32>
      %208 = vector.broadcast %192 : vector<2x1x1xf32> to vector<2x64x1xf32>
      %209 = arith.mulf %208, %207 : vector<2x64x1xf32>
      %210 = tpu.transpose %209, [0, 2, 1] : vector<2x64x1xf32> -> vector<2x1x64xf32>
      %211 = arith.addf %arg12, %210 : vector<2x1x64xf32>
      %cst_59 = arith.constant 5.000000e-01 : f32
      %212 = vector.broadcast %cst_59 : f32 to vector<2x1x64xf32>
      %213 = arith.mulf %212, %211 : vector<2x1x64xf32>
      %cst_60 = arith.constant 2.500000e-01 : f32
      %214 = vector.broadcast %cst_60 : f32 to vector<2x1x1xf32>
      %215 = arith.mulf %arg8, %214 : vector<2x1x1xf32>
      %cst_61 = arith.constant 2.500000e-03 : f32
      %216 = vector.broadcast %cst_61 : f32 to vector<2x1x1xf32>
      %217 = arith.maximumf %215, %216 : vector<2x1x1xf32>
      scf.yield %217, %148, %167, %190, %213 : vector<2x1x1xf32>, vector<2x64x1xf32>, vector<2x1x64xf32>, vector<2x1x64xf32>, vector<2x1x64xf32>
    }
    %cst_26 = arith.constant dense<0.000000e+00> : vector<2x1xf32>
    %95 = vector.multi_reduction <add>, %94#1, %cst_26 [1] : vector<2x64x1xf32> to vector<2x1xf32>
    %96 = vector.shape_cast %95 : vector<2x1xf32> to vector<2x1x1xf32>
    %cst_27 = arith.constant 6.400000e+01 : f32
    %97 = vector.broadcast %cst_27 : f32 to vector<2x1x1xf32>
    %98 = arith.divf %96, %97 : vector<2x1x1xf32>
    %cst_28 = arith.constant dense<0.000000e+00> : vector<2x1xf32>
    %99 = vector.multi_reduction <add>, %94#2, %cst_28 [2] : vector<2x1x64xf32> to vector<2x1xf32>
    %100 = vector.shape_cast %99 : vector<2x1xf32> to vector<2x1x1xf32>
    %cst_29 = arith.constant 6.400000e+01 : f32
    %101 = vector.broadcast %cst_29 : f32 to vector<2x1x1xf32>
    %102 = arith.divf %100, %101 : vector<2x1x1xf32>
    %103 = arith.addf %98, %102 : vector<2x1x1xf32>
    %cst_30 = arith.constant dense<0.000000e+00> : vector<2x1xf32>
    %104 = vector.multi_reduction <add>, %94#3, %cst_30 [2] : vector<2x1x64xf32> to vector<2x1xf32>
    %105 = vector.shape_cast %104 : vector<2x1xf32> to vector<2x1x1xf32>
    %cst_31 = arith.constant 6.400000e+01 : f32
    %106 = vector.broadcast %cst_31 : f32 to vector<2x1x1xf32>
    %107 = arith.divf %105, %106 : vector<2x1x1xf32>
    %108 = arith.subf %103, %107 : vector<2x1x1xf32>
    %cst_32 = arith.constant dense<0.000000e+00> : vector<2x1xf32>
    %109 = vector.multi_reduction <add>, %94#4, %cst_32 [2] : vector<2x1x64xf32> to vector<2x1xf32>
    %110 = vector.shape_cast %109 : vector<2x1xf32> to vector<2x1x1xf32>
    %cst_33 = arith.constant 6.400000e+01 : f32
    %111 = vector.broadcast %cst_33 : f32 to vector<2x1x1xf32>
    %112 = arith.divf %110, %111 : vector<2x1x1xf32>
    %113 = arith.subf %108, %112 : vector<2x1x1xf32>
    %114 = vector.shape_cast %82 : vector<2x1x1xf32> to vector<2x1x1xf32>
    %115 = vector.broadcast %114 : vector<2x1x1xf32> to vector<2x1x128xf32>
    %c0_34 = arith.constant 0 : index
    %c0_35 = arith.constant 0 : index
    %c0_36 = arith.constant 0 : index
    %116 = vector.load %arg5[%c0_34, %c0_35, %c0_36] : memref<2x1x128xf32, #tpu.memory_space<vmem>>, vector<2x1x128xf32>
    tpu.vector_store %arg5[%c0_34, %c0_35, %c0_36], %115 {strides = array<i32>} : memref<2x1x128xf32, #tpu.memory_space<vmem>>, vector<2x1x128xf32>,
    %117 = vector.shape_cast %113 : vector<2x1x1xf32> to vector<2x1x1xf32>
    %118 = vector.broadcast %117 : vector<2x1x1xf32> to vector<2x1x128xf32>
    %c0_37 = arith.constant 0 : index
    %c0_38 = arith.constant 0 : index
    %c0_39 = arith.constant 0 : index
    %119 = vector.load %arg6[%c0_37, %c0_38, %c0_39] : memref<2x1x128xf32, #tpu.memory_space<vmem>>, vector<2x1x128xf32>
    tpu.vector_store %arg6[%c0_37, %c0_38, %c0_39], %118 {strides = array<i32>} : memref<2x1x128xf32, #tpu.memory_space<vmem>>, vector<2x1x128xf32>,
    return
  }
  func.func @transform_0(%arg0: i32) -> (i32, i32, i32) {
    %c0_i32 = arith.constant 0 : i32
    %c0_i32_0 = arith.constant 0 : i32
    %c0_i32_1 = arith.constant 0 : i32
    return %arg0, %c0_i32, %c0_i32_0 : i32, i32, i32
  }
  func.func @transform_1(%arg0: i32) -> (i32, i32, i32) {
    %c0_i32 = arith.constant 0 : i32
    %c0_i32_0 = arith.constant 0 : i32
    %c0_i32_1 = arith.constant 0 : i32
    return %arg0, %c0_i32, %c0_i32_0 : i32, i32, i32
  }
  func.func @transform_2(%arg0: i32) -> (i32, i32, i32) {
    %c0_i32 = arith.constant 0 : i32
    %c0_i32_0 = arith.constant 0 : i32
    %c0_i32_1 = arith.constant 0 : i32
    return %arg0, %c0_i32, %c0_i32_0 : i32, i32, i32
  }
  func.func @transform_3(%arg0: i32) -> (i32, i32, i32) {
    %c0_i32 = arith.constant 0 : i32
    %c0_i32_0 = arith.constant 0 : i32
    %c0_i32_1 = arith.constant 0 : i32
    return %arg0, %c0_i32, %c0_i32_0 : i32, i32, i32
  }
  func.func @transform_4(%arg0: i32) -> (i32, i32, i32) {
    %c0_i32 = arith.constant 0 : i32
    %c0_i32_0 = arith.constant 0 : i32
    %c0_i32_1 = arith.constant 0 : i32
    return %arg0, %c0_i32, %c0_i32_0 : i32, i32, i32
  }
  func.func @transform_5(%arg0: i32) -> (i32, i32, i32) {
    %c0_i32 = arith.constant 0 : i32
    %c0_i32_0 = arith.constant 0 : i32
    %c0_i32_1 = arith.constant 0 : i32
    return %arg0, %c0_i32, %c0_i32_0 : i32, i32, i32
  }
}

</mosaic_0001>

<bundles_post_ra>
// kernel: tpu_custom_call.1
= control target key start
LH: loop header
LB: loop body
LE: loop exit
PB: predicated region body
PF: predicated region fallthrough
CT: control target
= control target key end

     0   :  { %11 = vsyncpa [#allocation3], 0  ;;  %v2949_v3 = vmov 0   ;;  %s4984_s0 = inlined_call_operand.vmem [shape: f32[2,64,3], index: 0, kind: input, shape index: {}]   ;;  %s4985_s1 = inlined_call_operand.vmem [shape: f32[2,64,3], index: 1, kind: input, shape index: {}]   ;;  %s4986_s2 = inlined_call_operand.vmem [shape: f32[2,3,64], index: 2, kind: input, shape index: {}]   ;;  %s4987_s3 = inlined_call_operand.vmem [shape: f32[2,3,64], index: 3, kind: input, shape index: {}]   ;;  %s4988_s4 = inlined_call_operand.hbm [shape: f32[2,1,128], index: 4, kind: output, shape index: {0}]   ;;  %s4989_s5 = inlined_call_operand.hbm [shape: f32[2,1,128], index: 5, kind: output, shape index: {1}]  }
   0x1   :  { %v2990_v0 = vld [vmem:[%s4984_s0 + $0x20] sm:$0xff]  ;;  %v2995_v1 = vld [vmem:[%s4984_s0 + $0x10] sm:$0xff]  ;;  %2578 = vset.pattern.permute.xlu2 %v2949_v3  ;;  %2577 = vset.pattern.permute.xlu1 %v2949_v3 }
   0x2   :  { %v3000_v2 = vld [vmem:[%s4984_s0] sm:$0xff]  ;;  %2576 = vset.pattern.permute.xlu0 %v2949_v3  ;;  %79 = vperm.xlu2 %2578, %v2990_v0  }
   0x3   :  { %69 = vperm.xlu1 %2577, %v2995_v1   ;;  %59 = vperm.xlu0 %2576, %v3000_v2  }
   0x4   :  { %12 = vsyncpa [#allocation5], 0  ;;  %v3011_v4 = vld [vmem:[%s4984_s0 + $0x28] sm:$0xff]  ;;  %v24_v5 = vld [vmem:[%s4984_s0 + $0x18] sm:$0xff]  ;;  %v4992_v17 = vmov 1   ;;  %v4990_v23 = vmov 2  }
   0x5   :  { %v22_v6 = vld [vmem:[%s4984_s0 + $0x8] sm:$0xff]  ;;  %v3023_v7 = vld [vmem:[%s4984_s0 + $0x40] sm:$0xff]  ;;  %v28_v8 = vld [vmem:[%s4984_s0 + $0x38] sm:$0xff]  ;;  %vm917_vm0 = vcmask 523264  }
   0x6   :  { %v27_v9 = vld [vmem:[%s4984_s0 + $0x30] sm:$0xff]  ;;  %v3035_v10 = vld [vmem:[%s4984_s0 + $0x58] sm:$0xff]  ;;  %v30_v12 = vld [vmem:[%s4984_s0 + $0x48] sm:$0xff] }
   0x7   :  { %v31_v11 = vld [vmem:[%s4984_s0 + $0x50] sm:$0xff]  ;;  %v34_v14 = vld [vmem:[%s4984_s0 + $0x68] sm:$0xff]  ;;  %v33_v15 = vld [vmem:[%s4984_s0 + $0x60] sm:$0xff] }
   0x8   :  { %v3047_v13 = vld [vmem:[%s4984_s0 + $0x70] sm:$0xff]  ;;  %v3059_v16 = vld [vmem:[%s4984_s0 + $0x78] sm:$0xff]  ;;  %v3068_v18 = vld [vmem:[%s4985_s1 + $0x8] sm:$0xff] }
   0x9   :  { %v3075_v19 = vld [vmem:[%s4985_s1 + $0x30] sm:$0xff]  ;;  %v3082_v20 = vld [vmem:[%s4985_s1 + $0x48] sm:$0xff]  ;;  %v3089_v21 = vld [vmem:[%s4985_s1 + $0x60] sm:$0xff] }
   0xa   :  { %84 = vperm.xlu2 %2578, %v3011_v4   ;;  %v3096_v22 = vld [vmem:[%s4985_s1 + $0x78] sm:$0xff]  ;;  %v3120_v30 = vld [vmem:[%s4985_s1 + $0x10] sm:$0xff]  ;;  %v3130_v34 = vld [vmem:[%s4986_s2] sm:$0x7] }
   0xb   :  { %74 = vperm.xlu1 %2577, %v24_v5   ;;  %64 = vperm.xlu0 %2576, %v22_v6   ;;  %5062 = vst [vmem:[#allocation9_spill] sm:$0xff] %v3120_v30  ;;  %v3135_v35 = vld [vmem:[%s4987_s3] sm:$0x7]  ;;  %v3141_v37 = vperm.slane %v3130_v34, 0  ;;  %v3146_v38 = vld [vmem:[%s4985_s1 + $0x38] sm:$0xff]  ;;  %v3154_v42 = vperm.slane %v3130_v34, 1 }
   0xc   :  { %v3138_v36 = vperm.slane %v3135_v35, 0  ;;  %v3151_v41 = vperm.slane %v3135_v35, 1  ;;  %v3159_v43 = vld [vmem:[%s4985_s1] sm:$0xff]  ;;  %v3172_v53 = vld [vmem:[%s4985_s1 + $0x50] sm:$0xff]  ;;  %v3181_v56 = vld [vmem:[%s4985_s1 + $0x18] sm:$0xff] }
  0x12   :  { %99 = vperm.xlu2 %2578, %v3023_v7  }
  0x13   :  { %94 = vperm.xlu1 %2577, %v28_v8   ;;  %89 = vperm.xlu0 %2576, %v27_v9  }
  0x1a   :  { %114 = vperm.xlu2 %2578, %v3035_v10  }
  0x1b   :  { %109 = vperm.xlu1 %2577, %v31_v11   ;;  %104 = vperm.xlu0 %2576, %v30_v12  }
  0x22   :  { %129 = vperm.xlu2 %2578, %v3047_v13  }
  0x23   :  { %124 = vperm.xlu1 %2577, %v34_v14   ;;  %119 = vperm.xlu0 %2576, %v33_v15  }
  0x2a   :  { %2580 = vset.pattern.permute.xlu2 %v4992_v17 }
  0x2b   :  { %2579 = vset.pattern.permute.xlu1 %v4992_v17  ;;  %134 = vperm.xlu0 %2576, %v3059_v16  }
  0x2c   :  { %192 = vperm.xlu2 %2580, %v22_v6   ;;  %188 = vperm.xlu1 %2579, %v3000_v2  }
  0x33   :  { %572 = vperm.xlu0 %2576, %v3068_v18  }
  0x34   :  { %204 = vperm.xlu2 %2580, %v2990_v0   ;;  %200 = vperm.xlu1 %2579, %v24_v5  }
  0x3b   :  { %597 = vperm.xlu0 %2576, %v3075_v19  }
  0x3c   :  { %212 = vperm.xlu2 %2580, %v27_v9   ;;  %208 = vperm.xlu1 %2579, %v3011_v4  }
  0x43   :  { %612 = vperm.xlu0 %2576, %v3082_v20  }
  0x44   :  { %224 = vperm.xlu2 %2580, %v30_v12   ;;  %220 = vperm.xlu1 %2579, %v3023_v7  }
  0x4b   :  { %627 = vperm.xlu0 %2576, %v3089_v21  }
  0x4c   :  { %236 = vperm.xlu2 %2580, %v33_v15   ;;  %232 = vperm.xlu1 %2579, %v3035_v10  }
  0x53   :  { %642 = vperm.xlu0 %2576, %v3096_v22  }
  0x54   :  { %248 = vperm.xlu2 %2580, %v3059_v16   ;;  %244 = vperm.xlu1 %2579, %v3047_v13  }
  0x5b   :  { %2585 = vset.pattern.permute.xlu0 %v4992_v17 }
  0x5c   :  { %2582 = vset.pattern.permute.xlu2 %v4990_v23  ;;  %2581 = vset.pattern.permute.xlu1 %v4990_v23  ;;  %v80_v24 = vpop.permute.xlu2 %79 }
  0x5d   :  { %196 = vperm.xlu0 %2585, %v2995_v1   ;;  %310 = vperm.xlu2 %2582, %v2995_v1   ;;  %v143_v57 = vsub.f32 %v80_v24, %v3138_v36  ;;  %v421_v58 = vsub.f32 %v80_v24, %v3141_v37 }
  0x5e   :  { %306 = vperm.xlu1 %2581, %v22_v6  }
  0x5f   :  { %v437_v1 = vmul.f32 %v421_v58, %v421_v58 }
  0x64   :  { %v3106_v25 = vpop.permute.xlu2 %84 }
  0x65   :  { %216 = vperm.xlu0 %2585, %v28_v8   ;;  %318 = vperm.xlu2 %2582, %v2990_v0   ;;  %v159_v0 = vmul.f32 %v143_v57, %v143_v57 }
  0x66   :  { %314 = vperm.xlu1 %2581, %v24_v5  }
  0x6c   :  { %v3109_v26 = vpop.permute.xlu2 %99 }
  0x6d   :  { %228 = vperm.xlu0 %2585, %v31_v11   ;;  %330 = vperm.xlu2 %2582, %v28_v8   ;;  %v3196_v8 = vld [vmem:[%s4985_s1 + $0x68] sm:$0xff] }
  0x6e   :  { %326 = vperm.xlu1 %2581, %v27_v9  }
  0x74   :  { %v3111_v27 = vpop.permute.xlu2 %114 }
  0x75   :  { %5061 = vst [vmem:[#allocation8_spill] sm:$0xff] %v3111_v27  ;;  %240 = vperm.xlu0 %2585, %v34_v14   ;;  %v3113_v28 = vpop.permute.xlu1 %69  ;;  %342 = vperm.xlu2 %2582, %v31_v11   ;;  %v3115_v29 = vpop.permute.xlu0 %59  ;;  %v3205_v11 = vld [vmem:[%s4985_s1 + $0x28] sm:$0xff] }
  0x76   :  { %338 = vperm.xlu1 %2581, %v30_v12   ;;  %v3210_v12 = vld [vmem:[%s4985_s1 + $0x20] sm:$0xff] }
  0x7c   :  { %v3122_v31 = vpop.permute.xlu2 %129 }
  0x7d   :  { %702 = vperm.xlu0 %2585, %v3120_v30   ;;  %v3125_v32 = vpop.permute.xlu1 %74  ;;  %354 = vperm.xlu2 %2582, %v34_v14   ;;  %v65_v33 = vpop.permute.xlu0 %64 }
  0x7e   :  { %350 = vperm.xlu1 %2581, %v33_v15   ;;  %v140_v39 = vsub.f32 %v65_v33, %v3138_v36  ;;  %v418_v40 = vsub.f32 %v65_v33, %v3141_v37 }
  0x80   :  { %v156_v47 = vmul.f32 %v140_v39, %v140_v39  ;;  %v434_v48 = vmul.f32 %v418_v40, %v418_v40  ;;  %v3220_v39 = vld [vmem:[%s4986_s2 + $0x4] sm:$0x7] }
  0x81   :  { %v3225_v40 = vld [vmem:[%s4987_s3 + $0x4] sm:$0x7] }
  0x82   :  { %5064 = vst [vmem:[#allocation11_spill] sm:$0xff] %v3225_v40 }
  0x85   :  { %722 = vperm.xlu0 %2585, %v3146_v38   ;;  %v3162_v44 = vpop.permute.xlu1 %94  ;;  %2583 = vset.pattern.permute.xlu2 %v2949_v3  ;;  %v90_v45 = vpop.permute.xlu0 %89 }
  0x86   :  { %362 = vperm.xlu1 %2581, %v3059_v16   ;;  %v193_v46 = vpop.permute.xlu2 %192  ;;  %567 = vperm.xlu2 %2583, %v3159_v43   ;;  %v145_v14 = vsub.f32 %v90_v45, %v3138_v36  ;;  %v423_v15 = vsub.f32 %v90_v45, %v3141_v37 }
  0x87   :  { %v254_v49 = vsub.f32 %v193_v46, %v3151_v41  ;;  %v468_v50 = vsub.f32 %v193_v46, %v3154_v42 }
  0x89   :  { %v270_v51 = vmul.f32 %v254_v49, %v254_v49  ;;  %v484_v52 = vmul.f32 %v468_v50, %v468_v50 }
  0x8b   :  { %v3174_v54 = vadd.f32 %v270_v51, %v156_v47  ;;  %v3176_v55 = vadd.f32 %v484_v52, %v434_v48  ;;  %v161_v47 = vmul.f32 %v145_v14, %v145_v14  ;;  %v439_v48 = vmul.f32 %v423_v15, %v423_v15 }
  0x8c   :  { %v3232_v51 = vperm.slane %v3225_v40, 0  ;;  %v3235_v52 = vperm.slane %v3220_v39, 0  ;;  %v417_v14 = vsub.f32 %v3115_v29, %v3141_v37 }
  0x8d   :  { %734 = vperm.xlu0 %2585, %v3172_v53   ;;  %v3186_v59 = vpop.permute.xlu1 %109  ;;  %v105_v60 = vpop.permute.xlu0 %104 }
  0x8e   :  { %2584 = vset.pattern.permute.xlu1 %v2949_v3  ;;  %v205_v61 = vpop.permute.xlu2 %204  ;;  %582 = vperm.xlu2 %2583, %v3181_v56   ;;  %v433_v17 = vmul.f32 %v417_v14, %v417_v14 }
  0x8f   :  { %v257_v62 = vsub.f32 %v205_v61, %v3151_v41  ;;  %v471_v63 = vsub.f32 %v205_v61, %v3154_v42  ;;  %577 = vperm.xlu1 %2584, %v3120_v30   ;;  %v3242_v61 = vperm.slane %v3225_v40, 1 }
  0x91   :  { %v273_v5 = vmul.f32 %v257_v62, %v257_v62  ;;  %v487_v6 = vmul.f32 %v471_v63, %v471_v63  ;;  %v3245_v62 = vperm.slane %v3220_v39, 1  ;;  %v139_v63 = vsub.f32 %v3115_v29, %v3138_v36 }
  0x93   :  { %v3198_v9 = vadd.f32 %v273_v5, %v159_v0  ;;  %v3200_v3 = vadd.f32 %v487_v6, %v437_v1  ;;  %v148_v0 = vsub.f32 %v105_v60, %v3232_v51  ;;  %v3253_v1 = vld [vmem:[%s4985_s1 + $0x40] sm:$0xff]  ;;  %v426_v5 = vsub.f32 %v105_v60, %v3235_v52 }
  0x95   :  { %5063 = vst [vmem:[#allocation10_spill] sm:$0xff] %v3198_v9  ;;  %746 = vperm.xlu0 %2585, %v3196_v8   ;;  %v3215_v16 = vpop.permute.xlu1 %124  ;;  %v120_v24 = vpop.permute.xlu0 %119 }
  0x96   :  { %v213_v33 = vpop.permute.xlu2 %212  ;;  %592 = vperm.xlu2 %2583, %v3205_v11   ;;  %v429_v14 = vsub.f32 %v120_v24, %v3235_v52 }
  0x97   :  { %v259_v45 = vsub.f32 %v213_v33, %v3151_v41  ;;  %v473_v46 = vsub.f32 %v213_v33, %v3154_v42  ;;  %587 = vperm.xlu1 %2584, %v3210_v12  }
  0x99   :  { %v275_v49 = vmul.f32 %v259_v45, %v259_v45  ;;  %v489_v50 = vmul.f32 %v473_v46, %v473_v46 }
  0x9b   :  { %v3237_v57 = vadd.f32 %v275_v49, %v161_v47  ;;  %v3239_v58 = vadd.f32 %v489_v50, %v439_v48  ;;  %v155_v47 = vmul.f32 %v139_v63, %v139_v63  ;;  %v164_v48 = vmul.f32 %v148_v0, %v148_v0 }
  0x9c   :  { %v442_v50 = vmul.f32 %v426_v5, %v426_v5  ;;  %v151_v63 = vsub.f32 %v120_v24, %v3232_v51  ;;  %v3280_v5 = vld [vmem:[%s4985_s1 + $0x58] sm:$0xff] }
  0x9d   :  { %5065 = vst [vmem:[#allocation12_spill] sm:$0xff] %v3237_v57  ;;  %2588 = vset.pattern.permute.xlu0 %v4990_v23  ;;  %v135_v6 = vpop.permute.xlu0 %134 }
  0x9e   :  { %302 = vperm.xlu0 %2588, %v3000_v2   ;;  %v225_v15 = vpop.permute.xlu2 %224  ;;  %v189_v33 = vpop.permute.xlu1 %188  ;;  %607 = vperm.xlu2 %2583, %v3253_v1  }
  0x9f   :  { %v262_v45 = vsub.f32 %v225_v15, %v3242_v61  ;;  %v476_v46 = vsub.f32 %v225_v15, %v3245_v62  ;;  %602 = vperm.xlu1 %2584, %v3146_v38   ;;  %v253_v60 = vsub.f32 %v189_v33, %v3151_v41  ;;  %v467_v49 = vsub.f32 %v189_v33, %v3154_v42 }
  0xa0   :  { %v142_v15 = vsub.f32 %v3125_v32, %v3138_v36 }
  0xa1   :  { %v278_v29 = vmul.f32 %v262_v45, %v262_v45  ;;  %v492_v23 = vmul.f32 %v476_v46, %v476_v46  ;;  %v269_v2 = vmul.f32 %v253_v60, %v253_v60  ;;  %v483_v57 = vmul.f32 %v467_v49, %v467_v49 }
  0xa2   :  { %v158_v24 = vmul.f32 %v142_v15, %v142_v15  ;;  %v445_v49 = vmul.f32 %v429_v14, %v429_v14  ;;  %v3305_v15 = vld [vmem:[%s4985_s1 + $0x70] sm:$0xff]  ;;  %v432_v14 = vsub.f32 %v135_v6, %v3235_v52  ;;  %s3903_s1 = smov 0  }
  0xa3   :  { %v3266_v9 = vadd.f32 %v278_v29, %v164_v48  ;;  %v3268_v40 = vadd.f32 %v492_v23, %v442_v50  ;;  %v3270_v30 = vadd.f32 %v269_v2, %v155_v47  ;;  %v3275_v0 = vadd.f32 %v483_v57, %v433_v17 }
  0xa4   :  { %v420_v23 = vsub.f32 %v3125_v32, %v3141_v37  ;;  %v167_v47 = vmul.f32 %v151_v63, %v151_v63  ;;  %v154_v63 = vsub.f32 %v135_v6, %v3232_v51 }
  0xa5   :  { %5066 = vst [vmem:[#allocation13_spill] sm:$0xff] %v3266_v9  ;;  %v3283_v33 = vpop.permute.xlu0 %572 }
  0xa6   :  { %5067 = vst [vmem:[#allocation14_spill] sm:$0xff] %v3270_v30  ;;  %322 = vperm.xlu0 %2588, %v3011_v4   ;;  %v237_v45 = vpop.permute.xlu2 %236  ;;  %v201_v46 = vpop.permute.xlu1 %200  ;;  %622 = vperm.xlu2 %2583, %v3280_v5   ;;  %v436_v29 = vmul.f32 %v420_v23, %v420_v23  ;;  %v422_v23 = vsub.f32 %v3106_v25, %v3141_v37 }
  0xa7   :  { %5068 = vst [vmem:[#allocation15_spill] sm:$0xff] %v3275_v0  ;;  %v265_v17 = vsub.f32 %v237_v45, %v3242_v61  ;;  %v479_v57 = vsub.f32 %v237_v45, %v3245_v62  ;;  %617 = vperm.xlu1 %2584, %v3172_v53   ;;  %v256_v60 = vsub.f32 %v201_v46, %v3151_v41 }
  0xa8   :  { %v470_v48 = vsub.f32 %v201_v46, %v3154_v42 }
  0xa9   :  { %v281_v32 = vmul.f32 %v265_v17, %v265_v17  ;;  %v495_v50 = vmul.f32 %v479_v57, %v479_v57  ;;  %v272_v4 = vmul.f32 %v256_v60, %v256_v60 }
  0xaa   :  { %v486_v2 = vmul.f32 %v470_v48, %v470_v48  ;;  %v448_v48 = vmul.f32 %v432_v14, %v432_v14 }
  0xab   :  { %v3294_v9 = vadd.f32 %v281_v32, %v167_v47  ;;  %v3296_v30 = vadd.f32 %v495_v50, %v445_v49  ;;  %v3298_v0 = vadd.f32 %v272_v4, %v158_v24  ;;  %v170_v47 = vmul.f32 %v154_v63, %v154_v63 }
  0xac   :  { %v3300_v45 = vadd.f32 %v486_v2, %v436_v29  ;;  %v438_v50 = vmul.f32 %v422_v23, %v422_v23  ;;  %v5073_v63 = vmov 1  }
  0xad   :  { %5069 = vst [vmem:[#allocation16_spill] sm:$0xff] %v3294_v9  ;;  %v3309_v46 = vpop.permute.xlu0 %597 }
  0xae   :  { %5070 = vst [vmem:[#allocation17_spill] sm:$0xff] %v3309_v46  ;;  %334 = vperm.xlu0 %2588, %v3023_v7   ;;  %v249_v17 = vpop.permute.xlu2 %248  ;;  %v3314_v57 = vpop.permute.xlu1 %208  ;;  %637 = vperm.xlu2 %2583, %v3305_v15  }
  0xaf   :  { %v268_v60 = vsub.f32 %v249_v17, %v3242_v61  ;;  %v482_v24 = vsub.f32 %v249_v17, %v3245_v62  ;;  %632 = vperm.xlu1 %2584, %v3196_v8   ;;  %v472_v6 = vsub.f32 %v3314_v57, %v3154_v42  ;;  %v425_v17 = vsub.f32 %v3109_v26, %v3235_v52 }
  0xb1   :  { %v284_v49 = vmul.f32 %v268_v60, %v268_v60  ;;  %v498_v32 = vmul.f32 %v482_v24, %v482_v24  ;;  %v488_v7 = vmul.f32 %v472_v6, %v472_v6  ;;  %v441_v60 = vmul.f32 %v425_v17, %v425_v17 }
  0xb3   :  { %v3322_v4 = vadd.f32 %v284_v49, %v170_v47  ;;  %v3324_v29 = vadd.f32 %v498_v32, %v448_v48  ;;  %v3326_v2 = vadd.f32 %v488_v7, %v438_v50  ;;  %v3350_v48 = vperm.slane %v3130_v34, 2 }
  0xb5   :  { %5071 = vst [vmem:[#allocation18_spill] sm:$0xff] %v3326_v2  ;;  %v3330_v9 = vpop.permute.xlu0 %612  ;;  %v424_v2 = vsub.f32 %v3162_v44, %v3141_v37 }
  0xb6   :  { %5072 = vst [vmem:[#allocation19_spill] sm:$0xff] %v3330_v9  ;;  %346 = vperm.xlu0 %2588, %v3035_v10   ;;  %v3333_v46 = vpop.permute.xlu1 %220  ;;  %2587 = vset.pattern.permute.xlu2 %v5073_v63  ;;  %v428_v10 = vsub.f32 %v3111_v27, %v3235_v52 }
  0xb7   :  { %2586 = vset.pattern.permute.xlu1 %v5073_v63  ;;  %v475_v14 = vsub.f32 %v3333_v46, %v3245_v62  ;;  %v3339_v23 = vpop.permute.xlu2 %310  ;;  %698 = vperm.xlu2 %2587, %v3068_v18  }
  0xb8   :  { %694 = vperm.xlu1 %2586, %v3159_v43   ;;  %v444_v17 = vmul.f32 %v428_v10, %v428_v10 }
  0xb9   :  { %v491_v24 = vmul.f32 %v475_v14, %v475_v14 }
  0xbb   :  { %v3343_v6 = vadd.f32 %v491_v24, %v441_v60  ;;  %v153_v60 = vsub.f32 %v3122_v31, %v3232_v51  ;;  %v431_v24 = vsub.f32 %v3122_v31, %v3235_v52 }
  0xbd   :  { %5074 = vst [vmem:[#allocation20_spill] sm:$0xff] %v3343_v6  ;;  %v3347_v47 = vpop.permute.xlu0 %627 }
  0xbe   :  { %5075 = vst [vmem:[#allocation21_spill] sm:$0xff] %v3347_v47  ;;  %358 = vperm.xlu0 %2588, %v3047_v13   ;;  %v3353_v49 = vpop.permute.xlu1 %232 }
  0xbf   :  { %5076 = vst [vmem:[#allocation22_spill] sm:$0xff] %v3353_v49  ;;  %v478_v32 = vsub.f32 %v3353_v49, %v3245_v62  ;;  %v3357_v50 = vpop.permute.xlu2 %318  ;;  %710 = vperm.xlu2 %2587, %v3210_v12  }
  0xc0   :  { %v521_v7 = vsub.f32 %v3357_v50, %v3350_v48  ;;  %706 = vperm.xlu1 %2586, %v3181_v56  }
  0xc1   :  { %v494_v63 = vmul.f32 %v478_v32, %v478_v32 }
  0xc2   :  { %v537_v34 = vmul.f32 %v521_v7, %v521_v7 }
  0xc3   :  { %v3363_v14 = vadd.f32 %v494_v63, %v444_v17  ;;  %v447_v17 = vmul.f32 %v431_v24, %v431_v24 }
  0xc4   :  { %v3366_v13 = vadd.f32 %v537_v34, %v3200_v3  ;;  %v169_v3 = vmul.f32 %v153_v60, %v153_v60  ;;  %v519_v60 = vsub.f32 %v3339_v23, %v3350_v48 }
  0xc5   :  { %5077 = vst [vmem:[#allocation23_spill] sm:$0xff] %v3363_v14  ;;  %v3372_v47 = vpop.permute.xlu0 %642 }
  0xc6   :  { %5078 = vst [vmem:[#allocation24_spill] sm:$0xff] %v3366_v13  ;;  %806 = vperm.xlu0 %2588, %v3159_v43   ;;  %v245_v9 = vpop.permute.xlu1 %244  ;;  %v141_v43 = vsub.f32 %v3113_v28, %v3138_v36  ;;  %v535_v6 = vmul.f32 %v519_v60, %v519_v60 }
  0xc7   :  { %5079 = vst [vmem:[#allocation25_spill] sm:$0xff] %v3372_v47  ;;  %v267_v10 = vsub.f32 %v245_v9, %v3242_v61  ;;  %v481_v32 = vsub.f32 %v245_v9, %v3245_v62  ;;  %v3377_v7 = vpop.permute.xlu2 %330  ;;  %718 = vperm.xlu2 %2587, %v3075_v19   ;;  %v419_v9 = vsub.f32 %v3113_v28, %v3141_v37 }
  0xc8   :  { %714 = vperm.xlu1 %2586, %v3205_v11   ;;  %v524_v60 = vsub.f32 %v3377_v7, %v3350_v48 }
  0xc9   :  { %v283_v63 = vmul.f32 %v267_v10, %v267_v10  ;;  %v497_v34 = vmul.f32 %v481_v32, %v481_v32 }
  0xcb   :  { %v3381_v31 = vadd.f32 %v283_v63, %v169_v3  ;;  %v3383_v13 = vadd.f32 %v497_v34, %v447_v17  ;;  %v3398_v3 = vperm.slane %v3135_v35, 2  ;;  %v435_v17 = vmul.f32 %v419_v9, %v419_v9 }
  0xcc   :  { %v146_v35 = vsub.f32 %v3162_v44, %v3138_v36 }
  0xcd   :  { %5080 = vst [vmem:[#allocation26_spill] sm:$0xff] %v3381_v31 }
  0xce   :  { %5081 = vst [vmem:[#allocation27_spill] sm:$0xff] %v3383_v13  ;;  %826 = vperm.xlu0 %2588, %v3205_v11   ;;  %v157_v11 = vmul.f32 %v141_v43, %v141_v43 }
  0xcf   :  { %v197_v47 = vpop.permute.xlu0 %196  ;;  %v3390_v14 = vpop.permute.xlu2 %342  ;;  %730 = vperm.xlu2 %2587, %v3082_v20  }
  0xd0   :  { %v255_v24 = vsub.f32 %v197_v47, %v3151_v41  ;;  %v469_v10 = vsub.f32 %v197_v47, %v3154_v42  ;;  %v307_v32 = vpop.permute.xlu1 %306  ;;  %726 = vperm.xlu1 %2586, %v3253_v1  }
  0xd1   :  { %v518_v28 = vsub.f32 %v307_v32, %v3350_v48  ;;  %v368_v31 = vsub.f32 %v307_v32, %v3398_v3 }
  0xd2   :  { %v271_v63 = vmul.f32 %v255_v24, %v255_v24  ;;  %v485_v34 = vmul.f32 %v469_v10, %v469_v10 }
  0xd3   :  { %v534_v13 = vmul.f32 %v518_v28, %v518_v28  ;;  %v384_v9 = vmul.f32 %v368_v31, %v368_v31 }
  0xd4   :  { %v3403_v49 = vadd.f32 %v271_v63, %v157_v11  ;;  %v501_v47 = vadd.f32 %v485_v34, %v435_v17  ;;  %v540_v34 = vmul.f32 %v524_v60, %v524_v60 }
  0xd5   :  { %v3406_v27 = vadd.f32 %v534_v13, %v3176_v55  ;;  %v3426_v63 = vadd.f32 %v384_v9, %v3174_v54  ;;  %v427_v54 = vsub.f32 %v3186_v59, %v3235_v52 }
  0xd6   :  { %v3412_v43 = vadd.f32 %v535_v6, %v501_v47  ;;  %838 = vperm.xlu0 %2588, %v3253_v1   ;;  %v162_v1 = vmul.f32 %v146_v35, %v146_v35  ;;  %v440_v6 = vmul.f32 %v424_v2, %v424_v2  ;;  %v149_v2 = vsub.f32 %v3186_v59, %v3232_v51 }
  0xd7   :  { %5082 = vst [vmem:[#allocation28_spill] sm:$0xff] %v3406_v27  ;;  %v217_v24 = vpop.permute.xlu0 %216  ;;  %v3415_v10 = vpop.permute.xlu2 %354  ;;  %742 = vperm.xlu2 %2587, %v3089_v21   ;;  %v3448_v60 = vsel %vm917_vm0, %v3426_v63, inf }
  0xd8   :  { %5083 = vst [vmem:[#allocation29_spill] sm:$0xff] %v3412_v43  ;;  %v260_v55 = vsub.f32 %v217_v24, %v3151_v41  ;;  %v474_v13 = vsub.f32 %v217_v24, %v3154_v42  ;;  %v315_v32 = vpop.permute.xlu1 %314  ;;  %738 = vperm.xlu1 %2586, %v3280_v5   ;;  %v3429_v42 = vperm.slane %v3220_v39, 2 }
  0xd9   :  { %v370_v37 = vsub.f32 %v315_v32, %v3398_v3  ;;  %v520_v44 = vsub.f32 %v315_v32, %v3350_v48  ;;  %5084 = vst [vmem:[#allocation30_spill] sm:$0xff] %v3426_v63 }
  0xda   :  { %v276_v31 = vmul.f32 %v260_v55, %v260_v55  ;;  %v490_v28 = vmul.f32 %v474_v13, %v474_v13  ;;  %v430_v13 = vsub.f32 %v3215_v16, %v3235_v52  ;;  %v5091_v52 = vld [vmem:[#allocation9_spill] sm:$0xff] }
  0xdb   :  { %v386_v11 = vmul.f32 %v370_v37, %v370_v37  ;;  %v536_v17 = vmul.f32 %v520_v44, %v520_v44  ;;  %v165_v44 = vmul.f32 %v149_v2, %v149_v2 }
  0xdc   :  { %v3431_v47 = vadd.f32 %v276_v31, %v162_v1  ;;  %v506_v24 = vadd.f32 %v490_v28, %v440_v6  ;;  %v443_v1 = vmul.f32 %v427_v54, %v427_v54  ;;  %v530_v54 = vsub.f32 %v3415_v10, %v3429_v42 }
  0xdd   :  { %v3434_v27 = vadd.f32 %v536_v17, %v3300_v45  ;;  %v3437_v35 = vadd.f32 %v386_v11, %v3298_v0  ;;  %v527_v45 = vsub.f32 %v3390_v14, %v3429_v42 }
  0xde   :  { %v3443_v9 = vadd.f32 %v540_v34, %v506_v24  ;;  %850 = vperm.xlu0 %2588, %v3280_v5  }
  0xdf   :  { %5085 = vst [vmem:[#allocation31_spill] sm:$0xff] %v3434_v27  ;;  %v229_v39 = vpop.permute.xlu0 %228  ;;  %v3452_v0 = vsel %vm917_vm0, %v3437_v35, inf  ;;  %754 = vperm.xlu2 %2587, %v3096_v22   ;;  %v543_v11 = vmul.f32 %v527_v45, %v527_v45 }
  0xe0   :  { %5086 = vst [vmem:[#allocation32_spill] sm:$0xff] %v3437_v35  ;;  %v263_v55 = vsub.f32 %v229_v39, %v3242_v61  ;;  %v477_v59 = vsub.f32 %v229_v39, %v3245_v62  ;;  %v3459_v5 = vpop.permute.xlu1 %326  ;;  %750 = vperm.xlu1 %2586, %v3305_v15   ;;  %v3466_v37 = vpop.permute.xlu2 %567  ;;  %v152_v39 = vsub.f32 %v3215_v16, %v3232_v51 }
  0xe1   :  { %5087 = vst [vmem:[#allocation33_spill] sm:$0xff] %v3443_v9  ;;  %v523_v32 = vsub.f32 %v3459_v5, %v3350_v48 }
  0xe2   :  { %v279_v6 = vmul.f32 %v263_v55, %v263_v55  ;;  %v493_v31 = vmul.f32 %v477_v59, %v477_v59 }
  0xe3   :  { %v539_v28 = vmul.f32 %v523_v32, %v523_v32  ;;  %v168_v32 = vmul.f32 %v152_v39, %v152_v39 }
  0xe4   :  { %v3468_v17 = vadd.f32 %v279_v6, %v165_v44  ;;  %v509_v34 = vadd.f32 %v493_v31, %v443_v1  ;;  %v446_v44 = vmul.f32 %v430_v13, %v430_v13  ;;  %v546_v31 = vmul.f32 %v530_v54, %v530_v54 }
  0xe5   :  { %v3471_v24 = vadd.f32 %v539_v28, %v3239_v58  ;;  %v5090_v58 = vmov 2  }
  0xe6   :  { %v3477_v9 = vadd.f32 %v543_v11, %v509_v34  ;;  %862 = vperm.xlu0 %2588, %v3305_v15  }
  0xe7   :  { %5088 = vst [vmem:[#allocation34_spill] sm:$0xff] %v3471_v24  ;;  %v241_v2 = vpop.permute.xlu0 %240  ;;  %2590 = vset.pattern.permute.xlu2 %v5090_v58  ;;  %v5112_v24 = vld [vmem:[#allocation17_spill] sm:$0xff] }
  0xe8   :  { %5089 = vst [vmem:[#allocation35_spill] sm:$0xff] %v3477_v9  ;;  %v266_v45 = vsub.f32 %v241_v2, %v3242_v61  ;;  %v480_v55 = vsub.f32 %v241_v2, %v3245_v62  ;;  %v3485_v59 = vpop.permute.xlu1 %338  ;;  %2589 = vset.pattern.permute.xlu1 %v5090_v58  ;;  %814 = vperm.xlu2 %2590, %v5091_v52   ;;  %v3491_v15 = vpop.permute.xlu2 %582 }
  0xe9   :  { %v526_v16 = vsub.f32 %v3485_v59, %v3429_v42  ;;  %810 = vperm.xlu1 %2589, %v3068_v18  }
  0xea   :  { %v282_v1 = vmul.f32 %v266_v45, %v266_v45  ;;  %v496_v6 = vmul.f32 %v480_v55, %v480_v55 }
  0xeb   :  { %v542_v62 = vmul.f32 %v526_v16, %v526_v16 }
  0xec   :  { %v3494_v28 = vadd.f32 %v282_v1, %v168_v32  ;;  %v512_v11 = vadd.f32 %v496_v6, %v446_v44 }
  0xed   :  { %v3497_v34 = vadd.f32 %v542_v62, %v3268_v40  ;;  %v5095_v40 = vld [vmem:[#allocation11_spill] sm:$0xff] }
  0xee   :  { %v3499_v2 = vadd.f32 %v546_v31, %v512_v11  ;;  %v3513_v45 = vperm.slane %v5095_v40, 2 }
  0xef   :  { %5092 = vst [vmem:[#allocation9_spill] sm:$0xff] %v3497_v34  ;;  %v703_v58 = vpop.permute.xlu0 %702 }
  0xf0   :  { %5093 = vst [vmem:[#allocation36_spill] sm:$0xff] %v3499_v2  ;;  %v3501_v52 = vpop.permute.xlu1 %350  ;;  %822 = vperm.xlu2 %2590, %v3210_v12   ;;  %v3506_v39 = vpop.permute.xlu2 %592  ;;  %v759_v31 = vsub.f32 %v703_v58, %v3151_v41 }
  0xf1   :  { %v529_v13 = vsub.f32 %v3501_v52, %v3429_v42  ;;  %818 = vperm.xlu1 %2589, %v3181_v56  }
  0xf3   :  { %v545_v18 = vmul.f32 %v529_v13, %v529_v13  ;;  %v775_v13 = vmul.f32 %v759_v31, %v759_v31 }
  0xf5   :  { %v3510_v54 = vadd.f32 %v545_v18, %v3296_v30 }
  0xf7   :  { %5094 = vst [vmem:[#allocation37_spill] sm:$0xff] %v3510_v54  ;;  %v723_v55 = vpop.permute.xlu0 %722 }
  0xf8   :  { %v363_v16 = vpop.permute.xlu1 %362  ;;  %834 = vperm.xlu2 %2590, %v3146_v38   ;;  %v3518_v12 = vpop.permute.xlu2 %607 }
  0xf9   :  { %v382_v32 = vsub.f32 %v363_v16, %v3513_v45  ;;  %v532_v44 = vsub.f32 %v363_v16, %v3429_v42  ;;  %830 = vperm.xlu1 %2589, %v3075_v19   ;;  %v371_v16 = vsub.f32 %v3357_v50, %v3398_v3 }
  0xfb   :  { %v398_v56 = vmul.f32 %v382_v32, %v382_v32  ;;  %v548_v1 = vmul.f32 %v532_v44, %v532_v44  ;;  %v646_v32 = vsub.f32 %v3283_v33, %v3138_v36  ;;  %v373_v44 = vsub.f32 %v3459_v5, %v3398_v3 }
  0xfd   :  { %v3522_v30 = vadd.f32 %v548_v1, %v3324_v29  ;;  %v3525_v6 = vadd.f32 %v398_v56, %v3322_v4  ;;  %v662_v33 = vmul.f32 %v646_v32, %v646_v32  ;;  %v374_v32 = vsub.f32 %v3377_v7, %v3398_v3 }
  0xff   :  { %5096 = vst [vmem:[#allocation11_spill] sm:$0xff] %v3522_v30  ;;  %v735_v62 = vpop.permute.xlu0 %734  ;;  %v5101_v30 = vld [vmem:[#allocation14_spill] sm:$0xff] }
 0x100   :  { %5097 = vst [vmem:[#allocation38_spill] sm:$0xff] %v3525_v6  ;;  %846 = vperm.xlu2 %2590, %v3172_v53   ;;  %v3529_v11 = vpop.permute.xlu2 %622  ;;  %v369_v53 = vsub.f32 %v3339_v23, %v3398_v3 }
 0x101   :  { %v578_v38 = vpop.permute.xlu1 %577  ;;  %842 = vperm.xlu1 %2589, %v3082_v20   ;;  %v144_v20 = vsub.f32 %v3106_v25, %v3138_v36  ;;  %v387_v25 = vmul.f32 %v371_v16, %v371_v16  ;;  %v261_v16 = vsub.f32 %v3333_v46, %v3242_v61 }
 0x102   :  { %v647_v19 = vsub.f32 %v578_v38, %v3138_v36  ;;  %v385_v56 = vmul.f32 %v369_v53, %v369_v53 }
 0x103   :  { %v160_v1 = vmul.f32 %v144_v20, %v144_v20 }
 0x104   :  { %v663_v18 = vmul.f32 %v647_v19, %v647_v19 }
 0x106   :  { %v3533_v40 = vadd.f32 %v775_v13, %v663_v18  ;;  %v3560_v13 = vadd.f32 %v385_v56, %v3403_v49 }
 0x107   :  { %v3535_v29 = vpop.permute.xlu0 %746 }
 0x108   :  { %858 = vperm.xlu2 %2590, %v3196_v8   ;;  %v3538_v4 = vpop.permute.xlu2 %637  ;;  %v258_v8 = vsub.f32 %v3314_v57, %v3151_v41  ;;  %5098 = vst [vmem:[#allocation39_spill] sm:$0xff] %v3560_v13 }
 0x109   :  { %v588_v58 = vpop.permute.xlu1 %587  ;;  %854 = vperm.xlu1 %2589, %v3089_v21   ;;  %v764_v21 = vsub.f32 %v723_v55, %v3151_v41  ;;  %v389_v55 = vmul.f32 %v373_v44, %v373_v44  ;;  %v5103_v44 = vld [vmem:[#allocation10_spill] sm:$0xff] }
 0x10a   :  { %v274_v19 = vmul.f32 %v258_v8, %v258_v8  ;;  %v3574_v56 = vadd.f32 %v387_v25, %v5103_v44  ;;  %v277_v25 = vmul.f32 %v261_v16, %v261_v16 }
 0x10b   :  { %v780_v8 = vmul.f32 %v764_v21, %v764_v21  ;;  %v3588_v21 = vsel %vm917_vm0, %v3560_v13, inf }
 0x10c   :  { %5104 = vst [vmem:[#allocation10_spill] sm:$0xff] %v3574_v56 }
 0x110   :  { %922 = vmin.xlane.f32.xlu0 %v3448_v60  ;;  %v303_v23 = vpop.permute.xlu0 %302 }
 0x111   :  { %v367_v31 = vsub.f32 %v303_v23, %v3398_v3  ;;  %v517_v50 = vsub.f32 %v303_v23, %v3350_v48  ;;  %v603_v38 = vpop.permute.xlu1 %602  ;;  %866 = vperm.xlu1 %2589, %v3096_v22   ;;  %v699_v5 = vpop.permute.xlu2 %698  ;;  %v5099_v22 = vld [vmem:[#allocation15_spill] sm:$0xff] }
 0x112   :  { %v652_v57 = vsub.f32 %v603_v38, %v3138_v36  ;;  %v758_v20 = vsub.f32 %v699_v5, %v3151_v41 }
 0x113   :  { %v383_v18 = vmul.f32 %v367_v31, %v367_v31  ;;  %v533_v53 = vmul.f32 %v517_v50, %v517_v50  ;;  %v147_v31 = vsub.f32 %v3109_v26, %v3232_v51  ;;  %v290_v50 = vadd.f32 %v274_v19, %v160_v1 }
 0x114   :  { %v668_v23 = vmul.f32 %v652_v57, %v652_v57  ;;  %v774_v38 = vmul.f32 %v758_v20, %v758_v20  ;;  %v767_v26 = vsub.f32 %v735_v62, %v3242_v61  ;;  %v649_v19 = vsub.f32 %v588_v58, %v3138_v36 }
 0x115   :  { %v3568_v2 = vadd.f32 %v533_v53, %v5099_v22  ;;  %v3571_v49 = vadd.f32 %v383_v18, %v5101_v30  ;;  %v5105_v30 = vld [vmem:[#allocation12_spill] sm:$0xff]  ;;  %v390_v18 = vmul.f32 %v374_v32, %v374_v32 }
 0x116   :  { %v3578_v46 = vadd.f32 %v780_v8, %v668_v23  ;;  %v3580_v5 = vadd.f32 %v774_v38, %v662_v33  ;;  %v3591_v57 = vadd.f32 %v389_v55, %v5105_v30  ;;  %v3601_v23 = vsel %vm917_vm0, %v3574_v56, inf }
 0x117   :  { %5100 = vst [vmem:[#allocation15_spill] sm:$0xff] %v3568_v2  ;;  %v3584_v7 = vsel %vm917_vm0, %v3571_v49, inf  ;;  %v377_v55 = vsub.f32 %v3390_v14, %v3513_v45  ;;  %v3608_v22 = vadd.f32 %v390_v18, %v3431_v47  ;;  %v379_v30 = vsub.f32 %v3501_v52, %v3513_v45  ;;  %v5119_v2 = vld [vmem:[#allocation16_spill] sm:$0xff] }
 0x118   :  { %5102 = vst [vmem:[#allocation14_spill] sm:$0xff] %v3571_v49  ;;  %v323_v1 = vpop.permute.xlu0 %322  ;;  %v1001_v33 = vmin.f32 %v3584_v7, %v3588_v21  ;;  %v3613_v44 = vsel %vm917_vm0, %v3591_v57, inf  ;;  %v783_v14 = vmul.f32 %v767_v26, %v767_v26  ;;  %v665_v9 = vmul.f32 %v649_v19, %v649_v19 }
 0x119   :  { %5106 = vst [vmem:[#allocation12_spill] sm:$0xff] %v3591_v57  ;;  %v372_v53 = vsub.f32 %v323_v1, %v3398_v3  ;;  %v522_v20 = vsub.f32 %v323_v1, %v3350_v48  ;;  %v618_v8 = vpop.permute.xlu1 %617  ;;  %v711_v16 = vpop.permute.xlu2 %710  ;;  %v651_v52 = vsub.f32 %v5112_v24, %v3138_v36 }
 0x11a   :  { %v655_v62 = vsub.f32 %v618_v8, %v3232_v51  ;;  %v1003_v32 = vmin.f32 %v1001_v33, %v3601_v23  ;;  %5107 = vst [vmem:[#allocation40_spill] sm:$0xff] %v3608_v22  ;;  %v761_v48 = vsub.f32 %v711_v16, %v3151_v41  ;;  %v5108_v33 = vld [vmem:[#allocation18_spill] sm:$0xff]  ;;  %v5111_v16 = vld [vmem:[#allocation8_spill] sm:$0xff] }
 0x11b   :  { %v388_v58 = vmul.f32 %v372_v53, %v372_v53  ;;  %v538_v38 = vmul.f32 %v522_v20, %v522_v20  ;;  %v163_v53 = vmul.f32 %v147_v31, %v147_v31  ;;  %v150_v34 = vsub.f32 %v5111_v16, %v3232_v51 }
 0x11c   :  { %v671_v1 = vmul.f32 %v655_v62, %v655_v62  ;;  %v1005_v8 = vmin.f32 %v1003_v32, %v3613_v44  ;;  %v777_v47 = vmul.f32 %v761_v48, %v761_v48  ;;  %v393_v32 = vmul.f32 %v377_v55, %v377_v55 }
 0x11d   :  { %v3619_v54 = vadd.f32 %v538_v38, %v5108_v33  ;;  %v3621_v18 = vadd.f32 %v388_v58, %v290_v50  ;;  %v293_v62 = vadd.f32 %v277_v25, %v163_v53  ;;  %v770_v50 = vsub.f32 %v3535_v29, %v3242_v61  ;;  %v5114_v25 = vld [vmem:[#allocation22_spill] sm:$0xff] }
 0x11e   :  { %v3623_v20 = vadd.f32 %v783_v14, %v671_v1  ;;  %v3629_v26 = vadd.f32 %v777_v47, %v665_v9  ;;  %v5113_v58 = vmin.f32 %v3448_v60, %v3452_v0  ;;  %v395_v48 = vmul.f32 %v379_v30, %v379_v30 }
 0x11f   :  { %5109 = vst [vmem:[#allocation18_spill] sm:$0xff] %v3619_v54  ;;  %v933_v19 = vsel %vm917_vm0, %v3621_v18, inf  ;;  %v3642_v1 = vsel %vm917_vm0, %v3608_v22, inf  ;;  %v264_v55 = vsub.f32 %v5114_v25, %v3242_v61  ;;  %v376_v29 = vsub.f32 %v3485_v59, %v3513_v45  ;;  %v5116_v25 = vld [vmem:[#allocation20_spill] sm:$0xff] }
 0x120   :  { %5110 = vst [vmem:[#allocation41_spill] sm:$0xff] %v3621_v18  ;;  %934 = vmin.xlane.f32.xlu0 %v933_v19  ;;  %v335_v31 = vpop.permute.xlu0 %334  ;;  %v1004_v38 = vmin.f32 %v5113_v58, %v933_v19  ;;  %v3652_v19 = vadd.f32 %v393_v32, %v3468_v17  ;;  %v786_v58 = vmul.f32 %v770_v50, %v770_v50 }
 0x121   :  { %v375_v14 = vsub.f32 %v335_v31, %v3513_v45  ;;  %v525_v9 = vsub.f32 %v335_v31, %v3429_v42  ;;  %v633_v24 = vpop.permute.xlu1 %632  ;;  %v719_v60 = vpop.permute.xlu2 %718  ;;  %v667_v31 = vmul.f32 %v651_v52, %v651_v52  ;;  %v392_v17 = vmul.f32 %v376_v29, %v376_v29 }
 0x122   :  { %v658_v33 = vsub.f32 %v633_v24, %v3232_v51  ;;  %v1006_v30 = vmin.f32 %v1004_v38, %v3642_v1  ;;  %v763_v16 = vsub.f32 %v719_v60, %v3151_v41  ;;  %5115 = vst [vmem:[#allocation8_spill] sm:$0xff] %v3652_v19  ;;  %v3662_v38 = vadd.f32 %v395_v48, %v5119_v2  ;;  %v5121_v2 = vld [vmem:[#allocation19_spill] sm:$0xff] }
 0x123   :  { %v391_v47 = vmul.f32 %v375_v14, %v375_v14  ;;  %v541_v53 = vmul.f32 %v525_v9, %v525_v9  ;;  %v280_v14 = vmul.f32 %v264_v55, %v264_v55  ;;  %v380_v9 = vsub.f32 %v3415_v10, %v3513_v45 }
 0x124   :  { %v674_v54 = vmul.f32 %v658_v33, %v658_v33  ;;  %v3654_v27 = vmin.f32 %v1005_v8, %v1006_v30  ;;  %v779_v59 = vmul.f32 %v763_v16, %v763_v16  ;;  %5120 = vst [vmem:[#allocation20_spill] sm:$0xff] %v3662_v38  ;;  %v3674_v50 = vsel %vm917_vm0, %v3652_v19, inf  ;;  %v5122_v16 = vld [vmem:[#allocation13_spill] sm:$0xff] }
 0x125   :  { %v3657_v43 = vadd.f32 %v541_v53, %v5116_v25  ;;  %v3659_v24 = vadd.f32 %v391_v47, %v293_v62  ;;  %v166_v62 = vmul.f32 %v150_v34, %v150_v34  ;;  %v654_v48 = vsub.f32 %v5121_v2, %v3232_v51 }
 0x126   :  { %v3666_v32 = vadd.f32 %v786_v58, %v674_v54  ;;  %v3668_v52 = vadd.f32 %v779_v59, %v667_v31  ;;  %v645_v55 = vsub.f32 %v3466_v37, %v3138_v36  ;;  %v3685_v60 = vsel %vm917_vm0, %v3662_v38, inf }
 0x127   :  { %5117 = vst [vmem:[#allocation17_spill] sm:$0xff] %v3657_v43  ;;  %v942_v8 = vsel %vm917_vm0, %v3659_v24, inf  ;;  %v296_v30 = vadd.f32 %v280_v14, %v166_v62  ;;  %v396_v34 = vmul.f32 %v380_v9, %v380_v9  ;;  %v3688_v31 = vadd.f32 %v392_v17, %v5122_v16  ;;  %v5125_v14 = vld [vmem:[#allocation23_spill] sm:$0xff] }
 0x128   :  { %5118 = vst [vmem:[#allocation22_spill] sm:$0xff] %v3659_v24  ;;  %943 = vmin.xlane.f32.xlu0 %v942_v8  ;;  %v347_v10 = vpop.permute.xlu0 %346  ;;  %v1014_v54 = vmin.f32 %v942_v8, %v3674_v50  ;;  %v670_v2 = vmul.f32 %v654_v48, %v654_v48 }
 0x129   :  { %v378_v29 = vsub.f32 %v347_v10, %v3513_v45  ;;  %v528_v33 = vsub.f32 %v347_v10, %v3429_v42  ;;  %v731_v47 = vpop.permute.xlu2 %730  ;;  %5123 = vst [vmem:[#allocation16_spill] sm:$0xff] %v3688_v31  ;;  %v661_v10 = vmul.f32 %v645_v55, %v645_v55  ;;  %v3694_v43 = vadd.f32 %v396_v34, %v3494_v28  ;;  %v5128_v28 = vld [vmem:[#allocation21_spill] sm:$0xff] }
 0x12a   :  { %v695_v53 = vpop.permute.xlu1 %694  ;;  %v1016_v37 = vmin.f32 %v1014_v54, %v3685_v60  ;;  %v766_v59 = vsub.f32 %v731_v47, %v3242_v61  ;;  %v3707_v48 = vsel %vm917_vm0, %v3688_v31, inf  ;;  %v657_v55 = vsub.f32 %v5128_v28, %v3232_v51  ;;  %v5129_v28 = vld [vmem:[#allocation27_spill] sm:$0xff] }
 0x12b   :  { %v394_v58 = vmul.f32 %v378_v29, %v378_v29  ;;  %v544_v25 = vmul.f32 %v528_v33, %v528_v33  ;;  %v757_v8 = vsub.f32 %v695_v53, %v3151_v41  ;;  %5124 = vst [vmem:[#allocation19_spill] sm:$0xff] %v3694_v43  ;;  %v648_v33 = vsub.f32 %v3491_v15, %v3138_v36 }
 0x12c   :  { %v782_v62 = vmul.f32 %v766_v59, %v766_v59  ;;  %v3718_v53 = vsel %vm917_vm0, %v3694_v43, inf  ;;  %v3724_v15 = vsel %vm917_vm0, %v3525_v6, inf }
 0x12d   :  { %v3697_v9 = vadd.f32 %v544_v25, %v5125_v14  ;;  %v773_v57 = vmul.f32 %v757_v8, %v757_v8  ;;  %v3699_v17 = vadd.f32 %v394_v58, %v296_v30  ;;  %v673_v14 = vmul.f32 %v657_v55, %v657_v55 }
 0x12e   :  { %v3701_v16 = vadd.f32 %v782_v62, %v670_v2  ;;  %v664_v62 = vmul.f32 %v648_v33, %v648_v33  ;;  %v5133_v33 = vld [vmem:[#allocation25_spill] sm:$0xff] }
 0x12f   :  { %5126 = vst [vmem:[#allocation13_spill] sm:$0xff] %v3697_v9  ;;  %v789_v54 = vadd.f32 %v773_v57, %v661_v10  ;;  %v951_v29 = vsel %vm917_vm0, %v3699_v17, inf }
 0x130   :  { %5127 = vst [vmem:[#allocation23_spill] sm:$0xff] %v3699_v17  ;;  %952 = vmin.xlane.f32.xlu0 %v951_v29  ;;  %v359_v34 = vpop.permute.xlu0 %358  ;;  %v1015_v30 = vmin.f32 %v3707_v48, %v951_v29 }
 0x131   :  { %v381_v47 = vsub.f32 %v359_v34, %v3513_v45  ;;  %v531_v57 = vsub.f32 %v359_v34, %v3429_v42  ;;  %v743_v58 = vpop.permute.xlu2 %742  ;;  %919 = vmin.xlane.f32.xlu2 %v3584_v7 }
 0x132   :  { %v707_v25 = vpop.permute.xlu1 %706  ;;  %v1017_v59 = vmin.f32 %v1015_v30, %v3718_v53  ;;  %v769_v10 = vsub.f32 %v743_v58, %v3242_v61  ;;  %v5131_v30 = vld [vmem:[#allocation26_spill] sm:$0xff]  ;;  %v660_v58 = vsub.f32 %v5133_v33, %v3232_v51 }
 0x133   :  { %v397_v8 = vmul.f32 %v381_v47, %v381_v47  ;;  %v547_v2 = vmul.f32 %v531_v57, %v531_v57  ;;  %v760_v42 = vsub.f32 %v707_v25, %v3151_v41  ;;  %v1037_v57 = vsel %vm917_vm0, %v3571_v49, -inf }
 0x134   :  { %v1019_v29 = vmin.f32 %v1017_v59, %v3724_v15  ;;  %v785_v7 = vmul.f32 %v769_v10, %v769_v10 }
 0x135   :  { %v3730_v34 = vadd.f32 %v547_v2, %v5129_v28  ;;  %v776_v9 = vmul.f32 %v760_v42, %v760_v42  ;;  %v3733_v38 = vadd.f32 %v397_v8, %v5131_v30  ;;  %v650_v8 = vsub.f32 %v3506_v39, %v3138_v36 }
 0x136   :  { %v3735_v6 = vadd.f32 %v785_v7, %v673_v14  ;;  %v676_v7 = vmul.f32 %v660_v58, %v660_v58 }
 0x137   :  { %5130 = vst [vmem:[#allocation21_spill] sm:$0xff] %v3730_v34  ;;  %v3737_v47 = vadd.f32 %v776_v9, %v664_v62  ;;  %v3743_v55 = vsel %vm917_vm0, %v3733_v38, inf }
 0x138   :  { %5132 = vst [vmem:[#allocation27_spill] sm:$0xff] %v3733_v38  ;;  %1038 = vmax.xlane.f32.xlu0 %v1037_v57  ;;  %v807_v25 = vpop.permute.xlu0 %806  ;;  %v1018_v59 = vmin.f32 %v1016_v37, %v3743_v55  ;;  %v666_v37 = vmul.f32 %v650_v8, %v650_v8 }
 0x139   :  { %v869_v9 = vsub.f32 %v807_v25, %v3398_v3  ;;  %v755_v2 = vpop.permute.xlu2 %754  ;;  %928 = vmin.xlane.f32.xlu2 %v3452_v0  ;;  %v1046_v0 = vsel %vm917_vm0, %v3437_v35, -inf }
 0x13a   :  { %v715_v10 = vpop.permute.xlu1 %714  ;;  %v3752_v42 = vmin.f32 %v1018_v59, %v1019_v29  ;;  %v772_v62 = vsub.f32 %v755_v2, %v3242_v61 }
 0x13b   :  { %v885_v14 = vmul.f32 %v869_v9, %v869_v9  ;;  %v762_v28 = vsub.f32 %v715_v10, %v3151_v41  ;;  %925 = vmin.xlane.f32.xlu1 %v3588_v21  ;;  %v653_v41 = vsub.f32 %v3518_v12, %v3232_v51 }
 0x13c   :  { %v788_v36 = vmul.f32 %v772_v62, %v772_v62  ;;  %v1067_v62 = vsel %vm917_vm0, %v3652_v19, -inf }
 0x13d   :  { %v3757_v30 = vadd.f32 %v885_v14, %v789_v54  ;;  %v778_v39 = vmul.f32 %v762_v28, %v762_v28  ;;  %v669_v2 = vmul.f32 %v653_v41, %v653_v41 }
 0x13e   :  { %v3759_v57 = vadd.f32 %v788_v36, %v676_v7 }
 0x13f   :  { %5134 = vst [vmem:[#allocation26_spill] sm:$0xff] %v3757_v30  ;;  %v794_v33 = vadd.f32 %v778_v39, %v666_v37  ;;  %v656_v37 = vsub.f32 %v3529_v11, %v3232_v51  ;;  %v1049_v11 = vsel %vm917_vm0, %v3574_v56, -inf }
 0x140   :  { %1047 = vmax.xlane.f32.xlu0 %v1046_v0  ;;  %v827_v29 = vpop.permute.xlu0 %826 }
 0x141   :  { %v874_v25 = vsub.f32 %v827_v29, %v3398_v3  ;;  %931 = vmin.xlane.f32.xlu2 %v3601_v23  ;;  %v672_v29 = vmul.f32 %v656_v37, %v656_v37 }
 0x142   :  { %v727_v54 = vpop.permute.xlu1 %726  ;;  %v815_v58 = vpop.permute.xlu2 %814 }
 0x143   :  { %v890_v21 = vmul.f32 %v874_v25, %v874_v25  ;;  %v765_v59 = vsub.f32 %v727_v54, %v3242_v61  ;;  %v871_v8 = vsub.f32 %v815_v58, %v3398_v3  ;;  %937 = vmin.xlane.f32.xlu1 %v3613_v44 }
 0x145   :  { %v3770_v9 = vadd.f32 %v890_v21, %v794_v33  ;;  %v781_v10 = vmul.f32 %v765_v59, %v765_v59  ;;  %v887_v14 = vmul.f32 %v871_v8, %v871_v8  ;;  %v1008_v21 = vrot.slane %v3654_v27, 4 }
 0x147   :  { %5135 = vst [vmem:[#allocation25_spill] sm:$0xff] %v3770_v9  ;;  %v797_v12 = vadd.f32 %v781_v10, %v669_v2  ;;  %v3775_v23 = vadd.f32 %v887_v14, %v3533_v40  ;;  %v1009_v8 = vmin.f32 %v3654_v27, %v1008_v21 }
 0x148   :  { %1068 = vmax.xlane.f32.xlu0 %v1067_v62  ;;  %v839_v28 = vpop.permute.xlu0 %838 }
 0x149   :  { %5136 = vst [vmem:[#allocation42_spill] sm:$0xff] %v3775_v23  ;;  %v877_v7 = vsub.f32 %v839_v28, %v3513_v45  ;;  %940 = vmin.xlane.f32.xlu2 %v3642_v1 }
 0x14a   :  { %v739_v36 = vpop.permute.xlu1 %738  ;;  %v823_v39 = vpop.permute.xlu2 %822 }
 0x14b   :  { %v893_v44 = vmul.f32 %v877_v7, %v877_v7  ;;  %v768_v33 = vsub.f32 %v739_v36, %v3242_v61  ;;  %v873_v0 = vsub.f32 %v823_v39, %v3398_v3  ;;  %946 = vmin.xlane.f32.xlu1 %v3707_v48  ;;  %v659_v48 = vsub.f32 %v3538_v4, %v3232_v51 }
 0x14c   :  { %v1076_v51 = vsel %vm917_vm0, %v3694_v43, -inf  ;;  %v1010_v4 = vrot.slane %v1009_v8, 2  ;;  %v1040_v39 = vsel %vm917_vm0, %v3426_v63, -inf }
 0x14d   :  { %v3784_v40 = vadd.f32 %v893_v44, %v797_v12  ;;  %v784_v25 = vmul.f32 %v768_v33, %v768_v33  ;;  %v889_v41 = vmul.f32 %v873_v0, %v873_v0  ;;  %v675_v28 = vmul.f32 %v659_v48, %v659_v48 }
 0x14e   :  { %v1011_v33 = vmin.f32 %v1009_v8, %v1010_v4  ;;  %v1061_v8 = vsel %vm917_vm0, %v3659_v24, -inf }
 0x14f   :  { %5137 = vst [vmem:[#allocation43_spill] sm:$0xff] %v3784_v40  ;;  %v800_v1 = vadd.f32 %v784_v25, %v672_v29  ;;  %v3790_v54 = vadd.f32 %v889_v41, %v3629_v26 }
 0x150   :  { %1050 = vmax.xlane.f32.xlu0 %v1049_v11  ;;  %v851_v58 = vpop.permute.xlu0 %850  ;;  %v1058_v11 = vsel %vm917_vm0, %v3608_v22, -inf }
 0x151   :  { %5138 = vst [vmem:[#allocation44_spill] sm:$0xff] %v3790_v54  ;;  %v880_v59 = vsub.f32 %v851_v58, %v3513_v45  ;;  %949 = vmin.xlane.f32.xlu2 %v3674_v50 }
 0x152   :  { %v751_v10 = vpop.permute.xlu1 %750  ;;  %v835_v14 = vpop.permute.xlu2 %834 }
 0x153   :  { %v896_v2 = vmul.f32 %v880_v59, %v880_v59  ;;  %v771_v62 = vsub.f32 %v751_v10, %v3242_v61  ;;  %v876_v12 = vsub.f32 %v835_v14, %v3398_v3  ;;  %955 = vmin.xlane.f32.xlu1 %v3685_v60  ;;  %v1043_v59 = vsel %vm917_vm0, %v3560_v13, -inf }
 0x155   :  { %v3800_v26 = vadd.f32 %v896_v2, %v800_v1  ;;  %v787_v7 = vmul.f32 %v771_v62, %v771_v62  ;;  %v892_v37 = vmul.f32 %v876_v12, %v876_v12 }
 0x157   :  { %5139 = vst [vmem:[#allocation45_spill] sm:$0xff] %v3800_v26  ;;  %v803_v50 = vadd.f32 %v787_v7, %v675_v28  ;;  %v3805_v27 = vadd.f32 %v892_v37, %v3578_v46  ;;  %v1064_v37 = vsel %vm917_vm0, %v3688_v31, -inf }
 0x158   :  { %1077 = vmax.xlane.f32.xlu0 %v1076_v51  ;;  %v863_v44 = vpop.permute.xlu0 %862  ;;  %v1070_v51 = vsel %vm917_vm0, %v3699_v17, -inf }
 0x159   :  { %5140 = vst [vmem:[#allocation46_spill] sm:$0xff] %v3805_v27  ;;  %v883_v61 = vsub.f32 %v863_v44, %v3513_v45  ;;  %958 = vmin.xlane.f32.xlu2 %v3718_v53  ;;  %v1012_v53 = vrot.slane %v1011_v33, 1 }
 0x15a   :  { %v847_v36 = vpop.permute.xlu2 %846 }
 0x15b   :  { %v899_v60 = vmul.f32 %v883_v61, %v883_v61  ;;  %v879_v0 = vsub.f32 %v847_v36, %v3513_v45  ;;  %v811_v29 = vpop.permute.xlu1 %810  ;;  %1041 = vmax.xlane.f32.xlu1 %v1040_v39  ;;  %v1013_v2 = vmin.f32 %v1011_v33, %v1012_v53  ;;  %v5150_v53 = vld [vmem:[#allocation12_spill] sm:$0xff] }
 0x15c   :  { %v870_v46 = vsub.f32 %v811_v29, %v3398_v3 }
 0x15d   :  { %v3812_v25 = vadd.f32 %v899_v60, %v803_v50  ;;  %v895_v41 = vmul.f32 %v879_v0, %v879_v0  ;;  %v5148_v0 = vld [vmem:[#allocation20_spill] sm:$0xff] }
 0x15e   :  { %v886_v21 = vmul.f32 %v870_v46, %v870_v46 }
 0x15f   :  { %5141 = vst [vmem:[#allocation47_spill] sm:$0xff] %v3812_v25  ;;  %v3818_v1 = vadd.f32 %v895_v41, %v3623_v20 }
 0x160   :  { %1059 = vmax.xlane.f32.xlu0 %v1058_v11  ;;  %v3821_v58 = vadd.f32 %v886_v21, %v3580_v5  ;;  %v1027_v5 = vsel %vm917_vm0, %v1013_v2, 0.0 }
 0x161   :  { %5142 = vst [vmem:[#allocation48_spill] sm:$0xff] %v3818_v1  ;;  %1044 = vmax.xlane.f32.xlu2 %v1043_v59 }
 0x162   :  { %5143 = vst [vmem:[#allocation49_spill] sm:$0xff] %v3821_v58  ;;  %v859_v48 = vpop.permute.xlu2 %858 }
 0x163   :  { %v882_v10 = vsub.f32 %v859_v48, %v3513_v45  ;;  %v819_v14 = vpop.permute.xlu1 %818  ;;  %1062 = vmax.xlane.f32.xlu1 %v1061_v8 }
 0x164   :  { %v872_v20 = vsub.f32 %v819_v14, %v3398_v3  ;;  %v5152_v14 = vld [vmem:[#allocation38_spill] sm:$0xff] }
 0x165   :  { %v898_v62 = vmul.f32 %v882_v10, %v882_v10 }
 0x166   :  { %v888_v12 = vmul.f32 %v872_v20, %v872_v20 }
 0x167   :  { %v3831_v28 = vadd.f32 %v898_v62, %v3666_v32  ;;  %v1052_v32 = vsel %vm917_vm0, %v3621_v18, -inf }
 0x168   :  { %1028 = vadd.xlane.f32.xlu0 %v1027_v5  ;;  %v3834_v7 = vadd.f32 %v888_v12, %v3737_v47  ;;  %v1021_v47 = vrot.slane %v3752_v42, 4 }
 0x169   :  { %5144 = vst [vmem:[#allocation50_spill] sm:$0xff] %v3831_v28  ;;  %1065 = vmax.xlane.f32.xlu2 %v1064_v37 }
 0x16a   :  { %5145 = vst [vmem:[#allocation51_spill] sm:$0xff] %v3834_v7  ;;  %v1022_v33 = vmin.f32 %v3752_v42, %v1021_v47  ;;  %v1055_v42 = vsel %vm917_vm0, %v5150_v53, -inf }
 0x16b   :  { %v831_v4 = vpop.permute.xlu1 %830  ;;  %1071 = vmax.xlane.f32.xlu1 %v1070_v51 }
 0x16c   :  { %v875_v50 = vsub.f32 %v831_v4, %v3398_v3 }
 0x16e   :  { %v891_v44 = vmul.f32 %v875_v50, %v875_v50 }
 0x170   :  { %v3842_v61 = vadd.f32 %v891_v44, %v3668_v52  ;;  %v1073_v52 = vsel %vm917_vm0, %v5148_v0, -inf }
 0x171   :  { %961 = vmin.xlane.f32.xlu2 %v3743_v55  ;;  %v1023_v55 = vrot.slane %v1022_v33, 2 }
 0x172   :  { %5146 = vst [vmem:[#allocation52_spill] sm:$0xff] %v3842_v61 }
 0x173   :  { %v843_v60 = vpop.permute.xlu1 %842  ;;  %1053 = vmax.xlane.f32.xlu1 %v1052_v32  ;;  %v1024_v21 = vmin.f32 %v1022_v33, %v1023_v55 }
 0x174   :  { %v878_v36 = vsub.f32 %v843_v60, %v3513_v45 }
 0x175   :  { %v1025_v59 = vrot.slane %v1024_v21, 1 }
 0x176   :  { %v894_v39 = vmul.f32 %v878_v36, %v878_v36 }
 0x177   :  { %v1026_v2 = vmin.f32 %v1024_v21, %v1025_v59 }
 0x178   :  { %v3851_v3 = vadd.f32 %v894_v39, %v3701_v16  ;;  %v1079_v16 = vsel %vm917_vm0, %v3733_v38, -inf }
 0x179   :  { %1074 = vmax.xlane.f32.xlu2 %v1073_v52  ;;  %v1030_v62 = vsel %vm917_vm0, %v1026_v2, 0.0 }
 0x17a   :  { %5147 = vst [vmem:[#allocation53_spill] sm:$0xff] %v3851_v3 }
 0x17b   :  { %v855_v29 = vpop.permute.xlu1 %854  ;;  %964 = vmin.xlane.f32.xlu1 %v3724_v15 }
 0x17c   :  { %v881_v46 = vsub.f32 %v855_v29, %v3513_v45 }
 0x17e   :  { %v897_v41 = vmul.f32 %v881_v46, %v881_v46 }
 0x180   :  { %v3858_v11 = vadd.f32 %v897_v41, %v3735_v6  ;;  %v1082_v6 = vsel %vm917_vm0, %v5152_v14, -inf  ;;  %v2952_v41 = vmov 64.0  }
 0x181   :  { %1056 = vmax.xlane.f32.xlu2 %v1055_v42  ;;  %2591 = vrcp.f32 %v2952_v41 }
 0x182   :  { %5149 = vst [vmem:[#allocation54_spill] sm:$0xff] %v3858_v11 }
 0x183   :  { %v867_v48 = vpop.permute.xlu1 %866  ;;  %1080 = vmax.xlane.f32.xlu1 %v1079_v16  ;;  %v923_v20 = vpop.xlane.xlu0 %922 }
 0x184   :  { %v884_v8 = vsub.f32 %v867_v48, %v3513_v45 }
 0x186   :  { %v900_v15 = vmul.f32 %v884_v8, %v884_v8 }
 0x187   :  { %v2592_v16 = vpop.eup %2591 }
 0x188   :  { %v3866_v10 = vadd.f32 %v900_v15, %v3759_v57  ;;  %v993_v8 = vmul.f32 64.0, %v2592_v16  ;;  %vm997_vm1 = vweird.f32 %v2592_v16 }
 0x189   :  { %1083 = vmax.xlane.f32.xlu2 %v1082_v6 }
 0x18a   :  { %5151 = vst [vmem:[#allocation55_spill] sm:$0xff] %v3866_v10  ;;  %v994_v6 = vsub.f32 1.0, %v993_v8 }
 0x18b   :  { %1031 = vadd.xlane.f32.xlu1 %v1030_v62 }
 0x193   :  { %v935_v12 = vpop.xlane.xlu0 %934 }
 0x19b   :  { %v944_v5 = vpop.xlane.xlu0 %943 }
 0x1a3   :  { %v953_v37 = vpop.xlane.xlu0 %952 }
 0x1a4   :  { %v920_v51 = vpop.xlane.xlu2 %919 }
 0x1a5   :  { %v966_v50 = vadd.f32 %v923_v20, %v920_v51 }
 0x1ab   :  { %v3871_v4 = vpop.xlane.xlu0 %1038 }
 0x1ac   :  { %v929_v45 = vpop.xlane.xlu2 %928 }
 0x1ae   :  { %v926_v44 = vpop.xlane.xlu1 %925 }
 0x1af   :  { %v967_v32 = vadd.f32 %v966_v50, %v926_v44 }
 0x1b1   :  { %v968_v57 = vadd.f32 %v967_v32, %v929_v45 }
 0x1b3   :  { %v1048_v47 = vpop.xlane.xlu0 %1047 }
 0x1b4   :  { %v932_v60 = vpop.xlane.xlu2 %931 }
 0x1b5   :  { %v969_v36 = vadd.f32 %v968_v57, %v932_v60 }
 0x1b6   :  { %v938_v39 = vpop.xlane.xlu1 %937 }
 0x1b7   :  { %v970_v33 = vadd.f32 %v969_v36, %v935_v12  ;;  %v995_v12 = vmul.f32 %v2592_v16, %v994_v6 }
 0x1b9   :  { %v971_v52 = vadd.f32 %v970_v33, %v938_v39  ;;  %v996_v44 = vadd.f32 %v2592_v16, %v995_v12 }
 0x1bb   :  { %v3873_v0 = vpop.xlane.xlu0 %1068  ;;  %v3875_v60 = vsel %vm997_vm1, %v2592_v16, %v996_v44 }
 0x1bc   :  { %v941_v55 = vpop.xlane.xlu2 %940  ;;  %5153 = vst [vmem:[#allocation56_spill] sm:$0xff] %v3875_v60 }
 0x1bd   :  { %v972_v29 = vadd.f32 %v971_v52, %v941_v55 }
 0x1be   :  { %v947_v46 = vpop.xlane.xlu1 %946 }
 0x1bf   :  { %v973_v53 = vrot.slane %v972_v29, 4  ;;  %v979_v41 = vadd.f32 %v947_v46, %v944_v5 }
 0x1c1   :  { %v974_v48 = vadd.f32 %v973_v53, %v972_v29 }
 0x1c3   :  { %v1051_v21 = vpop.xlane.xlu0 %1050  ;;  %v975_v2 = vrot.slane %v974_v48, 2 }
 0x1c4   :  { %v950_v42 = vpop.xlane.xlu2 %949 }
 0x1c5   :  { %v976_v62 = vadd.f32 %v975_v2, %v974_v48  ;;  %v980_v53 = vadd.f32 %v979_v41, %v950_v42 }
 0x1c6   :  { %v956_v59 = vpop.xlane.xlu1 %955 }
 0x1c7   :  { %v977_v45 = vrot.slane %v976_v62, 1  ;;  %v981_v8 = vadd.f32 %v980_v53, %v953_v37 }
 0x1c9   :  { %v978_v57 = vadd.f32 %v977_v45, %v976_v62  ;;  %v982_v6 = vadd.f32 %v981_v8, %v956_v59 }
 0x1cb   :  { %v1078_v15 = vpop.xlane.xlu0 %1077  ;;  %v999_v39 = vmul.f32 %v3875_v60, %v978_v57 }
 0x1cc   :  { %v959_v14 = vpop.xlane.xlu2 %958 }
 0x1cd   :  { %v983_v12 = vadd.f32 %v982_v6, %v959_v14 }
 0x1ce   :  { %v1042_v20 = vpop.xlane.xlu1 %1041 }
 0x1cf   :  { %v1086_v45 = vmax.f32 %v1042_v20, %v1048_v47 }
 0x1d3   :  { %v1060_v51 = vpop.xlane.xlu0 %1059 }
 0x1d4   :  { %v1045_v50 = vpop.xlane.xlu2 %1044 }
 0x1d5   :  { %v1085_v44 = vmax.f32 %v3871_v4, %v1045_v50 }
 0x1d6   :  { %v1063_v32 = vpop.xlane.xlu1 %1062 }
 0x1d7   :  { %v1098_v14 = vmax.f32 %v1063_v32, %v3873_v0 }
 0x1db   :  { %v1029_v36 = vpop.xlane.xlu0 %1028 }
 0x1dc   :  { %v1033_v33 = vmul.f32 %v1029_v36, %v3875_v60  ;;  %v1066_v52 = vpop.xlane.xlu2 %1065 }
 0x1de   :  { %v3879_v55 = vadd.f32 %v1033_v33, %v999_v39  ;;  %v1072_v29 = vpop.xlane.xlu1 %1071  ;;  %v1087_v39 = vmax.f32 %v1085_v44, %v1051_v21 }
 0x1df   :  { %v1099_v37 = vmax.f32 %v1066_v52, %v1072_v29 }
 0x1e0   :  { %5154 = vst [vmem:[#allocation57_spill] sm:$0xff] %v3879_v55 }
 0x1e1   :  { %v1101_v4 = vmax.f32 %v1099_v37, %v1078_v15 }
 0x1e4   :  { %v962_v48 = vpop.xlane.xlu2 %961 }
 0x1e5   :  { %v984_v62 = vadd.f32 %v983_v12, %v962_v48 }
 0x1e6   :  { %v1054_v2 = vpop.xlane.xlu1 %1053 }
 0x1e7   :  { %v1088_v27 = vmax.f32 %v1086_v45, %v1054_v2 }
 0x1e9   :  { %v1090_v55 = vmax.f32 %v1088_v27, %v1060_v51 }
 0x1ec   :  { %v1075_v10 = vpop.xlane.xlu2 %1074 }
 0x1ed   :  { %v1100_v47 = vmax.f32 %v1098_v14, %v1075_v10 }
 0x1ee   :  { %v965_v16 = vpop.xlane.xlu1 %964 }
 0x1ef   :  { %v985_v57 = vadd.f32 %v984_v62, %v965_v16 }
 0x1f1   :  { %v986_v36 = vrot.slane %v985_v57, 4 }
 0x1f3   :  { %v987_v61 = vadd.f32 %v986_v36, %v985_v57  ;;  %v3887_v36 = vmov 0.0  }
 0x1f4   :  { %v1057_v33 = vpop.xlane.xlu2 %1056 }
 0x1f5   :  { %v988_v5 = vrot.slane %v987_v61, 2  ;;  %v1089_v46 = vmax.f32 %v1087_v39, %v1057_v33  ;;  %v3889_v39 = vmov 0.0   ;;  %v3891_v33 = vmov 0.0  }
 0x1f6   :  { %v1081_v42 = vpop.xlane.xlu1 %1080 }
 0x1f7   :  { %v989_v41 = vadd.f32 %v988_v5, %v987_v61  ;;  %v1091_v59 = vmax.f32 %v1089_v46, %v1090_v55  ;;  %v1102_v6 = vmax.f32 %v1100_v47, %v1081_v42  ;;  %v3893_v5 = vmov 0.0  }
 0x1f8   :  { %v3895_v46 = vmov 0.0   ;;  %v3897_v42 = vmov 0.0  }
 0x1f9   :  { %v990_v53 = vrot.slane %v989_v41, 1  ;;  %v1092_v48 = vrot.slane %v1091_v59, 4 }
 0x1fb   :  { %v1093_v20 = vmax.f32 %v1091_v59, %v1092_v48  ;;  %v991_v50 = vadd.f32 %v990_v53, %v989_v41 }
 0x1fc   :  { %v1084_v8 = vpop.xlane.xlu2 %1083 }
 0x1fd   :  { %v1094_v2 = vrot.slane %v1093_v20, 2  ;;  %v1103_v21 = vmax.f32 %v1101_v4, %v1084_v8  ;;  %v1000_v62 = vmul.f32 %v3875_v60, %v991_v50 }
 0x1fe   :  { %v1032_v12 = vpop.xlane.xlu1 %1031 }
 0x1ff   :  { %v1095_v27 = vmax.f32 %v1093_v20, %v1094_v2  ;;  %v1104_v51 = vmax.f32 %v1102_v6, %v1103_v21  ;;  %v1034_v61 = vmul.f32 %v1032_v12, %v3875_v60 }
 0x201   :  { %v1096_v52 = vrot.slane %v1095_v27, 1  ;;  %v1105_v55 = vrot.slane %v1104_v51, 4  ;;  %v3885_v0 = vadd.f32 %v1034_v61, %v1000_v62 }
 0x203   :  { %5155 = vst [vmem:[#allocation58_spill] sm:$0xff] %v3885_v0  ;;  %v1097_v32 = vmax.f32 %v1095_v27, %v1096_v52  ;;  %v1106_v10 = vmax.f32 %v1104_v51, %v1105_v55 }
 0x205   :  { %v1111_v29 = vmax.f32 %v1097_v32, 0.0025   ;;  %v1107_v15 = vrot.slane %v1106_v10, 2 }
 0x207   :  { %v1108_v16 = vmax.f32 %v1106_v10, %v1107_v15 }
 0x209   :  { %v1109_v45 = vrot.slane %v1108_v16, 1 }
 0x20b   :  { %v1110_v44 = vmax.f32 %v1108_v16, %v1109_v45 }
 0x20d   :  { %v1112_v57 = vmax.f32 %v1110_v44, 0.0025  }
 0x20e LB: > { %5156 = vst [vmem:[#allocation59_spill] sm:$0xff] %v2915_v36  ;;  %2593 = vrcp.f32 %v2943_v29  ;;  %v3930_v37 = vmul.f32 0.25, %v2943_v29  ;;  %vm1148_vm2 = vweird.f32 %v2943_v29  ;;  %v1154_v48 = vand.u32 2147483648, %v2943_v29  ;;  %v5165_v56 = vld [vmem:[#allocation10_spill] sm:$0xff]  ;;  %v5167_v13 = vld [vmem:[#allocation39_spill] sm:$0xff]  ;;  %v5169_v18 = vld [vmem:[#allocation41_spill] sm:$0xff]  ;;  %s2947_s1 = sphi %s3903_s1, %s1118_s1   ;;  %v2943_v29 = vphi %v1111_v29, %v5297_v29   ;;  %v2939_v57 = vphi %v1112_v57, %v5295_v57   ;;  %v2935_v42 = vphi %v3897_v42, %v5293_v42   ;;  %v2931_v46 = vphi %v3895_v46, %v5292_v46   ;;  %v2927_v5 = vphi %v3893_v5, %v5291_v5   ;;  %v2923_v33 = vphi %v3891_v33, %v5290_v33   ;;  %v2919_v39 = vphi %v3889_v39, %v5289_v39   ;;  %v2915_v36 = vphi %v3887_v36, %v5288_v36  }
 0x20f   : > { %5157 = vst [vmem:[#allocation60_spill] sm:$0xff] %v2919_v39  ;;  %2595 = vrcp.f32 %v2939_v57  ;;  %v1152_v4 = vand.u32 2147483647, %v2943_v29  ;;  %v3940_v50 = vmul.f32 0.25, %v2939_v57  ;;  %vm1163_vm6 = vweird.f32 %v2939_v57  ;;  %v5168_v49 = vld [vmem:[#allocation14_spill] sm:$0xff]  ;;  %v5171_v35 = vld [vmem:[#allocation32_spill] sm:$0xff] }
 0x210   : > { %5158 = vst [vmem:[#allocation61_spill] sm:$0xff] %v2923_v33  ;;  %v1155_v21 = vor.u32 1.1754944e-38, %v1154_v48  ;;  %v1167_v51 = vand.u32 2147483647, %v2939_v57  ;;  %v1169_v62 = vand.u32 2147483648, %v2939_v57  ;;  %v5173_v63 = vld [vmem:[#allocation30_spill] sm:$0xff] }
 0x211   : > { %5159 = vst [vmem:[#allocation62_spill] sm:$0xff] %v2927_v5  ;;  %vm1153_vm5 = vcmp.eq.f32.partialorder %v1152_v4, 8.507059e+37  ;;  %v5175_v24 = vld [vmem:[#allocation22_spill] sm:$0xff]  ;;  %v5177_v22 = vld [vmem:[#allocation40_spill] sm:$0xff]  ;;  %v5181_v17 = vld [vmem:[#allocation23_spill] sm:$0xff]  ;;  %s1118_s1 = sadd.s32 1, %s2947_s1  }
 0x212   : > { %5160 = vst [vmem:[#allocation63_spill] sm:$0xff] %v2939_v57  ;;  %vm1168_vm9 = vcmp.eq.f32.partialorder %v1167_v51, 8.507059e+37  ;;  %v1170_v16 = vor.u32 1.1754944e-38, %v1169_v62  ;;  %v5183_v19 = vld [vmem:[#allocation8_spill] sm:$0xff]  ;;  %v5187_v38 = vld [vmem:[#allocation27_spill] sm:$0xff]  ;;  %v5200_v28 = vld [vmem:[#allocation34_spill] sm:$0xff] }
 0x213   : > { %5161 = vst [vmem:[#allocation64_spill] sm:$0xff] %v3930_v37  ;;  %v5185_v31 = vld [vmem:[#allocation16_spill] sm:$0xff]  ;;  %v5189_v43 = vld [vmem:[#allocation19_spill] sm:$0xff]  ;;  %v5204_v9 = vld [vmem:[#allocation13_spill] sm:$0xff]  ;;  %p1115_p0 = scmp.ge.s32.totalorder %s1118_s1, 10  }
 0x214   : > { %v2594_v59 = vpop.eup %2593  ;;  %5162 = vst [vmem:[#allocation65_spill] sm:$0xff] %v3940_v50  ;;  %v5207_v34 = vld [vmem:[#allocation21_spill] sm:$0xff]  ;;  %v5220_v30 = vld [vmem:[#allocation26_spill] sm:$0xff]  ;;  %v5223_v40 = vld [vmem:[#allocation43_spill] sm:$0xff]  ;;  %vm2307_vm10 = vcmask (%p1115_p0), 516096   ;;  %s2953_s11 = smov (%p1115_p0), [#allocation2]  }
 0x215   : > { %v2596_v14 = vpop.eup %2595  ;;  %v1144_v53 = vmul.f32 %v2943_v29, %v2594_v59  ;;  %vm1149_vm3 = vweird.f32 %v2594_v59  ;;  %v5221_v58 = vld [vmem:[#allocation49_spill] sm:$0xff]  ;;  %v5222_v23 = vld [vmem:[#allocation42_spill] sm:$0xff]  ;;  %v5225_v1 = vld [vmem:[#allocation48_spill] sm:$0xff]  ;;  %s2336_s12 = sshll.u32 (%p1115_p0), %s2953_s11, 4  ;;  %s2338_s15 = sshll.u32 (%p1115_p0), %s4988_s4, 4  ;;  %s2337_s12 = int_to_ptr.vmem [resolvable:$true] %s2336_s12  ;;  %s2339_s15 = int_to_ptr.hbm [resolvable:$true] %s2338_s15 }
 0x216   : > { %v1159_v47 = vmul.f32 %v2939_v57, %v2596_v14  ;;  %vm1150_vm4 = vmor %vm1148_vm2, %vm1149_vm3  ;;  %vm1164_vm7 = vweird.f32 %v2596_v14  ;;  %v5224_v3 = vld [vmem:[#allocation53_spill] sm:$0xff]  ;;  %v5226_v7 = vld [vmem:[#allocation51_spill] sm:$0xff]  ;;  %s2954_s16 = smov (%p1115_p0), 16   ;;  %s2955_s17 = smov (%p1115_p0), 1  }
 0x217   : > { %v1145_v20 = vsub.f32 1.0, %v1144_v53  ;;  %vm3948_vm8 = vmor %vm1163_vm6, %vm1164_vm7  ;;  %v5230_v26 = vld [vmem:[#allocation45_spill] sm:$0xff]  ;;  %s2956_s4 = smov (%p1115_p0), [#allocation4]   ;;  %s2351_s21 = sshll.u32 (%p1115_p0), %s4989_s5, 4  ;;  %s2352_s21 = int_to_ptr.hbm [resolvable:$true] %s2351_s21 }
 0x218   : > { %v1160_v8 = vsub.f32 1.0, %v1159_v47  ;;  %s2349_s18 = sshll.u32 (%p1115_p0), %s2956_s4, 4  ;;  %s2350_s18 = int_to_ptr.vmem [resolvable:$true] %s2349_s18 }
 0x219   : > { %v1146_v2 = vmul.f32 %v2594_v59, %v1145_v20 }
 0x21a   : > { %v1161_v12 = vmul.f32 %v2596_v14, %v1160_v8 }
 0x21b   : > { %v1147_v27 = vadd.f32 %v2594_v59, %v1146_v2 }
 0x21c   : > { %v1162_v52 = vadd.f32 %v2596_v14, %v1161_v12 }
 0x21d   : > { %v1151_v61 = vsel %vm1150_vm4, %v2594_v59, %v1147_v27 }
 0x21e   : > { %v3946_v55 = vsel %vm1153_vm5, %v1155_v21, %v1151_v61  ;;  %v1166_v53 = vsel %vm3948_vm8, %v2596_v14, %v1162_v52 }
 0x21f   : > { %v3953_v10 = vmul.f32 0.5, %v3946_v55  ;;  %v1225_v15 = vmul.f32 %v2935_v42, %v3946_v55  ;;  %v3991_v8 = vsel %vm1168_vm9, %v1170_v16, %v1166_v53 }
 0x220   : > { %v4006_v62 = vmul.f32 0.5, %v3991_v8  ;;  %v1226_v52 = vmul.f32 %v2931_v46, %v3991_v8 }
 0x221   : > { %v3958_v45 = vmul.f32 %v3953_v10, %v5165_v56  ;;  %v3962_v44 = vmul.f32 %v3953_v10, %v5167_v13  ;;  %v3966_v59 = vmul.f32 %v3953_v10, %v5168_v49  ;;  %v3972_v42 = vmul.f32 %v3953_v10, %v5169_v18 }
 0x222   : > { %v3985_v4 = vmul.f32 %v3953_v10, %v5171_v35  ;;  %v3989_v14 = vmul.f32 %v3953_v10, %v5173_v63  ;;  %v4018_v53 = vmul.f32 %v4006_v62, %v5175_v24  ;;  %v5191_v35 = vld [vmem:[#allocation20_spill] sm:$0xff] }
 0x223   : > { %5166 = vst [vmem:[#allocation66_spill] sm:$0xff] %v3958_v45  ;;  %v3975_v48 = vsub.f32 %v1225_v15, %v3958_v45  ;;  %v3978_v47 = vsub.f32 %v1225_v15, %v3962_v44  ;;  %v3981_v20 = vsub.f32 %v1225_v15, %v3966_v59  ;;  %v4000_v27 = vsub.f32 %v1225_v15, %v3972_v42 }
 0x224   : > { %5170 = vst [vmem:[#allocation67_spill] sm:$0xff] %v3972_v42  ;;  %v4003_v51 = vsub.f32 %v1225_v15, %v3985_v4  ;;  %v4009_v61 = vsub.f32 %v1225_v15, %v3989_v14  ;;  %v4031_v41 = vsub.f32 %v1226_v52, %v4018_v53  ;;  %v4082_v49 = vmul.f32 %v4006_v62, %v5191_v35 }
 0x225   : > { %5172 = vst [vmem:[#allocation68_spill] sm:$0xff] %v3985_v4  ;;  %v1255_v2 = vsel %vm917_vm0, %v3975_v48, -inf  ;;  %v1249_v21 = vsel %vm917_vm0, %v3978_v47, -inf  ;;  %v1243_v12 = vsel %vm917_vm0, %v3981_v20, -inf  ;;  %v1258_v32 = vsel %vm917_vm0, %v4000_v27, -inf }
 0x226   : > { %5174 = vst [vmem:[#allocation69_spill] sm:$0xff] %v3989_v14  ;;  %1256 = vmax.xlane.f32.xlu2 %v1255_v2  ;;  %1250 = vmax.xlane.f32.xlu1 %v1249_v21  ;;  %v1252_v16 = vsel %vm917_vm0, %v4003_v51, -inf  ;;  %v4022_v2 = vmul.f32 %v3953_v10, %v5177_v22  ;;  %v1246_v21 = vsel %vm917_vm0, %v4009_v61, -inf  ;;  %v1267_v18 = vsel %vm917_vm0, %v4031_v41, -inf }
 0x227   : > { %1244 = vmax.xlane.f32.xlu0 %v1243_v12  ;;  %5176 = vst [vmem:[#allocation70_spill] sm:$0xff] %v4018_v53  ;;  %v5179_v12 = vld [vmem:[#allocation12_spill] sm:$0xff]  ;;  %v4093_v63 = vsub.f32 %v1226_v52, %v4082_v49 }
 0x228   : > { %5178 = vst [vmem:[#allocation71_spill] sm:$0xff] %v4022_v2  ;;  %v4028_v46 = vmul.f32 %v3953_v10, %v5179_v12  ;;  %v4034_v6 = vsub.f32 %v1225_v15, %v4022_v2 }
 0x229   : > { %5192 = vst [vmem:[#allocation78_spill] sm:$0xff] %v4082_v49  ;;  %v1279_v50 = vsel %vm917_vm0, %v4093_v63, -inf }
 0x22a   : > { %5180 = vst [vmem:[#allocation72_spill] sm:$0xff] %v4028_v46  ;;  %v4037_v13 = vsub.f32 %v1225_v15, %v4028_v46  ;;  %v1264_v22 = vsel %vm917_vm0, %v4034_v6, -inf  ;;  %v4055_v15 = vmul.f32 %v4006_v62, %v5185_v31  ;;  %v5206_v46 = vld [vmem:[#allocation37_spill] sm:$0xff] }
 0x22c   : > { %5186 = vst [vmem:[#allocation75_spill] sm:$0xff] %v4055_v15  ;;  %v4064_v24 = vsub.f32 %v1226_v52, %v4055_v15 }
 0x22e   : > { %1259 = vmax.xlane.f32.xlu2 %v1258_v32  ;;  %1253 = vmax.xlane.f32.xlu1 %v1252_v16  ;;  %v4045_v32 = vmul.f32 %v4006_v62, %v5181_v17  ;;  %v4049_v16 = vmul.f32 %v4006_v62, %v5183_v19  ;;  %v4068_v19 = vmul.f32 %v4006_v62, %v5187_v38 }
 0x22f   : > { %1247 = vmax.xlane.f32.xlu0 %v1246_v21  ;;  %v1261_v21 = vsel %vm917_vm0, %v4037_v13, -inf }
 0x230   : > { %5182 = vst [vmem:[#allocation73_spill] sm:$0xff] %v4045_v32  ;;  %v4058_v12 = vsub.f32 %v1226_v52, %v4045_v32  ;;  %v4061_v17 = vsub.f32 %v1226_v52, %v4049_v16  ;;  %v4085_v38 = vsub.f32 %v1226_v52, %v4068_v19 }
 0x231   : > { %5184 = vst [vmem:[#allocation74_spill] sm:$0xff] %v4049_v16  ;;  %v5198_v16 = vld [vmem:[#allocation18_spill] sm:$0xff] }
 0x232   : > { %5188 = vst [vmem:[#allocation76_spill] sm:$0xff] %v4068_v19  ;;  %v1276_v31 = vsel %vm917_vm0, %v4058_v12, -inf  ;;  %v1285_v60 = vsel %vm917_vm0, %v4085_v38, -inf }
 0x236   : > { %1268 = vmax.xlane.f32.xlu2 %v1267_v18  ;;  %1265 = vmax.xlane.f32.xlu1 %v1264_v22  ;;  %v1273_v22 = vsel %vm917_vm0, %v4061_v17, -inf  ;;  %v4076_v18 = vmul.f32 %v4006_v62, %v5189_v43  ;;  %v1641_v43 = vmul.f32 %v2927_v5, %v3946_v55  ;;  %v5195_v5 = vld [vmem:[#allocation38_spill] sm:$0xff] }
 0x237   : > { %1262 = vmax.xlane.f32.xlu0 %v1261_v21  ;;  %v1270_v21 = vsel %vm917_vm0, %v4064_v24, -inf }
 0x238   : > { %5190 = vst [vmem:[#allocation77_spill] sm:$0xff] %v4076_v18  ;;  %v4088_v56 = vsub.f32 %v1226_v52, %v4076_v18  ;;  %v1643_v0 = vperm.slane %v1641_v43, 0  ;;  %v4107_v18 = vmul.f32 %v4006_v62, %v5195_v5  ;;  %v5197_v43 = vld [vmem:[#allocation31_spill] sm:$0xff] }
 0x23a   : > { %v1282_v35 = vsel %vm917_vm0, %v4088_v56, -inf  ;;  %5196 = vst [vmem:[#allocation79_spill] sm:$0xff] %v4107_v18 }
 0x23e   : > { %1277 = vmax.xlane.f32.xlu2 %v1276_v31  ;;  %1274 = vmax.xlane.f32.xlu1 %v1273_v22  ;;  %v5193_v31 = vld [vmem:[#allocation15_spill] sm:$0xff] }
 0x23f   : > { %1271 = vmax.xlane.f32.xlu0 %v1270_v21  ;;  %v1191_v22 = vmul.f32 %v3953_v10, %v5193_v31  ;;  %v5194_v21 = vld [vmem:[#allocation29_spill] sm:$0xff]  ;;  %v4114_v31 = vsub.f32 %v1226_v52, %v4107_v18 }
 0x240   : > { %v1193_v37 = vmul.f32 %v3953_v10, %v5194_v21  ;;  %v1194_v21 = vmul.f32 %v3953_v10, %v5197_v43  ;;  %v1642_v43 = vmul.f32 %v2923_v33, %v3991_v8 }
 0x241   : > { %v4109_v25 = vsub.f32 %v1643_v0, %v1191_v22 }
 0x242   : > { %v4111_v49 = vsub.f32 %v1643_v0, %v1193_v37  ;;  %v5199_v37 = vld [vmem:[#allocation28_spill] sm:$0xff]  ;;  %v4128_v52 = vsub.f32 %v1643_v0, %v1194_v21  ;;  %v5201_v21 = vld [vmem:[#allocation17_spill] sm:$0xff] }
 0x243   : > { %v1661_v19 = vsel %vm917_vm0, %v4109_v25, -inf }
 0x244   : > { %v1667_v5 = vsel %vm917_vm0, %v4111_v49, -inf }
 0x246   : > { %1286 = vmax.xlane.f32.xlu2 %v1285_v60  ;;  %1283 = vmax.xlane.f32.xlu1 %v1282_v35  ;;  %v1196_v60 = vmul.f32 %v3953_v10, %v5198_v16  ;;  %v1192_v35 = vmul.f32 %v3953_v10, %v5199_v37  ;;  %v1670_v16 = vsel %vm917_vm0, %v4128_v52, -inf  ;;  %v5202_v37 = vld [vmem:[#allocation24_spill] sm:$0xff] }
 0x247   : > { %1280 = vmax.xlane.f32.xlu0 %v1279_v50  ;;  %v1288_v50 = vsel %vm917_vm0, %v4114_v31, -inf }
 0x248   : > { %v4130_v22 = vsub.f32 %v1643_v0, %v1196_v60  ;;  %v4134_v18 = vsub.f32 %v1643_v0, %v1192_v35  ;;  %v1195_v35 = vmul.f32 %v3953_v10, %v5202_v37 }
 0x24a   : > { %v1676_v15 = vsel %vm917_vm0, %v4130_v22, -inf  ;;  %v1664_v60 = vsel %vm917_vm0, %v4134_v18, -inf  ;;  %v4152_v2 = vsub.f32 %v1643_v0, %v1195_v35 }
 0x24e   : > { %1662 = vmax.xlane.f32.xlu2 %v1661_v19  ;;  %1668 = vmax.xlane.f32.xlu1 %v1667_v5  ;;  %v1197_v19 = vmul.f32 %v3953_v10, %v5200_v28  ;;  %v1644_v5 = vperm.slane %v1642_v43, 0  ;;  %v5203_v43 = vld [vmem:[#allocation9_spill] sm:$0xff] }
 0x24f   : > { %1289 = vmax.xlane.f32.xlu0 %v1288_v50  ;;  %v1199_v50 = vmul.f32 %v4006_v62, %v5201_v21  ;;  %v1200_v21 = vmul.f32 %v4006_v62, %v5203_v43 }
 0x250   : > { %v4148_v33 = vsub.f32 %v1643_v0, %v1197_v19  ;;  %v5205_v19 = vld [vmem:[#allocation33_spill] sm:$0xff] }
 0x251   : > { %v4150_v53 = vsub.f32 %v1644_v5, %v1199_v50  ;;  %v1198_v50 = vmul.f32 %v3953_v10, %v5205_v19 }
 0x252   : > { %v1679_v28 = vsel %vm917_vm0, %v4148_v33, -inf }
 0x253   : > { %v1685_v32 = vsel %vm917_vm0, %v4150_v53, -inf  ;;  %v4170_v35 = vsub.f32 %v1643_v0, %v1198_v50  ;;  %v5209_v50 = vld [vmem:[#allocation11_spill] sm:$0xff] }
 0x256   : > { %1671 = vmax.xlane.f32.xlu2 %v1670_v16  ;;  %1677 = vmax.xlane.f32.xlu1 %v1676_v15  ;;  %v1202_v16 = vmul.f32 %v4006_v62, %v5204_v9  ;;  %v1673_v15 = vsel %vm917_vm0, %v4152_v2, -inf  ;;  %v1203_v9 = vmul.f32 %v4006_v62, %v5206_v46 }
 0x257   : > { %1665 = vmax.xlane.f32.xlu0 %v1664_v60  ;;  %v4166_v60 = vsub.f32 %v1644_v5, %v1200_v21  ;;  %v5208_v21 = vld [vmem:[#allocation35_spill] sm:$0xff] }
 0x258   : > { %v4168_v37 = vsub.f32 %v1644_v5, %v1202_v16  ;;  %v1201_v16 = vmul.f32 %v4006_v62, %v5208_v21  ;;  %v4184_v0 = vsub.f32 %v1644_v5, %v1203_v9 }
 0x259   : > { %v1688_v43 = vsel %vm917_vm0, %v4166_v60, -inf }
 0x25a   : > { %v1694_v45 = vsel %vm917_vm0, %v4168_v37, -inf  ;;  %v4188_v46 = vsub.f32 %v1644_v5, %v1201_v16  ;;  %v1697_v19 = vsel %vm917_vm0, %v4184_v0, -inf }
 0x25e   : > { %1680 = vmax.xlane.f32.xlu2 %v1679_v28  ;;  %1686 = vmax.xlane.f32.xlu1 %v1685_v32  ;;  %v1205_v28 = vmul.f32 %v4006_v62, %v5207_v34  ;;  %v1682_v32 = vsel %vm917_vm0, %v4170_v35, -inf  ;;  %v1206_v34 = vmul.f32 %v4006_v62, %v5209_v50 }
 0x25f   : > { %1674 = vmax.xlane.f32.xlu0 %v1673_v15 }
 0x260   : > { %v4186_v15 = vsub.f32 %v1644_v5, %v1205_v28  ;;  %v4200_v28 = vsub.f32 %v1644_v5, %v1206_v34 }
 0x262   : > { %v1703_v11 = vsel %vm917_vm0, %v4186_v15, -inf  ;;  %v1706_v21 = vsel %vm917_vm0, %v4200_v28, -inf }
 0x266   : > { %1689 = vmax.xlane.f32.xlu2 %v1688_v43  ;;  %1695 = vmax.xlane.f32.xlu1 %v1694_v45  ;;  %v1691_v43 = vsel %vm917_vm0, %v4188_v46, -inf  ;;  %v5210_v45 = vld [vmem:[#allocation36_spill] sm:$0xff] }
 0x267   : > { %1683 = vmax.xlane.f32.xlu0 %v1682_v32  ;;  %v1204_v9 = vmul.f32 %v4006_v62, %v5210_v45 }
 0x269   : > { %v4202_v32 = vsub.f32 %v1644_v5, %v1204_v9 }
 0x26b   : > { %v1700_v16 = vsel %vm917_vm0, %v4202_v32, -inf }
 0x26e   : > { %1698 = vmax.xlane.f32.xlu2 %v1697_v19  ;;  %1704 = vmax.xlane.f32.xlu1 %v1703_v11 }
 0x26f   : > { %1692 = vmax.xlane.f32.xlu0 %v1691_v43 }
 0x276   : > { %1707 = vmax.xlane.f32.xlu2 %v1706_v21 }
 0x277   : > { %1701 = vmax.xlane.f32.xlu0 %v1700_v16 }
 0x299   : > { %v4208_v50 = vpop.xlane.xlu2 %1256  ;;  %v4210_v57 = vpop.xlane.xlu1 %1250 }
 0x29a   : > { %v1293_v11 = vsub.f32 %v3978_v47, %v4210_v57  ;;  %v4214_v19 = vpop.xlane.xlu0 %1244 }
 0x29b   : > { %v1291_v34 = vsub.f32 %v3981_v20, %v4214_v19 }
 0x29c   : > { %v1311_v5 = vmul.f32 1.442695, %v1293_v11 }
 0x29d   : > { %v1307_v43 = vmul.f32 1.442695, %v1291_v34 }
 0x29e   : > { %2597 = vpow2.f32 %v1311_v5 }
 0x29f   : > { %2599 = vpow2.f32 %v1307_v43  ;;  %v1295_v43 = vsub.f32 %v3975_v48, %v4208_v50 }
 0x2a1   : > { %v4218_v45 = vpop.xlane.xlu2 %1259  ;;  %v4220_v9 = vpop.xlane.xlu1 %1253 }
 0x2a2   : > { %v1296_v21 = vsub.f32 %v4000_v27, %v4218_v45  ;;  %v1294_v16 = vsub.f32 %v4003_v51, %v4220_v9  ;;  %v4226_v47 = vpop.xlane.xlu0 %1247  ;;  %v1315_v51 = vmul.f32 1.442695, %v1295_v43 }
 0x2a3   : > { %v1292_v4 = vsub.f32 %v4009_v61, %v4226_v47 }
 0x2a4   : > { %v2598_v20 = vpop.eup %2597  ;;  %v1317_v11 = vmul.f32 1.442695, %v1296_v21  ;;  %v1313_v34 = vmul.f32 1.442695, %v1294_v16 }
 0x2a5   : > { %v2600_v5 = vpop.eup %2599  ;;  %v1309_v42 = vmul.f32 1.442695, %v1292_v4  ;;  %v1345_v14 = vsel %vm917_vm0, %v2598_v20, 0.0 }
 0x2a6   : > { %1346 = vadd.xlane.f32.xlu0 %v1345_v14  ;;  %v1339_v27 = vsel %vm917_vm0, %v2600_v5, 0.0  ;;  %2601 = vpow2.f32 %v1317_v11 }
 0x2a7   : > { %1340 = vadd.xlane.f32.xlu1 %v1339_v27  ;;  %2603 = vpow2.f32 %v1309_v42 }
 0x2a8   : > { %2605 = vpow2.f32 %v1313_v34 }
 0x2a9   : > { %v4234_v54 = vpop.xlane.xlu2 %1268  ;;  %v4236_v61 = vpop.xlane.xlu1 %1265  ;;  %2607 = vpow2.f32 %v1315_v51 }
 0x2aa   : > { %v4238_v21 = vpop.xlane.xlu0 %1262  ;;  %v1299_v48 = vsub.f32 %v4031_v41, %v4234_v54  ;;  %v1298_v14 = vsub.f32 %v4034_v6, %v4236_v61 }
 0x2ab   : > { %v1297_v4 = vsub.f32 %v4037_v13, %v4238_v21 }
 0x2ac   : > { %v2602_v16 = vpop.eup %2601  ;;  %v1323_v20 = vmul.f32 1.442695, %v1299_v48  ;;  %v1321_v27 = vmul.f32 1.442695, %v1298_v14 }
 0x2ad   : > { %v2604_v42 = vpop.eup %2603  ;;  %v1319_v11 = vmul.f32 1.442695, %v1297_v4  ;;  %v1354_v34 = vsel %vm917_vm0, %v2602_v16, 0.0 }
 0x2ae   : > { %v2606_v5 = vpop.eup %2605  ;;  %1355 = vadd.xlane.f32.xlu0 %v1354_v34  ;;  %v1342_v43 = vsel %vm917_vm0, %v2604_v42, 0.0  ;;  %2609 = vpow2.f32 %v1323_v20 }
 0x2af   : > { %1343 = vadd.xlane.f32.xlu2 %v1342_v43  ;;  %v1348_v41 = vsel %vm917_vm0, %v2606_v5, 0.0  ;;  %2611 = vpow2.f32 %v1319_v11  ;;  %v2608_v4 = vpop.eup %2607 }
 0x2b0   : > { %1349 = vadd.xlane.f32.xlu1 %v1348_v41  ;;  %2613 = vpow2.f32 %v1321_v27  ;;  %v1351_v43 = vsel %vm917_vm0, %v2608_v4, 0.0 }
 0x2b1   : > { %v4249_v13 = vpop.xlane.xlu2 %1277  ;;  %v4251_v6 = vpop.xlane.xlu1 %1274 }
 0x2b2   : > { %v4253_v48 = vpop.xlane.xlu0 %1271  ;;  %v1302_v51 = vsub.f32 %v4058_v12, %v4249_v13  ;;  %v1301_v20 = vsub.f32 %v4061_v17, %v4251_v6 }
 0x2b3   : > { %5211 = vst [vmem:[#allocation80_spill] sm:$0xff] %v4253_v48  ;;  %v1300_v16 = vsub.f32 %v4064_v24, %v4253_v48 }
 0x2b4   : > { %v2610_v14 = vpop.eup %2609  ;;  %v1329_v42 = vmul.f32 1.442695, %v1302_v51  ;;  %v1327_v12 = vmul.f32 1.442695, %v1301_v20 }
 0x2b5   : > { %v2612_v11 = vpop.eup %2611  ;;  %v1325_v34 = vmul.f32 1.442695, %v1300_v16  ;;  %v1363_v5 = vsel %vm917_vm0, %v2610_v14, 0.0 }
 0x2b6   : > { %1364 = vadd.xlane.f32.xlu0 %v1363_v5  ;;  %v1357_v41 = vsel %vm917_vm0, %v2612_v11, 0.0  ;;  %2615 = vpow2.f32 %v1329_v42  ;;  %v2614_v24 = vpop.eup %2613 }
 0x2b7   : > { %1352 = vadd.xlane.f32.xlu2 %v1351_v43  ;;  %2617 = vpow2.f32 %v1325_v34  ;;  %v1360_v42 = vsel %vm917_vm0, %v2614_v24, 0.0 }
 0x2b8   : > { %1358 = vadd.xlane.f32.xlu1 %v1357_v41  ;;  %2619 = vpow2.f32 %v1327_v12 }
 0x2b9   : > { %v4264_v48 = vpop.xlane.xlu2 %1286  ;;  %v4266_v17 = vpop.xlane.xlu1 %1283 }
 0x2ba   : > { %v4268_v27 = vpop.xlane.xlu0 %1280  ;;  %v1305_v51 = vsub.f32 %v4085_v38, %v4264_v48  ;;  %v1304_v16 = vsub.f32 %v4088_v56, %v4266_v17 }
 0x2bb   : > { %v1303_v4 = vsub.f32 %v4093_v63, %v4268_v27 }
 0x2bc   : > { %v2616_v20 = vpop.eup %2615  ;;  %v1335_v14 = vmul.f32 1.442695, %v1305_v51  ;;  %v1333_v38 = vmul.f32 1.442695, %v1304_v16 }
 0x2bd   : > { %v2618_v11 = vpop.eup %2617  ;;  %v1331_v34 = vmul.f32 1.442695, %v1303_v4  ;;  %v1372_v5 = vsel %vm917_vm0, %v2616_v20, 0.0 }
 0x2be   : > { %1373 = vadd.xlane.f32.xlu0 %v1372_v5  ;;  %v1366_v43 = vsel %vm917_vm0, %v2618_v11, 0.0  ;;  %2621 = vpow2.f32 %v1335_v14  ;;  %v2620_v63 = vpop.eup %2619 }
 0x2bf   : > { %1361 = vadd.xlane.f32.xlu2 %v1360_v42  ;;  %2623 = vpow2.f32 %v1331_v34  ;;  %v1369_v14 = vsel %vm917_vm0, %v2620_v63, 0.0 }
 0x2c0   : > { %1367 = vadd.xlane.f32.xlu1 %v1366_v43  ;;  %2625 = vpow2.f32 %v1333_v38 }
 0x2c1   : > { %v4279_v41 = vpop.xlane.xlu2 %1662  ;;  %v4281_v56 = vpop.xlane.xlu1 %1668 }
 0x2c2   : > { %v4283_v12 = vpop.xlane.xlu0 %1289  ;;  %v1709_v24 = vsub.f32 %v4109_v25, %v4279_v41  ;;  %v1711_v4 = vsub.f32 %v4111_v49, %v4281_v56 }
 0x2c3   : > { %v1306_v51 = vsub.f32 %v4114_v31, %v4283_v12 }
 0x2c4   : > { %v2622_v16 = vpop.eup %2621  ;;  %v1725_v20 = vmul.f32 1.442695, %v1709_v24  ;;  %v1729_v25 = vmul.f32 1.442695, %v1711_v4 }
 0x2c5   : > { %v2624_v42 = vpop.eup %2623  ;;  %v1337_v11 = vmul.f32 1.442695, %v1306_v51  ;;  %v1381_v34 = vsel %vm917_vm0, %v2622_v16, 0.0 }
 0x2c6   : > { %1382 = vadd.xlane.f32.xlu0 %v1381_v34  ;;  %v1375_v5 = vsel %vm917_vm0, %v2624_v42, 0.0  ;;  %2627 = vpow2.f32 %v1725_v20  ;;  %v2626_v31 = vpop.eup %2625 }
 0x2c7   : > { %1370 = vadd.xlane.f32.xlu2 %v1369_v14  ;;  %2629 = vpow2.f32 %v1337_v11  ;;  %v1378_v20 = vsel %vm917_vm0, %v2626_v31, 0.0 }
 0x2c8   : > { %1376 = vadd.xlane.f32.xlu1 %v1375_v5  ;;  %2631 = vpow2.f32 %v1729_v25 }
 0x2c9   : > { %v4294_v43 = vpop.xlane.xlu2 %1671  ;;  %v4296_v49 = vpop.xlane.xlu1 %1677 }
 0x2ca   : > { %v4298_v38 = vpop.xlane.xlu0 %1665  ;;  %v1712_v63 = vsub.f32 %v4128_v52, %v4294_v43  ;;  %v1714_v51 = vsub.f32 %v4130_v22, %v4296_v49 }
 0x2cb   : > { %v1710_v24 = vsub.f32 %v4134_v18, %v4298_v38 }
 0x2cc   : > { %v2628_v4 = vpop.eup %2627  ;;  %v1731_v16 = vmul.f32 1.442695, %v1712_v63  ;;  %v1735_v52 = vmul.f32 1.442695, %v1714_v51 }
 0x2cd   : > { %v2630_v14 = vpop.eup %2629  ;;  %v1727_v42 = vmul.f32 1.442695, %v1710_v24  ;;  %v1757_v11 = vsel %vm917_vm0, %v2628_v4, 0.0 }
 0x2ce   : > { %1758 = vadd.xlane.f32.xlu0 %v1757_v11  ;;  %v1384_v34 = vsel %vm917_vm0, %v2630_v14, 0.0  ;;  %2633 = vpow2.f32 %v1731_v16  ;;  %v2632_v18 = vpop.eup %2631 }
 0x2cf   : > { %1379 = vadd.xlane.f32.xlu2 %v1378_v20  ;;  %2635 = vpow2.f32 %v1727_v42  ;;  %v1763_v16 = vsel %vm917_vm0, %v2632_v18, 0.0 }
 0x2d0   : > { %1385 = vadd.xlane.f32.xlu1 %v1384_v34  ;;  %2637 = vpow2.f32 %v1735_v52 }
 0x2d1   : > { %v4309_v5 = vpop.xlane.xlu2 %1680  ;;  %v4311_v22 = vpop.xlane.xlu1 %1686 }
 0x2d2   : > { %5212 = vst [vmem:[#allocation81_spill] sm:$0xff] %v4311_v22  ;;  %v4313_v25 = vpop.xlane.xlu0 %1674  ;;  %v1715_v31 = vsub.f32 %v4148_v33, %v4309_v5  ;;  %v1717_v24 = vsub.f32 %v4150_v53, %v4311_v22  ;;  %v5262_v22 = vld [vmem:[#allocation74_spill] sm:$0xff] }
 0x2d3   : > { %v1713_v63 = vsub.f32 %v4152_v2, %v4313_v25 }
 0x2d4   : > { %v2634_v51 = vpop.eup %2633  ;;  %v1737_v4 = vmul.f32 1.442695, %v1715_v31  ;;  %v1741_v33 = vmul.f32 1.442695, %v1717_v24 }
 0x2d5   : > { %v2636_v20 = vpop.eup %2635  ;;  %v1733_v14 = vmul.f32 1.442695, %v1713_v63  ;;  %v1766_v42 = vsel %vm917_vm0, %v2634_v51, 0.0 }
 0x2d6   : > { %1767 = vadd.xlane.f32.xlu0 %v1766_v42  ;;  %v1760_v11 = vsel %vm917_vm0, %v2636_v20, 0.0  ;;  %2639 = vpow2.f32 %v1737_v4  ;;  %v2638_v2 = vpop.eup %2637 }
 0x2d7   : > { %1764 = vadd.xlane.f32.xlu2 %v1763_v16  ;;  %2641 = vpow2.f32 %v1733_v14  ;;  %v1772_v4 = vsel %vm917_vm0, %v2638_v2, 0.0 }
 0x2d8   : > { %1761 = vadd.xlane.f32.xlu1 %v1760_v11  ;;  %2643 = vpow2.f32 %v1741_v33 }
 0x2d9   : > { %v4324_v34 = vpop.xlane.xlu2 %1689  ;;  %v4326_v53 = vpop.xlane.xlu1 %1695 }
 0x2da   : > { %5213 = vst [vmem:[#allocation82_spill] sm:$0xff] %v4324_v34  ;;  %v4328_v52 = vpop.xlane.xlu0 %1683  ;;  %v1718_v18 = vsub.f32 %v4166_v60, %v4324_v34  ;;  %v1720_v63 = vsub.f32 %v4168_v37, %v4326_v53 }
 0x2db   : > { %5214 = vst [vmem:[#allocation83_spill] sm:$0xff] %v4326_v53  ;;  %v1716_v31 = vsub.f32 %v4170_v35, %v4328_v52 }
 0x2dc   : > { %v2640_v24 = vpop.eup %2639  ;;  %v1743_v51 = vmul.f32 1.442695, %v1718_v18  ;;  %v1747_v60 = vmul.f32 1.442695, %v1720_v63 }
 0x2dd   : > { %v2642_v16 = vpop.eup %2641  ;;  %v1739_v20 = vmul.f32 1.442695, %v1716_v31  ;;  %v1775_v14 = vsel %vm917_vm0, %v2640_v24, 0.0 }
 0x2de   : > { %1776 = vadd.xlane.f32.xlu0 %v1775_v14  ;;  %v1769_v42 = vsel %vm917_vm0, %v2642_v16, 0.0  ;;  %2645 = vpow2.f32 %v1743_v51  ;;  %v2644_v35 = vpop.eup %2643 }
 0x2df   : > { %1773 = vadd.xlane.f32.xlu2 %v1772_v4  ;;  %2647 = vpow2.f32 %v1739_v20  ;;  %v1781_v51 = vsel %vm917_vm0, %v2644_v35, 0.0 }
 0x2e0   : > { %1770 = vadd.xlane.f32.xlu1 %v1769_v42  ;;  %2649 = vpow2.f32 %v1747_v60 }
 0x2e1   : > { %v4339_v11 = vpop.xlane.xlu2 %1698  ;;  %v4341_v37 = vpop.xlane.xlu1 %1704 }
 0x2e2   : > { %5215 = vst [vmem:[#allocation84_spill] sm:$0xff] %v4339_v11  ;;  %v4343_v33 = vpop.xlane.xlu0 %1692  ;;  %v1721_v2 = vsub.f32 %v4184_v0, %v4339_v11  ;;  %v1723_v31 = vsub.f32 %v4186_v15, %v4341_v37  ;;  %v5243_v11 = vld [vmem:[#allocation66_spill] sm:$0xff] }
 0x2e3   : > { %5216 = vst [vmem:[#allocation85_spill] sm:$0xff] %v4341_v37  ;;  %v1719_v18 = vsub.f32 %v4188_v46, %v4343_v33 }
 0x2e4   : > { %5217 = vst [vmem:[#allocation86_spill] sm:$0xff] %v4343_v33  ;;  %v2646_v63 = vpop.eup %2645  ;;  %v1749_v24 = vmul.f32 1.442695, %v1721_v2  ;;  %v1753_v0 = vmul.f32 1.442695, %v1723_v31 }
 0x2e5   : > { %v2648_v4 = vpop.eup %2647  ;;  %v1745_v16 = vmul.f32 1.442695, %v1719_v18  ;;  %v1784_v20 = vsel %vm917_vm0, %v2646_v63, 0.0 }
 0x2e6   : > { %1785 = vadd.xlane.f32.xlu0 %v1784_v20  ;;  %v1778_v14 = vsel %vm917_vm0, %v2648_v4, 0.0  ;;  %2651 = vpow2.f32 %v1749_v24  ;;  %v2650_v46 = vpop.eup %2649 }
 0x2e7   : > { %1782 = vadd.xlane.f32.xlu2 %v1781_v51  ;;  %2653 = vpow2.f32 %v1745_v16  ;;  %v1790_v63 = vsel %vm917_vm0, %v2650_v46, 0.0  ;;  %v1207_v16 = vmul.f32 %v3953_v10, %v5220_v30 }
 0x2e8   : > { %1779 = vadd.xlane.f32.xlu1 %v1778_v14  ;;  %2655 = vpow2.f32 %v1753_v0 }
 0x2e9   : > { %v4354_v42 = vpop.xlane.xlu2 %1707 }
 0x2ea   : > { %5218 = vst [vmem:[#allocation87_spill] sm:$0xff] %v4354_v42  ;;  %v4356_v15 = vpop.xlane.xlu0 %1701  ;;  %v1724_v60 = vsub.f32 %v4200_v28, %v4354_v42  ;;  %v1953_v28 = vmul.f32 %v2919_v39, %v3946_v55  ;;  %v5237_v42 = vld [vmem:[#allocation67_spill] sm:$0xff] }
 0x2eb   : > { %5219 = vst [vmem:[#allocation88_spill] sm:$0xff] %v4356_v15  ;;  %v1722_v35 = vsub.f32 %v4202_v32, %v4356_v15 }
 0x2ec   : > { %v2652_v2 = vpop.eup %2651  ;;  %v1755_v18 = vmul.f32 1.442695, %v1724_v60  ;;  %v4369_v20 = vperm.slane %v1953_v28, 0  ;;  %v1954_v28 = vmul.f32 %v2915_v36, %v3991_v8 }
 0x2ed   : > { %v2654_v24 = vpop.eup %2653  ;;  %v1751_v31 = vmul.f32 1.442695, %v1722_v35  ;;  %v1793_v51 = vsel %vm917_vm0, %v2652_v2, 0.0 }
 0x2ee   : > { %1794 = vadd.xlane.f32.xlu0 %v1793_v51  ;;  %v1787_v4 = vsel %vm917_vm0, %v2654_v24, 0.0  ;;  %2657 = vpow2.f32 %v1755_v18  ;;  %v2656_v32 = vpop.eup %2655  ;;  %v4375_v2 = vsub.f32 %v4369_v20, %v1207_v16  ;;  %v1209_v51 = vmul.f32 %v3953_v10, %v5222_v23 }
 0x2ef   : > { %1791 = vadd.xlane.f32.xlu2 %v1790_v63  ;;  %2659 = vpow2.f32 %v1751_v31  ;;  %v1799_v0 = vsel %vm917_vm0, %v2656_v32, 0.0  ;;  %v1208_v63 = vmul.f32 %v3953_v10, %v5221_v58  ;;  %v1215_v16 = vmul.f32 %v4006_v62, %v5223_v40 }
 0x2f0   : > { %1788 = vadd.xlane.f32.xlu1 %v1787_v4  ;;  %v1973_v18 = vsel %vm917_vm0, %v4375_v2, -inf  ;;  %v4389_v4 = vsub.f32 %v4369_v20, %v1209_v51  ;;  %v1217_v51 = vmul.f32 %v4006_v62, %v5225_v1  ;;  %v4419_v23 = vsub.f32 0.0, %v2943_v29 }
 0x2f1   : > { %v4382_v24 = vsub.f32 %v4369_v20, %v1208_v63 }
 0x2f2   : > { %v1979_v32 = vsel %vm917_vm0, %v4389_v4, -inf }
 0x2f3   : > { %v1976_v31 = vsel %vm917_vm0, %v4382_v24, -inf }
 0x2f4   : > { %v2658_v14 = vpop.eup %2657 }
 0x2f5   : > { %v2660_v46 = vpop.eup %2659  ;;  %v1802_v60 = vsel %vm917_vm0, %v2658_v14, 0.0  ;;  %v4397_v14 = vperm.slane %v1954_v28, 0 }
 0x2f6   : > { %1803 = vadd.xlane.f32.xlu0 %v1802_v60  ;;  %v1796_v35 = vsel %vm917_vm0, %v2660_v46, 0.0  ;;  %v1216_v60 = vmul.f32 %v4006_v62, %v5224_v3 }
 0x2f7   : > { %1800 = vadd.xlane.f32.xlu2 %v1799_v0  ;;  %v4400_v0 = vsub.f32 %v4397_v14, %v1215_v16  ;;  %v4414_v28 = vsub.f32 %v4397_v14, %v1217_v51 }
 0x2f8   : > { %1797 = vadd.xlane.f32.xlu1 %v1796_v35  ;;  %v4407_v35 = vsub.f32 %v4397_v14, %v1216_v60  ;;  %v1210_v60 = vmul.f32 %v3953_v10, %v5226_v7 }
 0x2f9   : > { %v1997_v46 = vsel %vm917_vm0, %v4400_v0, -inf  ;;  %v2003_v51 = vsel %vm917_vm0, %v4414_v28, -inf }
 0x2fa   : > { %v4426_v40 = vsub.f32 %v4369_v20, %v1210_v60 }
 0x2fe   : > { %1974 = vmax.xlane.f32.xlu0 %v1973_v18 }
 0x306   : > { %1977 = vmax.xlane.f32.xlu0 %v1976_v31  ;;  %v2000_v31 = vsel %vm917_vm0, %v4407_v35, -inf }
 0x30e   : > { %1980 = vmax.xlane.f32.xlu0 %v1979_v32 }
 0x316   : > { %1998 = vmax.xlane.f32.xlu0 %v1997_v46 }
 0x319   : > { %v1347_v18 = vpop.xlane.xlu0 %1346 }
 0x31a   : > { %2661 = vlog2.f32 %v1347_v18  ;;  %v1341_v63 = vpop.xlane.xlu1 %1340 }
 0x31b   : > { %2663 = vlog2.f32 %v1341_v63 }
 0x31e   : > { %2001 = vmax.xlane.f32.xlu0 %v2000_v31 }
 0x320   : > { %v2662_v32 = vpop.eup %2661 }
 0x321   : > { %v2664_v16 = vpop.eup %2663  ;;  %v1392_v46 = vmul.f32 0.6931472, %v2662_v32  ;;  %v1356_v3 = vpop.xlane.xlu0 %1355 }
 0x322   : > { %v1388_v18 = vmul.f32 0.6931472, %v2664_v16  ;;  %2665 = vlog2.f32 %v1356_v3  ;;  %v1344_v63 = vpop.xlane.xlu2 %1343 }
 0x323   : > { %v1421_v30 = vadd.f32 %v1392_v46, %v4210_v57  ;;  %2667 = vlog2.f32 %v1344_v63  ;;  %v1350_v31 = vpop.xlane.xlu1 %1349 }
 0x324   : > { %v1419_v1 = vadd.f32 %v1388_v18, %v4214_v19  ;;  %2669 = vlog2.f32 %v1350_v31 }
 0x325   : > { %v2447_v32 = vadd.f32 -4.158883, %v1421_v30  ;;  %v1982_v30 = vsel %vm917_vm0, %v4426_v40, -inf }
 0x326   : > { %v2445_v16 = vadd.f32 -4.158883, %v1419_v1  ;;  %2004 = vmax.xlane.f32.xlu0 %v2003_v51  ;;  %v1218_v51 = vmul.f32 %v4006_v62, %v5230_v26 }
 0x327   : > { %v4429_v3 = vmul.f32 %v2447_v32, %v4419_v23 }
 0x328   : > { %v2666_v29 = vpop.eup %2665  ;;  %v4432_v57 = vmul.f32 %v2445_v16, %v4419_v23 }
 0x329   : > { %5227 = vst [vmem:[#allocation89_spill] sm:$0xff] %v4429_v3  ;;  %v2668_v46 = vpop.eup %2667  ;;  %v1469_v7 = vmul.f32 %v4429_v3, %v3946_v55  ;;  %v1398_v58 = vmul.f32 0.6931472, %v2666_v29  ;;  %v1365_v19 = vpop.xlane.xlu0 %1364 }
 0x32a   : > { %5228 = vst [vmem:[#allocation90_spill] sm:$0xff] %v4432_v57  ;;  %v5229_v63 = vmov %v4432_v57  ;;  %v2670_v60 = vpop.eup %2669  ;;  %v1390_v18 = vmul.f32 0.6931472, %v2668_v46  ;;  %2671 = vlog2.f32 %v1365_v19  ;;  %v1353_v31 = vpop.xlane.xlu2 %1352 }
 0x32b   : > { %v1467_v1 = vmul.f32 %v5229_v63, %v3946_v55  ;;  %v4443_v32 = vsub.f32 %v1469_v7, %v3962_v44  ;;  %v1424_v16 = vadd.f32 %v1398_v58, %v4218_v45  ;;  %v1394_v29 = vmul.f32 0.6931472, %v2670_v60  ;;  %v1359_v57 = vpop.xlane.xlu1 %1358 }
 0x32c   : > { %2673 = vlog2.f32 %v1353_v31  ;;  %v1420_v36 = vadd.f32 %v1390_v18, %v4226_v47  ;;  %v4465_v47 = vsub.f32 %v4397_v14, %v1218_v51 }
 0x32d   : > { %v4447_v3 = vsub.f32 %v1467_v1, %v3966_v59  ;;  %2675 = vlog2.f32 %v1359_v57  ;;  %v4452_v46 = vsel %vm917_vm0, %v4443_v32, -inf  ;;  %v2450_v19 = vadd.f32 -4.158883, %v1424_v16  ;;  %v5235_v16 = vld [vmem:[#allocation44_spill] sm:$0xff] }
 0x32e   : > { %v1422_v26 = vadd.f32 %v1394_v29, %v4220_v9  ;;  %v2446_v58 = vadd.f32 -4.158883, %v1420_v36  ;;  %1983 = vmax.xlane.f32.xlu0 %v1982_v30  ;;  %v1211_v29 = vmul.f32 %v3953_v10, %v5235_v16 }
 0x32f   : > { %v4457_v7 = vsel %vm917_vm0, %v4447_v3, -inf  ;;  %v4462_v59 = vmul.f32 %v2450_v19, %v4419_v23 }
 0x330   : > { %v2448_v45 = vadd.f32 -4.158883, %v1422_v26  ;;  %v2672_v60 = vpop.eup %2671  ;;  %v4468_v1 = vmul.f32 %v2446_v58, %v4419_v23 }
 0x331   : > { %5231 = vst [vmem:[#allocation91_spill] sm:$0xff] %v4462_v59  ;;  %v1472_v18 = vmul.f32 %v4462_v59, %v3946_v55  ;;  %v1374_v31 = vpop.xlane.xlu0 %1373  ;;  %v1404_v51 = vmul.f32 0.6931472, %v2672_v60  ;;  %v5238_v60 = vld [vmem:[#allocation68_spill] sm:$0xff] }
 0x332   : > { %5232 = vst [vmem:[#allocation92_spill] sm:$0xff] %v4468_v1  ;;  %v2674_v9 = vpop.eup %2673  ;;  %v4473_v36 = vmul.f32 %v2448_v45, %v4419_v23  ;;  %v1468_v26 = vmul.f32 %v4468_v1, %v3946_v55  ;;  %2677 = vlog2.f32 %v1374_v31  ;;  %v1362_v58 = vpop.xlane.xlu2 %1361  ;;  %v2006_v45 = vsel %vm917_vm0, %v4465_v47, -inf }
 0x333   : > { %v2676_v57 = vpop.eup %2675  ;;  %v1396_v19 = vmul.f32 0.6931472, %v2674_v9  ;;  %v1368_v59 = vpop.xlane.xlu1 %1367  ;;  %2679 = vlog2.f32 %v1362_v58  ;;  %v4488_v1 = vsub.f32 %v1472_v18, %v5237_v42 }
 0x334   : > { %5233 = vst [vmem:[#allocation93_spill] sm:$0xff] %v4473_v36  ;;  %v5234_v30 = vmov %v4473_v36  ;;  %v1400_v63 = vmul.f32 0.6931472, %v2676_v57  ;;  %v5236_v36 = vld [vmem:[#allocation69_spill] sm:$0xff]  ;;  %v4495_v57 = vsub.f32 %v4369_v20, %v1211_v29  ;;  %2681 = vlog2.f32 %v1368_v59 }
 0x335   : > { %v1470_v44 = vmul.f32 %v5234_v30, %v3946_v55  ;;  %v4484_v39 = vsub.f32 %v1468_v26, %v5236_v36  ;;  %v1423_v16 = vadd.f32 %v1396_v19, %v4208_v50  ;;  %v1427_v26 = vadd.f32 %v1404_v51, %v4234_v54 }
 0x336   : > { %v1425_v31 = vadd.f32 %v1400_v63, %v4238_v21  ;;  %2007 = vmax.xlane.f32.xlu0 %v2006_v45  ;;  %v1507_v29 = vsel %vm917_vm0, %v4488_v1, -inf  ;;  %v1985_v58 = vsel %vm917_vm0, %v4495_v57, -inf }
 0x337   : > { %v4491_v9 = vsub.f32 %v1470_v44, %v5238_v60  ;;  %v1500_v30 = vsel %vm917_vm0, %v4484_v39, -inf  ;;  %v2449_v36 = vadd.f32 -4.158883, %v1423_v16  ;;  %v5239_v44 = vld [vmem:[#allocation63_spill] sm:$0xff]  ;;  %v2453_v16 = vadd.f32 -4.158883, %v1427_v26 }
 0x338   : > { %v2451_v42 = vadd.f32 -4.158883, %v1425_v31  ;;  %v2678_v18 = vpop.eup %2677  ;;  %v4503_v19 = vsub.f32 0.0, %v5239_v44  ;;  %v5242_v44 = vld [vmem:[#allocation54_spill] sm:$0xff] }
 0x339   : > { %v1503_v50 = vsel %vm917_vm0, %v4491_v9, -inf  ;;  %v4506_v63 = vmul.f32 %v2449_v36, %v4419_v23  ;;  %v1410_v59 = vmul.f32 0.6931472, %v2678_v18  ;;  %v1383_v51 = vpop.xlane.xlu0 %1382  ;;  %v2680_v45 = vpop.eup %2679  ;;  %v1219_v37 = vmul.f32 %v4006_v62, %v5242_v44 }
 0x33a   : > { %v1504_v21 = vmax.f32 %v1500_v30, %v1503_v50  ;;  %v4511_v54 = vmul.f32 %v2451_v42, %v4419_v23  ;;  %2683 = vlog2.f32 %v1383_v51  ;;  %v1371_v31 = vpop.xlane.xlu2 %1370  ;;  %v1402_v42 = vmul.f32 0.6931472, %v2680_v45  ;;  %v2682_v15 = vpop.eup %2681 }
 0x33b   : > { %5240 = vst [vmem:[#allocation94_spill] sm:$0xff] %v4506_v63  ;;  %v1471_v60 = vmul.f32 %v4506_v63, %v3946_v55  ;;  %v1430_v50 = vadd.f32 %v1410_v59, %v4249_v13  ;;  %v1377_v18 = vpop.xlane.xlu1 %1376  ;;  %2685 = vlog2.f32 %v1371_v31  ;;  %v5244_v63 = vld [vmem:[#allocation72_spill] sm:$0xff]  ;;  %v1406_v59 = vmul.f32 0.6931472, %v2682_v15 }
 0x33c   : > { %5241 = vst [vmem:[#allocation95_spill] sm:$0xff] %v4511_v54  ;;  %v4517_v30 = vmax.f32 %v1504_v21, %v1507_v29  ;;  %v1473_v36 = vmul.f32 %v4511_v54, %v3946_v55  ;;  %v1426_v51 = vadd.f32 %v1402_v42, %v4236_v61  ;;  %v4532_v54 = vmul.f32 %v2453_v16, %v4503_v19  ;;  %v5250_v15 = vld [vmem:[#allocation25_spill] sm:$0xff] }
 0x33d   : > { %v4525_v26 = vsub.f32 %v1471_v60, %v5243_v11  ;;  %v2456_v29 = vadd.f32 -4.158883, %v1430_v50  ;;  %2687 = vlog2.f32 %v1377_v18  ;;  %v5246_v11 = vmax.f32 %v4457_v7, %v4452_v46 }
 0x33e   : > { %v4528_v21 = vsub.f32 %v1473_v36, %v5244_v63  ;;  %5245 = vst [vmem:[#allocation96_spill] sm:$0xff] %v4532_v54  ;;  %1986 = vmax.xlane.f32.xlu0 %v1985_v58  ;;  %v2452_v63 = vadd.f32 -4.158883, %v1426_v51  ;;  %v4543_v31 = vsub.f32 %v4397_v14, %v1219_v37  ;;  %v5249_v36 = vld [vmem:[#allocation80_spill] sm:$0xff]  ;;  %v1212_v58 = vmul.f32 %v3953_v10, %v5250_v15 }
 0x33f   : > { %v1505_v13 = vsel %vm917_vm0, %v4525_v26, -inf  ;;  %v4540_v60 = vmul.f32 %v2456_v29, %v4503_v19  ;;  %v1428_v50 = vadd.f32 %v1406_v59, %v5249_v36  ;;  %v1475_v29 = vmul.f32 %v4532_v54, %v3991_v8 }
 0x340   : > { %v1506_v45 = vmax.f32 %v5246_v11, %v1505_v13  ;;  %5248 = vst [vmem:[#allocation69_spill] sm:$0xff] %v4543_v31  ;;  %v2684_v61 = vpop.eup %2683  ;;  %v1509_v16 = vsel %vm917_vm0, %v4528_v21, -inf  ;;  %v4553_v7 = vmul.f32 %v2452_v63, %v4419_v23  ;;  %v2009_v63 = vsel %vm917_vm0, %v4543_v31, -inf }
 0x341   : > { %5247 = vst [vmem:[#allocation97_spill] sm:$0xff] %v4540_v60  ;;  %v1478_v46 = vmul.f32 %v4540_v60, %v3991_v8  ;;  %v1416_v18 = vmul.f32 0.6931472, %v2684_v61  ;;  %v1759_v44 = vpop.xlane.xlu0 %1758  ;;  %v2686_v37 = vpop.eup %2685  ;;  %v2454_v51 = vadd.f32 -4.158883, %v1428_v50  ;;  %v5252_v61 = vld [vmem:[#allocation73_spill] sm:$0xff] }
 0x342   : > { %v1510_v42 = vmax.f32 %v1506_v45, %v1509_v16  ;;  %5251 = vst [vmem:[#allocation98_spill] sm:$0xff] %v4553_v7  ;;  %2689 = vlog2.f32 %v1759_v44  ;;  %v1380_v13 = vpop.xlane.xlu2 %1379  ;;  %v1474_v59 = vmul.f32 %v4553_v7, %v3946_v55  ;;  %v1408_v45 = vmul.f32 0.6931472, %v2686_v37  ;;  %v5254_v50 = vld [vmem:[#allocation71_spill] sm:$0xff] }
 0x343   : > { %v1433_v11 = vadd.f32 %v1416_v18, %v4264_v48  ;;  %v1386_v16 = vpop.xlane.xlu1 %1385  ;;  %v2688_v36 = vpop.eup %2687  ;;  %v4563_v15 = vsub.f32 %v1478_v46, %v5252_v61  ;;  %v4566_v60 = vmul.f32 %v2454_v51, %v4503_v19  ;;  %2691 = vlog2.f32 %v1380_v13  ;;  %v5256_v18 = vld [vmem:[#allocation70_spill] sm:$0xff] }
 0x344   : > { %v4569_v44 = vsub.f32 %v1474_v59, %v5254_v50  ;;  %v1429_v55 = vadd.f32 %v1408_v45, %v4251_v6  ;;  %v4573_v48 = vsub.f32 %v4369_v20, %v1212_v58  ;;  %v4576_v37 = vsub.f32 %v1475_v29, %v5256_v18  ;;  %v5258_v6 = vld [vmem:[#allocation50_spill] sm:$0xff] }
 0x345   : > { %5253 = vst [vmem:[#allocation99_spill] sm:$0xff] %v4566_v60  ;;  %v2459_v54 = vadd.f32 -4.158883, %v1433_v11  ;;  %v1476_v46 = vmul.f32 %v4566_v60, %v3991_v8  ;;  %v1412_v61 = vmul.f32 0.6931472, %v2688_v36  ;;  %2693 = vlog2.f32 %v1386_v16  ;;  %v5259_v36 = vld [vmem:[#allocation75_spill] sm:$0xff] }
 0x346   : > { %5255 = vst [vmem:[#allocation67_spill] sm:$0xff] %v4573_v48  ;;  %2010 = vmax.xlane.f32.xlu0 %v2009_v63  ;;  %v1511_v51 = vsel %vm917_vm0, %v4569_v44, -inf  ;;  %v2455_v59 = vadd.f32 -4.158883, %v1429_v55  ;;  %v1220_v58 = vmul.f32 %v4006_v62, %v5258_v6  ;;  %v4589_v29 = vsel %vm917_vm0, %v4563_v15, -inf }
 0x347   : > { %v4583_v13 = vmul.f32 %v2459_v54, %v4503_v19  ;;  %v1512_v45 = vmax.f32 %v4517_v30, %v1511_v51  ;;  %v4593_v16 = vsub.f32 %v1476_v46, %v5259_v36  ;;  %v1431_v63 = vadd.f32 %v1412_v61, %v4268_v27 }
 0x348   : > { %v2690_v11 = vpop.eup %2689  ;;  %v4597_v50 = vmul.f32 %v2455_v59, %v4503_v19  ;;  %v1988_v18 = vsel %vm917_vm0, %v4573_v48, -inf  ;;  %v1520_v7 = vsel %vm917_vm0, %v4576_v37, -inf }
 0x349   : > { %5257 = vst [vmem:[#allocation100_spill] sm:$0xff] %v4583_v13  ;;  %v1806_v54 = vmul.f32 0.6931472, %v2690_v11  ;;  %v1768_v55 = vpop.xlane.xlu0 %1767  ;;  %v2692_v6 = vpop.eup %2691  ;;  %v1513_v60 = vmax.f32 %v1510_v42, %v1512_v45  ;;  %v4605_v30 = vsel %vm917_vm0, %v4593_v16, -inf  ;;  %v2457_v46 = vadd.f32 -4.158883, %v1431_v63 }
 0x34a   : > { %5260 = vst [vmem:[#allocation101_spill] sm:$0xff] %v4597_v50  ;;  %v1765_v51 = vpop.xlane.xlu2 %1764  ;;  %v1481_v61 = vmul.f32 %v4583_v13, %v3991_v8  ;;  %v1477_v59 = vmul.f32 %v4597_v50, %v3991_v8  ;;  %v1414_v11 = vmul.f32 0.6931472, %v2692_v6  ;;  %v4618_v63 = vsub.f32 %v4397_v14, %v1220_v58 }
 0x34b   : > { %v1762_v36 = vpop.xlane.xlu1 %1761  ;;  %v2694_v53 = vpop.eup %2693  ;;  %v1514_v33 = vrot.slane %v1513_v60, 4  ;;  %v4614_v42 = vmul.f32 %v2457_v46, %v4503_v19  ;;  %v1837_v34 = vadd.f32 %v1806_v54, %v4279_v41  ;;  %2695 = vlog2.f32 %v1765_v51 }
 0x34c   : > { %v4621_v27 = vsub.f32 %v1477_v59, %v5262_v22  ;;  %v1432_v13 = vadd.f32 %v1414_v11, %v4266_v17  ;;  %v1418_v48 = vmul.f32 0.6931472, %v2694_v53  ;;  %2697 = vlog2.f32 %v1762_v36  ;;  %v5264_v53 = vld [vmem:[#allocation78_spill] sm:$0xff] }
 0x34d   : > { %v5261_v45 = vmov %v4614_v42  ;;  %v1515_v50 = vmax.f32 %v1513_v60, %v1514_v33  ;;  %v2463_v46 = vadd.f32 -4.158883, %v1837_v34  ;;  %v5263_v42 = vld [vmem:[#allocation76_spill] sm:$0xff]  ;;  %2699 = vlog2.f32 %v1768_v55 }
 0x34e   : > { %v1479_v6 = vmul.f32 %v5261_v45, %v3991_v8  ;;  %1989 = vmax.xlane.f32.xlu0 %v1988_v18  ;;  %v4627_v31 = vsub.f32 %v1481_v61, %v5263_v42  ;;  %v1522_v41 = vsel %vm917_vm0, %v4621_v27, -inf  ;;  %v2458_v58 = vadd.f32 -4.158883, %v1432_v13  ;;  %v5265_v13 = vld [vmem:[#allocation47_spill] sm:$0xff] }
 0x34f   : > { %v1434_v22 = vadd.f32 %v1418_v48, %v4283_v12  ;;  %v1516_v54 = vrot.slane %v1515_v50, 2  ;;  %v1523_v17 = vmax.f32 %v1520_v7, %v1522_v41  ;;  %v1869_v33 = vmul.f32 %v2463_v46, %v4419_v23 }
 0x350   : > { %v4633_v51 = vsub.f32 %v1479_v6, %v5264_v53  ;;  %v4637_v60 = vmul.f32 %v2458_v58, %v4503_v19  ;;  %v1221_v12 = vmul.f32 %v4006_v62, %v5265_v13  ;;  %v2012_v46 = vsel %vm917_vm0, %v4618_v63, -inf }
 0x351   : > { %v2460_v34 = vadd.f32 -4.158883, %v1434_v22  ;;  %v4639_v18 = vpop.xlane.xlu0 %1776  ;;  %v1517_v61 = vmax.f32 %v1515_v50, %v1516_v54  ;;  %1885 = vxpose.xlu1.b32.start [1/8] (short) (narrow) %v1869_v33, 8  ;;  %v2696_v7 = vpop.eup %2695  ;;  %v1530_v41 = vsel %vm917_vm0, %v4627_v31, -inf  ;;  %v5267_v22 = vld [vmem:[#allocation77_spill] sm:$0xff] }
 0x352   : > { %v1526_v59 = vsel %vm917_vm0, %v4633_v51, -inf  ;;  %v1480_v11 = vmul.f32 %v4637_v60, %v3991_v8  ;;  %v2698_v42 = vpop.eup %2697  ;;  %v4662_v33 = vsub.f32 %v4397_v14, %v1221_v12 }
 0x353   : > { %v1527_v48 = vmax.f32 %v1523_v17, %v1526_v59  ;;  %v4648_v36 = vmul.f32 %v2460_v34, %v4503_v19  ;;  %v1518_v50 = vrot.slane %v1517_v61, 1  ;;  %v5268_v59 = vld [vmem:[#allocation79_spill] sm:$0xff]  ;;  %v1771_v12 = vpop.xlane.xlu1 %1770 }
 0x354   : > { %v4655_v54 = vsub.f32 %v1480_v11, %v5267_v22  ;;  %2701 = vlog2.f32 %v1771_v12 }
 0x355   : > { %v5266_v6 = vmov %v4648_v36  ;;  %v1531_v58 = vmax.f32 %v1527_v48, %v1530_v41  ;;  %v4659_v53 = vmax.f32 %v1517_v61, %v1518_v50  ;;  %v1810_v48 = vmul.f32 0.6931472, %v2696_v7 }
 0x356   : > { %v1482_v17 = vmul.f32 %v5266_v6, %v3991_v8  ;;  %2013 = vmax.xlane.f32.xlu0 %v2012_v46  ;;  %v1528_v34 = vsel %vm917_vm0, %v4655_v54, -inf  ;;  %v1808_v36 = vmul.f32 0.6931472, %v2698_v42 }
 0x357   : > { %v1541_v11 = vsub.f32 %v4447_v3, %v4659_v53  ;;  %v1542_v8 = vsub.f32 %v4484_v39, %v4659_v53  ;;  %v1543_v55 = vsub.f32 %v4443_v32, %v4659_v53  ;;  %v1544_v61 = vsub.f32 %v4491_v9, %v4659_v53 }
 0x358   : > { %v4667_v13 = vsub.f32 %v1482_v17, %v5268_v59  ;;  %v1545_v46 = vsub.f32 %v4525_v26, %v4659_v53  ;;  %v1546_v7 = vsub.f32 %v4488_v1, %v4659_v53  ;;  %v1547_v42 = vsub.f32 %v4528_v21, %v4659_v53  ;;  %v2700_v21 = vpop.eup %2699 }
 0x359   : > { %v1548_v3 = vsub.f32 %v4569_v44, %v4659_v53  ;;  %v4685_v39 = vpop.xlane.xlu0 %1785  ;;  %v1557_v50 = vmul.f32 1.442695, %v1541_v11  ;;  %v1559_v32 = vmul.f32 1.442695, %v1542_v8  ;;  %v1561_v41 = vmul.f32 1.442695, %v1543_v55 }
 0x35a   : > { %v5269_v9 = vmax.f32 %v4605_v30, %v4589_v29  ;;  %v1563_v17 = vmul.f32 1.442695, %v1544_v61  ;;  %v1838_v26 = vadd.f32 %v1808_v36, %v4298_v38  ;;  %v2015_v1 = vsel %vm917_vm0, %v4662_v33, -inf  ;;  %v2702_v61 = vpop.eup %2701 }
 0x35b   : > { %2703 = vpow2.f32 %v1557_v50  ;;  %v1532_v44 = vsel %vm917_vm0, %v4667_v13, -inf  ;;  %v1565_v59 = vmul.f32 1.442695, %v1545_v46  ;;  %v1567_v55 = vmul.f32 1.442695, %v1546_v7  ;;  %v5270_v46 = vld [vmem:[#allocation52_spill] sm:$0xff] }
 0x35c   : > { %v1529_v22 = vmax.f32 %v5269_v9, %v1528_v34  ;;  %2705 = vpow2.f32 %v1559_v32  ;;  %v2464_v8 = vadd.f32 -4.158883, %v1838_v26  ;;  %v1839_v29 = vadd.f32 %v1810_v48, %v4281_v56 }
 0x35d   : > { %2707 = vpow2.f32 %v1561_v41  ;;  %v1569_v38 = vmul.f32 1.442695, %v1547_v42  ;;  %v1812_v36 = vmul.f32 0.6931472, %v2700_v21  ;;  %v1213_v32 = vmul.f32 %v3953_v10, %v5270_v46 }
 0x35e   : > { %v1533_v11 = vmax.f32 %v1529_v22, %v1532_v44  ;;  %2016 = vmax.xlane.f32.xlu0 %v2015_v1  ;;  %2709 = vpow2.f32 %v1563_v17  ;;  %v1870_v34 = vmul.f32 %v2464_v8, %v4419_v23  ;;  %v1571_v7 = vmul.f32 1.442695, %v1548_v3  ;;  %v5271_v1 = vld [vmem:[#allocation46_spill] sm:$0xff] }
 0x35f   : > { %2711 = vpow2.f32 %v1565_v59  ;;  %v2465_v56 = vadd.f32 -4.158883, %v1839_v29  ;;  %v4703_v9 = vsub.f32 %v4369_v20, %v1213_v32  ;;  %v1840_v26 = vadd.f32 %v1812_v36, %v4294_v43 }
 0x360   : > { %v1534_v30 = vmax.f32 %v1531_v58, %v1533_v11  ;;  %1886 = vxpose.xlu1.b32.cont [2/8] (short) (narrow) %v1870_v34, 8  ;;  %2713 = vpow2.f32 %v1567_v55  ;;  %v1214_v21 = vmul.f32 %v3953_v10, %v5271_v1  ;;  %v1774_v34 = vpop.xlane.xlu2 %1773  ;;  %v1814_v46 = vmul.f32 0.6931472, %v2702_v61 }
 0x361   : > { %v4697_v50 = vpop.xlane.xlu0 %1794  ;;  %v2704_v41 = vpop.eup %2703  ;;  %2715 = vpow2.f32 %v1569_v38  ;;  %v1991_v8 = vsel %vm917_vm0, %v4703_v9, -inf  ;;  %v1871_v43 = vmul.f32 %v2465_v56, %v4419_v23 }
 0x362   : > { %v1535_v12 = vrot.slane %v1534_v30, 4  ;;  %v2706_v48 = vpop.eup %2705  ;;  %v1589_v58 = vsel %vm917_vm0, %v2704_v41, 0.0  ;;  %v4713_v55 = vsub.f32 %v4369_v20, %v1214_v21  ;;  %2717 = vpow2.f32 %v1571_v7  ;;  %1992 = vmax.xlane.f32.xlu2 %v1991_v8 }
 0x363   : > { %v2708_v22 = vpop.eup %2707  ;;  %v1590_v17 = vsel %vm917_vm0, %v2706_v48, 0.0  ;;  %2719 = vlog2.f32 %v1774_v34 }
 0x364   : > { %v1536_v42 = vmax.f32 %v1534_v30, %v1535_v12  ;;  %v2710_v44 = vpop.eup %2709  ;;  %v1591_v59 = vadd.f32 %v1590_v17, %v1589_v58  ;;  %v1592_v11 = vsel %vm917_vm0, %v2708_v22, 0.0  ;;  %v2466_v12 = vadd.f32 -4.158883, %v1840_v26 }
 0x365   : > { %v2712_v29 = vpop.eup %2711  ;;  %v1594_v36 = vsel %vm917_vm0, %v2710_v44, 0.0  ;;  %v1994_v32 = vsel %vm917_vm0, %v4713_v55, -inf  ;;  %v1841_v17 = vadd.f32 %v1814_v46, %v4313_v25  ;;  %2721 = vlog2.f32 %v4639_v18 }
 0x366   : > { %v1537_v3 = vrot.slane %v1536_v42, 2  ;;  %v1593_v38 = vadd.f32 %v1592_v11, %v1591_v59  ;;  %v2714_v10 = vpop.eup %2713  ;;  %1995 = vmax.xlane.f32.xlu0 %v1994_v32  ;;  %v1596_v7 = vsel %vm917_vm0, %v2712_v29, 0.0  ;;  %v1872_v26 = vmul.f32 %v2466_v12, %v4419_v23 }
 0x367   : > { %v2716_v41 = vpop.eup %2715  ;;  %v1598_v22 = vsel %vm917_vm0, %v2714_v10, 0.0 }
 0x368   : > { %v1538_v30 = vmax.f32 %v1536_v42, %v1537_v3  ;;  %v1595_v48 = vadd.f32 %v1594_v36, %v1593_v38  ;;  %1887 = vxpose.xlu1.b32.cont [3/8] (short) (narrow) %v1871_v43, 8  ;;  %v1600_v61 = vsel %vm917_vm0, %v2716_v41, 0.0  ;;  %v2718_v1 = vpop.eup %2717 }
 0x369   : > { %v4719_v58 = vpop.xlane.xlu0 %1803  ;;  %v2720_v34 = vpop.eup %2719 }
 0x36a   : > { %v1539_v20 = vrot.slane %v1538_v30, 1  ;;  %v1597_v56 = vadd.f32 %v1596_v7, %v1595_v48  ;;  %v1816_v36 = vmul.f32 0.6931472, %v2720_v34  ;;  %v1780_v48 = vpop.xlane.xlu1 %1779 }
 0x36b   : > { %v2722_v32 = vpop.eup %2721 }
 0x36c   : > { %v4722_v42 = vmax.f32 %v1538_v30, %v1539_v20  ;;  %v1599_v21 = vadd.f32 %v1598_v22, %v1597_v56  ;;  %v1842_v7 = vadd.f32 %v1816_v36, %v4296_v49 }
 0x36e   : > { %v1549_v44 = vsub.f32 %v4576_v37, %v4722_v42  ;;  %v1550_v59 = vsub.f32 %v4593_v16, %v4722_v42  ;;  %v1551_v3 = vsub.f32 %v4621_v27, %v4722_v42  ;;  %v1552_v11 = vsub.f32 %v4563_v15, %v4722_v42 }
 0x36f   : > { %v1553_v8 = vsub.f32 %v4633_v51, %v4722_v42  ;;  %v1554_v25 = vsub.f32 %v4655_v54, %v4722_v42  ;;  %v1555_v29 = vsub.f32 %v4627_v31, %v4722_v42  ;;  %v1601_v38 = vadd.f32 %v1600_v61, %v1599_v21 }
 0x370   : > { %v1556_v37 = vsub.f32 %v4667_v13, %v4722_v42  ;;  %v1573_v16 = vmul.f32 1.442695, %v1549_v44  ;;  %v1575_v30 = vmul.f32 1.442695, %v1550_v59  ;;  %v1602_v27 = vsel %vm917_vm0, %v2718_v1, 0.0  ;;  %1888 = vxpose.xlu1.b32.cont [4/8] (short) (narrow) %v1872_v26, 8 }
 0x371   : > { %v1577_v43 = vmul.f32 1.442695, %v1551_v3  ;;  %v1579_v15 = vmul.f32 1.442695, %v1552_v11  ;;  %v1603_v51 = vadd.f32 %v1602_v27, %v1601_v38  ;;  %v4746_v54 = vpop.xlane.xlu0 %1974  ;;  %v1581_v31 = vmul.f32 1.442695, %v1553_v8 }
 0x372   : > { %2723 = vpow2.f32 %v1573_v16  ;;  %v2467_v13 = vadd.f32 -4.158883, %v1841_v17  ;;  %v1583_v12 = vmul.f32 1.442695, %v1554_v25  ;;  %v1585_v41 = vmul.f32 1.442695, %v1555_v29 }
 0x373   : > { %2725 = vpow2.f32 %v1575_v30  ;;  %v1604_v10 = vrot.slane %v1603_v51, 4  ;;  %v1587_v61 = vmul.f32 1.442695, %v1556_v37  ;;  %v2021_v49 = vsub.f32 %v4375_v2, %v4746_v54 }
 0x374   : > { %2727 = vpow2.f32 %v1577_v43  ;;  %v1873_v56 = vmul.f32 %v2467_v13, %v4419_v23  ;;  %v1818_v29 = vmul.f32 0.6931472, %v2722_v32  ;;  %v2468_v38 = vadd.f32 -4.158883, %v1842_v7 }
 0x375   : > { %2729 = vpow2.f32 %v1579_v15  ;;  %v1605_v46 = vadd.f32 %v1604_v10, %v1603_v51  ;;  %v2037_v30 = vmul.f32 1.442695, %v2021_v49 }
 0x376   : > { %2731 = vpow2.f32 %v1581_v31  ;;  %v1843_v31 = vadd.f32 %v1818_v29, %v4309_v5  ;;  %v1874_v10 = vmul.f32 %v2468_v38, %v4419_v23 }
 0x377   : > { %v1606_v18 = vrot.slane %v1605_v46, 2  ;;  %2733 = vpow2.f32 %v1583_v12 }
 0x378   : > { %v2724_v20 = vpop.eup %2723  ;;  %2735 = vlog2.f32 %v1780_v48  ;;  %1889 = vxpose.xlu1.b32.cont [5/8] (short) (narrow) %v1873_v56, 8 }
 0x379   : > { %v2726_v22 = vpop.eup %2725  ;;  %v1610_v26 = vsel %vm917_vm0, %v2724_v20, 0.0  ;;  %v1607_v17 = vadd.f32 %v1606_v18, %v1605_v46  ;;  %v4752_v44 = vpop.xlane.xlu0 %1977  ;;  %2737 = vpow2.f32 %v1585_v41  ;;  %v2469_v18 = vadd.f32 -4.158883, %v1843_v31 }
 0x37a   : > { %v2728_v1 = vpop.eup %2727  ;;  %v1611_v21 = vsel %vm917_vm0, %v2726_v22, 0.0  ;;  %v2022_v11 = vsub.f32 %v4382_v24, %v4752_v44  ;;  %2739 = vpow2.f32 %v1587_v61 }
 0x37b   : > { %v2730_v59 = vpop.eup %2729  ;;  %v1612_v3 = vadd.f32 %v1611_v21, %v1610_v26  ;;  %v1608_v8 = vrot.slane %v1607_v17, 1  ;;  %v1613_v25 = vsel %vm917_vm0, %v2728_v1, 0.0  ;;  %2741 = vpow2.f32 %v2037_v30 }
 0x37c   : > { %v2732_v37 = vpop.eup %2731  ;;  %v1615_v27 = vsel %vm917_vm0, %v2730_v59, 0.0  ;;  %v2039_v51 = vmul.f32 1.442695, %v2022_v11 }
 0x37d   : > { %v1614_v16 = vadd.f32 %v1613_v25, %v1612_v3  ;;  %v1609_v34 = vadd.f32 %v1608_v8, %v1607_v17  ;;  %v2734_v43 = vpop.eup %2733  ;;  %v1617_v24 = vsel %vm917_vm0, %v2732_v37, 0.0 }
 0x37e   : > { %v2736_v2 = vpop.eup %2735  ;;  %v1619_v12 = vsel %vm917_vm0, %v2734_v43, 0.0 }
 0x37f   : > { %v1616_v15 = vadd.f32 %v1615_v27, %v1614_v16  ;;  %2743 = vlog2.f32 %v1609_v34  ;;  %v2738_v36 = vpop.eup %2737  ;;  %v1820_v7 = vmul.f32 0.6931472, %v2736_v2 }
 0x380   : > { %1890 = vxpose.xlu1.b32.cont [6/8] (short) (narrow) %v1874_v10, 8  ;;  %v2740_v32 = vpop.eup %2739  ;;  %2745 = vpow2.f32 %v2039_v51  ;;  %v1621_v20 = vsel %vm917_vm0, %v2738_v36, 0.0 }
 0x381   : > { %v1618_v13 = vadd.f32 %v1617_v24, %v1616_v15  ;;  %v4764_v46 = vpop.xlane.xlu0 %1980  ;;  %v2742_v5 = vpop.eup %2741  ;;  %v1623_v61 = vsel %vm917_vm0, %v2740_v32, 0.0  ;;  %v1844_v59 = vadd.f32 %v1820_v7, %v4328_v52 }
 0x382   : > { %v2023_v48 = vsub.f32 %v4389_v4, %v4764_v46  ;;  %v2069_v26 = vsel %vm917_vm0, %v2742_v5, 0.0  ;;  %v1875_v4 = vmul.f32 %v2469_v18, %v4419_v23 }
 0x383   : > { %v1620_v41 = vadd.f32 %v1619_v12, %v1618_v13  ;;  %2070 = vadd.xlane.f32.xlu0 %v2069_v26  ;;  %v2470_v38 = vadd.f32 -4.158883, %v1844_v59 }
 0x384   : > { %v2041_v21 = vmul.f32 1.442695, %v2023_v48 }
 0x385   : > { %v1622_v56 = vadd.f32 %v1621_v20, %v1620_v41  ;;  %v2744_v22 = vpop.eup %2743  ;;  %v1876_v34 = vmul.f32 %v2470_v38, %v4419_v23 }
 0x386   : > { %v1632_v1 = vmul.f32 0.6931472, %v2744_v22  ;;  %v2746_v3 = vpop.eup %2745  ;;  %2747 = vpow2.f32 %v2041_v21 }
 0x387   : > { %v1624_v17 = vadd.f32 %v1623_v61, %v1622_v56  ;;  %v2072_v37 = vsel %vm917_vm0, %v2746_v3, 0.0 }
 0x388   : > { %v1635_v49 = vadd.f32 %v1632_v1, %v4659_v53  ;;  %1891 = vxpose.xlu1.b32.cont [7/8] (short) (narrow) %v1875_v4, 8  ;;  %v1783_v4 = vpop.xlane.xlu2 %1782 }
 0x389   : > { %v1625_v11 = vrot.slane %v1624_v17, 4  ;;  %v4774_v8 = vpop.xlane.xlu0 %1998 }
 0x38a   : > { %v2461_v25 = vadd.f32 -4.158883, %v1635_v49 }
 0x38b   : > { %v1626_v29 = vadd.f32 %v1625_v11, %v1624_v17  ;;  %2073 = vadd.xlane.f32.xlu0 %v2072_v37 }
 0x38c   : > { %v4778_v16 = vmul.f32 %v2461_v25, %v4419_v23   ;;  %v2748_v27 = vpop.eup %2747 }
 0x38d   : > { %v1627_v30 = vrot.slane %v1626_v29, 2  ;;  %v2075_v51 = vsel %vm917_vm0, %v2748_v27, 0.0 }
 0x38f   : > { %v1628_v52 = vadd.f32 %v1627_v30, %v1626_v29  ;;  %v5272_v30 = vld [vmem:[#allocation69_spill] sm:$0xff] }
 0x390   : > { %1892 = vxpose.xlu1.b32.end [8/8] (short) (narrow) %v1876_v34, 8  ;;  %v4818_v37 = vpop.xlane.xlu2 %1791 }
 0x391   : > { %v1629_v53 = vrot.slane %v1628_v52, 1  ;;  %v4781_v43 = vpop.xlane.xlu0 %2001 }
 0x392   : > { %v2030_v61 = vsub.f32 %v4407_v35, %v4781_v43 }
 0x393   : > { %v1630_v15 = vadd.f32 %v1629_v53, %v1628_v52  ;;  %2076 = vadd.xlane.f32.xlu0 %v2075_v51 }
 0x394   : > { %v2055_v17 = vmul.f32 1.442695, %v2030_v61 }
 0x395   : > { %2749 = vlog2.f32 %v1630_v15 }
 0x398   : > { %v4827_v51 = vpop.xlane.xlu2 %1800 }
 0x399   : > { %v4784_v2 = vpop.xlane.xlu0 %2004 }
 0x39b   : > { %v2750_v24 = vpop.eup %2749 }
 0x39c   : > { %v1634_v31 = vmul.f32 0.6931472, %v2750_v24  ;;  %v5273_v24 = vld [vmem:[#allocation67_spill] sm:$0xff] }
 0x39e   : > { %v1636_v10 = vadd.f32 %v1634_v31, %v4722_v42  ;;  %v2029_v42 = vsub.f32 %v4400_v0, %v4774_v8  ;;  %v2031_v0 = vsub.f32 %v4414_v28, %v4784_v2 }
 0x3a0   : > { %v2462_v36 = vadd.f32 -4.158883, %v1636_v10  ;;  %v2053_v22 = vmul.f32 1.442695, %v2029_v42  ;;  %v2057_v3 = vmul.f32 1.442695, %v2031_v0 }
 0x3a1   : > { %v4790_v12 = vpop.xlane.xlu0 %1983 }
 0x3a2   : > { %v4788_v13 = vmul.f32 %v2462_v36, %v4503_v19   ;;  %v2024_v32 = vsub.f32 %v4426_v40, %v4790_v12 }
 0x3a4   : > { %v2043_v41 = vmul.f32 1.442695, %v2024_v32 }
 0x3a6   : > { %2751 = vpow2.f32 %v2043_v41 }
 0x3a9   : > { %v4794_v48 = vpop.xlane.xlu0 %2007 }
 0x3aa   : > { %v2032_v11 = vsub.f32 %v4465_v47, %v4794_v48 }
 0x3ac   : > { %v2752_v20 = vpop.eup %2751  ;;  %v2059_v29 = vmul.f32 1.442695, %v2032_v11 }
 0x3ad   : > { %v2078_v18 = vsel %vm917_vm0, %v2752_v20, 0.0 }
 0x3ae   : > { %2079 = vadd.xlane.f32.xlu0 %v2078_v18 }
 0x3b1   : > { %v4797_v7 = vpop.xlane.xlu0 %1986 }
 0x3b2   : > { %v2025_v5 = vsub.f32 %v4495_v57, %v4797_v7 }
 0x3b4   : > { %v2045_v56 = vmul.f32 1.442695, %v2025_v5 }
 0x3b6   : > { %2753 = vpow2.f32 %v2045_v56 }
 0x3b7   : > { %2755 = vpow2.f32 %v2053_v22  ;;  %v5274_v22 = vld [vmem:[#allocation55_spill] sm:$0xff] }
 0x3b8   : > { %2757 = vpow2.f32 %v2055_v17  ;;  %v1222_v61 = vmul.f32 %v4006_v62, %v5274_v22 }
 0x3b9   : > { %v4803_v40 = vpop.xlane.xlu0 %2010  ;;  %2759 = vpow2.f32 %v2057_v3 }
 0x3ba   : > { %v2033_v52 = vsub.f32 %v5272_v30, %v4803_v40  ;;  %2761 = vpow2.f32 %v2059_v29  ;;  %v5275_v30 = vld [vmem:[#allocation81_spill] sm:$0xff] }
 0x3bc   : > { %v2754_v26 = vpop.eup %2753  ;;  %v2061_v53 = vmul.f32 1.442695, %v2033_v52 }
 0x3bd   : > { %v2081_v1 = vsel %vm917_vm0, %v2754_v26, 0.0  ;;  %v2756_v21 = vpop.eup %2755 }
 0x3be   : > { %2082 = vadd.xlane.f32.xlu0 %v2081_v1  ;;  %v2093_v57 = vsel %vm917_vm0, %v2756_v21, 0.0  ;;  %v2758_v49 = vpop.eup %2757  ;;  %v4845_v21 = vsub.f32 %v4397_v14, %v1222_v61 }
 0x3bf   : > { %v2096_v25 = vsel %vm917_vm0, %v2758_v49, 0.0  ;;  %v2760_v38 = vpop.eup %2759 }
 0x3c0   : > { %v2099_v27 = vsel %vm917_vm0, %v2760_v38, 0.0  ;;  %v2762_v15 = vpop.eup %2761  ;;  %v1789_v38 = vpop.xlane.xlu1 %1788 }
 0x3c1   : > { %v4808_v59 = vpop.xlane.xlu0 %1989  ;;  %v2102_v10 = vsel %vm917_vm0, %v2762_v15, 0.0 }
 0x3c2   : > { %v2026_v31 = vsub.f32 %v5273_v24, %v4808_v59 }
 0x3c6   : > { %2094 = vadd.xlane.f32.xlu0 %v2093_v57 }
 0x3c8   : > { %v1798_v22 = vpop.xlane.xlu1 %1797 }
 0x3c9   : > { %v4813_v35 = vpop.xlane.xlu0 %2013 }
 0x3ca   : > { %v2034_v20 = vsub.f32 %v4618_v63, %v4813_v35 }
 0x3cc   : > { %v2063_v56 = vmul.f32 1.442695, %v2034_v20 }
 0x3ce   : > { %2097 = vadd.xlane.f32.xlu0 %v2096_v25 }
 0x3d1   : > { %v4820_v28 = vpop.xlane.xlu0 %2016 }
 0x3d2   : > { %v2035_v34 = vsub.f32 %v4662_v33, %v4820_v28  ;;  %v2047_v33 = vmul.f32 1.442695, %v2026_v31 }
 0x3d4   : > { %v2065_v47 = vmul.f32 1.442695, %v2035_v34 }
 0x3d5   : > { %v4835_v18 = vpop.xlane.xlu2 %1992 }
 0x3d6   : > { %2100 = vadd.xlane.f32.xlu0 %v2099_v27  ;;  %2763 = vpow2.f32 %v2065_v47  ;;  %v2027_v5 = vsub.f32 %v4703_v9, %v4835_v18  ;;  %v2018_v9 = vsel %vm917_vm0, %v4845_v21, -inf  ;;  %v5276_v47 = vld [vmem:[#allocation82_spill] sm:$0xff] }
 0x3d7   : > { %2765 = vpow2.f32 %v2061_v53 }
 0x3d8   : > { %2767 = vpow2.f32 %v2047_v33  ;;  %v2049_v1 = vmul.f32 1.442695, %v2027_v5  ;;  %v5278_v5 = vld [vmem:[#allocation83_spill] sm:$0xff] }
 0x3d9   : > { %v4842_v17 = vpop.xlane.xlu0 %1995  ;;  %2769 = vpow2.f32 %v2063_v56 }
 0x3da   : > { %v2028_v63 = vsub.f32 %v4713_v55, %v4842_v17  ;;  %2771 = vpow2.f32 %v2049_v1 }
 0x3db   : > { %2773 = vlog2.f32 %v1783_v4 }
 0x3dc   : > { %v2764_v36 = vpop.eup %2763  ;;  %v2051_v57 = vmul.f32 1.442695, %v2028_v63 }
 0x3dd   : > { %v2111_v32 = vsel %vm917_vm0, %v2764_v36, 0.0  ;;  %v2766_v41 = vpop.eup %2765 }
 0x3de   : > { %2103 = vadd.xlane.f32.xlu0 %v2102_v10  ;;  %2112 = vadd.xlane.f32.xlu2 %v2111_v32  ;;  %v2105_v42 = vsel %vm917_vm0, %v2766_v41, 0.0  ;;  %v2768_v26 = vpop.eup %2767  ;;  %2775 = vpow2.f32 %v2051_v57  ;;  %v5277_v10 = vld [vmem:[#allocation86_spill] sm:$0xff] }
 0x3df   : > { %v2084_v0 = vsel %vm917_vm0, %v2768_v26, 0.0  ;;  %v2770_v62 = vpop.eup %2769  ;;  %2777 = vlog2.f32 %v4685_v39 }
 0x3e0   : > { %v2772_v3 = vpop.eup %2771  ;;  %v2108_v14 = vsel %vm917_vm0, %v2770_v62, 0.0  ;;  %2779 = vlog2.f32 %v1789_v38 }
 0x3e1   : > { %v2774_v49 = vpop.eup %2773  ;;  %v2087_v11 = vsel %vm917_vm0, %v2772_v3, 0.0  ;;  %2781 = vlog2.f32 %v4818_v37 }
 0x3e2   : > { %v1822_v25 = vmul.f32 0.6931472, %v2774_v49  ;;  %2783 = vlog2.f32 %v4697_v50  ;;  %v5280_v49 = vld [vmem:[#allocation88_spill] sm:$0xff] }
 0x3e3   : > { %2785 = vlog2.f32 %v1798_v22 }
 0x3e4   : > { %v2776_v55 = vpop.eup %2775  ;;  %v1845_v52 = vadd.f32 %v1822_v25, %v5275_v30  ;;  %2787 = vlog2.f32 %v4827_v51 }
 0x3e5   : > { %v2090_v29 = vsel %vm917_vm0, %v2776_v55, 0.0  ;;  %v2778_v4 = vpop.eup %2777  ;;  %2789 = vlog2.f32 %v4719_v58 }
 0x3e6   : > { %2106 = vadd.xlane.f32.xlu0 %v2105_v42  ;;  %v1824_v34 = vmul.f32 0.6931472, %v2778_v4  ;;  %v2471_v27 = vadd.f32 -4.158883, %v1845_v52  ;;  %v2780_v24 = vpop.eup %2779  ;;  %v5281_v52 = vld [vmem:[#allocation85_spill] sm:$0xff] }
 0x3e7   : > { %v1826_v31 = vmul.f32 0.6931472, %v2780_v24  ;;  %v2782_v41 = vpop.eup %2781  ;;  %v5282_v24 = vld [vmem:[#allocation87_spill] sm:$0xff] }
 0x3e8   : > { %v1846_v53 = vadd.f32 %v1824_v34, %v5276_v47  ;;  %v1877_v15 = vmul.f32 %v2471_v27, %v4503_v19  ;;  %v1828_v20 = vmul.f32 0.6931472, %v2782_v41  ;;  %v2784_v26 = vpop.eup %2783 }
 0x3e9   : > { %v1847_v36 = vadd.f32 %v1826_v31, %v5277_v10  ;;  %v1830_v1 = vmul.f32 0.6931472, %v2784_v26  ;;  %v2786_v62 = vpop.eup %2785 }
 0x3ea   : > { %v2472_v39 = vadd.f32 -4.158883, %v1846_v53  ;;  %v1848_v56 = vadd.f32 %v1828_v20, %v5278_v5  ;;  %v1832_v3 = vmul.f32 0.6931472, %v2786_v62  ;;  %v2788_v25 = vpop.eup %2787 }
 0x3eb   : > { %v2473_v42 = vadd.f32 -4.158883, %v1847_v36  ;;  %v2790_v27 = vpop.eup %2789 }
 0x3ec   : > { %v1878_v33 = vmul.f32 %v2472_v39, %v4503_v19  ;;  %v2474_v63 = vadd.f32 -4.158883, %v1848_v56  ;;  %v1836_v51 = vmul.f32 0.6931472, %v2790_v27 }
 0x3ed   : > { %v1879_v61 = vmul.f32 %v2473_v42, %v4503_v19  ;;  %v5283_v42 = vld [vmem:[#allocation62_spill] sm:$0xff] }
 0x3ee   : > { %2085 = vadd.xlane.f32.xlu0 %v2084_v0  ;;  %v5279_v0 = vld [vmem:[#allocation84_spill] sm:$0xff]  ;;  %v1880_v57 = vmul.f32 %v2474_v63, %v4503_v19  ;;  %v1852_v39 = vadd.f32 %v1836_v51, %v5282_v24 }
 0x3f0   : > { %2019 = vmax.xlane.f32.xlu1 %v2018_v9  ;;  %v1849_v9 = vadd.f32 %v1830_v1, %v5279_v0  ;;  %v2478_v10 = vadd.f32 -4.158883, %v1852_v39 }
 0x3f2   : > { %v2475_v50 = vadd.f32 -4.158883, %v1849_v9  ;;  %v1884_v41 = vmul.f32 %v2478_v10, %v4503_v19 }
 0x3f4   : > { %v1881_v55 = vmul.f32 %v2475_v50, %v4503_v19 }
 0x3f6   : > { %2109 = vadd.xlane.f32.xlu0 %v2108_v14  ;;  %v2071_v32 = vpop.xlane.xlu0 %2070 }
 0x3f7   : > { %2791 = vlog2.f32 %v2071_v32 }
 0x3f8   : > { %2088 = vadd.xlane.f32.xlu1 %v2087_v11  ;;  %v1850_v11 = vadd.f32 %v1832_v3, %v5280_v49 }
 0x3fa   : > { %v2476_v38 = vadd.f32 -4.158883, %v1850_v11 }
 0x3fc   : > { %v1882_v34 = vmul.f32 %v2476_v38, %v4503_v19  ;;  %v1901_v20 = vpop.trf.xlu1 }
 0x3fd   : > { %v1949_v5 = vadd.f32 %v5283_v42, %v1901_v20 }
 0x3fe   : > { %2091 = vadd.xlane.f32.xlu0 %v2090_v29  ;;  %v2074_v37 = vpop.xlane.xlu0 %2073  ;;  %v1834_v29 = vmul.f32 0.6931472, %v2788_v25 }
 0x3ff   : > { %2793 = vlog2.f32 %v2074_v37  ;;  %v4878_v5 = vmul.f32 0.5, %v1949_v5  }
 0x400   : > { %v1851_v4 = vadd.f32 %v1834_v29, %v5281_v52 }
 0x401   : > { %v5284_v37 = vmov %v4878_v5 }
 0x402   : > { %v2477_v47 = vadd.f32 -4.158883, %v1851_v4 }
 0x404   : > { %v1883_v31 = vmul.f32 %v2477_v47, %v4503_v19 }
 0x406   : > { %v2077_v14 = vpop.xlane.xlu0 %2076 }
 0x407   : > { %1917 = vxpose.xlu2.b32.start [1/8] (short) (narrow) %v1877_v15, 8  ;;  %v2792_v15 = vpop.eup %2791 }
 0x408   : > { %v2118_v58 = vmul.f32 0.6931472, %v2792_v15  ;;  %v2794_v32 = vpop.eup %2793 }
 0x40f   : > { %1918 = vxpose.xlu2.b32.cont [2/8] (short) (narrow) %v1878_v33, 8  ;;  %v2149_v33 = vadd.f32 %v2118_v58, %v4746_v54 }
 0x411   : > { %v2479_v22 = vadd.f32 -4.158883, %v2149_v33 }
 0x417   : > { %1919 = vxpose.xlu2.b32.cont [3/8] (short) (narrow) %v1879_v61, 8  ;;  %v2120_v61 = vmul.f32 0.6931472, %v2794_v32 }
 0x419   : > { %v2150_v54 = vadd.f32 %v2120_v61, %v4752_v44 }
 0x41f   : > { %1920 = vxpose.xlu2.b32.cont [4/8] (short) (narrow) %v1880_v57, 8  ;;  %v2181_v57 = vmul.f32 %v2479_v22, %v4419_v23 }
 0x421   : > { %v2080_v30 = vpop.xlane.xlu0 %2079 }
 0x427   : > { %1921 = vxpose.xlu2.b32.cont [5/8] (short) (narrow) %v1881_v55, 8 }
 0x42f   : > { %1922 = vxpose.xlu2.b32.cont [6/8] (short) (narrow) %v1882_v34, 8 }
 0x431   : > { %v2083_v53 = vpop.xlane.xlu0 %2082 }
 0x437   : > { %1923 = vxpose.xlu2.b32.cont [7/8] (short) (narrow) %v1883_v31, 8 }
 0x439   : > { %v2095_v36 = vpop.xlane.xlu0 %2094 }
 0x43a   : > { %2795 = vlog2.f32 %v2095_v36 }
 0x43b   : > { %2797 = vlog2.f32 %v2077_v14  ;;  %v2480_v14 = vadd.f32 -4.158883, %v2150_v54 }
 0x43d   : > { %v2182_v44 = vmul.f32 %v2480_v14, %v4419_v23 }
 0x43f   : > { %1924 = vxpose.xlu2.b32.end [8/8] (short) (narrow) %v1884_v41, 8 }
 0x440   : > { %v2796_v56 = vpop.eup %2795 }
 0x441   : > { %v2134_v26 = vmul.f32 0.6931472, %v2796_v56  ;;  %v2098_v1 = vpop.xlane.xlu0 %2097  ;;  %v2798_v0 = vpop.eup %2797 }
 0x442   : > { %2799 = vlog2.f32 %v2098_v1  ;;  %v2122_v3 = vmul.f32 0.6931472, %v2798_v0 }
 0x443   : > { %v2157_v63 = vadd.f32 %v2134_v26, %v4774_v8  ;;  %2801 = vlog2.f32 %v2080_v30 }
 0x444   : > { %v2151_v8 = vadd.f32 %v2122_v3, %v4764_v46 }
 0x445   : > { %v2487_v9 = vadd.f32 -4.158883, %v2157_v63 }
 0x446   : > { %v2481_v4 = vadd.f32 -4.158883, %v2151_v8 }
 0x447   : > { %2197 = vxpose.xlu2.b32.start [1/8] (short) (narrow) %v2181_v57, 8  ;;  %v2189_v62 = vmul.f32 %v2487_v9, %v4503_v19 }
 0x448   : > { %v2800_v50 = vpop.eup %2799  ;;  %v2183_v47 = vmul.f32 %v2481_v4, %v4419_v23 }
 0x449   : > { %v2136_v49 = vmul.f32 0.6931472, %v2800_v50  ;;  %2229 = vxpose.xlu0.b32.start [1/8] (short) (narrow) %v2189_v62, 8  ;;  %v2101_v11 = vpop.xlane.xlu0 %2100  ;;  %v2802_v29 = vpop.eup %2801 }
 0x44a   : > { %2803 = vlog2.f32 %v2101_v11  ;;  %v2124_v30 = vmul.f32 0.6931472, %v2802_v29 }
 0x44b   : > { %v2158_v55 = vadd.f32 %v2136_v49, %v4781_v43  ;;  %2805 = vlog2.f32 %v2083_v53 }
 0x44c   : > { %v2152_v43 = vadd.f32 %v2124_v30, %v4790_v12 }
 0x44d   : > { %v2488_v25 = vadd.f32 -4.158883, %v2158_v55 }
 0x44e   : > { %v2482_v31 = vadd.f32 -4.158883, %v2152_v43 }
 0x44f   : > { %2198 = vxpose.xlu2.b32.cont [2/8] (short) (narrow) %v2182_v44, 8  ;;  %v2190_v38 = vmul.f32 %v2488_v25, %v4503_v19 }
 0x450   : > { %v2804_v52 = vpop.eup %2803  ;;  %v2184_v12 = vmul.f32 %v2482_v31, %v4419_v23 }
 0x451   : > { %v2138_v34 = vmul.f32 0.6931472, %v2804_v52  ;;  %2230 = vxpose.xlu0.b32.cont [2/8] (short) (narrow) %v2190_v38, 8  ;;  %v2104_v27 = vpop.xlane.xlu0 %2103  ;;  %v2806_v15 = vpop.eup %2805 }
 0x452   : > { %2807 = vlog2.f32 %v2104_v27  ;;  %v2126_v58 = vmul.f32 0.6931472, %v2806_v15  ;;  %v2113_v61 = vpop.xlane.xlu2 %2112 }
 0x453   : > { %v2159_v51 = vadd.f32 %v2138_v34, %v4784_v2 }
 0x454   : > { %v2153_v2 = vadd.f32 %v2126_v58, %v4797_v7 }
 0x455   : > { %v2489_v46 = vadd.f32 -4.158883, %v2159_v51 }
 0x456   : > { %v2483_v20 = vadd.f32 -4.158883, %v2153_v2 }
 0x457   : > { %2199 = vxpose.xlu2.b32.cont [3/8] (short) (narrow) %v2183_v47, 8  ;;  %v2191_v24 = vmul.f32 %v2489_v46, %v4503_v19 }
 0x458   : > { %v2808_v39 = vpop.eup %2807  ;;  %v2185_v7 = vmul.f32 %v2483_v20, %v4419_v23 }
 0x459   : > { %2231 = vxpose.xlu0.b32.cont [3/8] (short) (narrow) %v2191_v24, 8  ;;  %v2107_v53 = vpop.xlane.xlu0 %2106  ;;  %v2140_v10 = vmul.f32 0.6931472, %v2808_v39 }
 0x45a   : > { %2809 = vlog2.f32 %v2107_v53  ;;  %v5286_v53 = vld [vmem:[#allocation60_spill] sm:$0xff] }
 0x45b   : > { %v2160_v36 = vadd.f32 %v2140_v10, %v4794_v48 }
 0x45d   : > { %v2490_v33 = vadd.f32 -4.158883, %v2160_v36 }
 0x45f   : > { %2200 = vxpose.xlu2.b32.cont [4/8] (short) (narrow) %v2184_v12, 8  ;;  %v2192_v32 = vmul.f32 %v2490_v33, %v4503_v19 }
 0x460   : > { %v2810_v41 = vpop.eup %2809 }
 0x461   : > { %v2142_v42 = vmul.f32 0.6931472, %v2810_v41  ;;  %v2086_v5 = vpop.xlane.xlu0 %2085  ;;  %2232 = vxpose.xlu0.b32.cont [4/8] (short) (narrow) %v2192_v32, 8  ;;  %v5287_v32 = vld [vmem:[#allocation59_spill] sm:$0xff] }
 0x462   : > { %2811 = vlog2.f32 %v2086_v5  ;;  %v5291_v5 = vmov %v5284_v37 }
 0x463   : > { %v2161_v56 = vadd.f32 %v2142_v42, %v4803_v40  ;;  %v2020_v22 = vpop.xlane.xlu1 %2019  ;;  %2813 = vlog2.f32 %v2113_v61  ;;  %v5293_v42 = vmov %v4778_v16  ;;  %v2308_v61 = vsel (%p1115_p0), %vm2307_vm10, %v5284_v37, 0.0  ;;  %v5300_v37 = vld [vmem:[#allocation90_spill] sm:$0xff] (%p1115_p0) }
 0x464   : > { %v2036_v48 = vsub.f32 %v4845_v21, %v2020_v22 }
 0x465   : > { %v2491_v26 = vadd.f32 -4.158883, %v2161_v56 }
 0x466   : > { %v2067_v1 = vmul.f32 1.442695, %v2036_v48  ;;  %v5299_v48 = vld [vmem:[#allocation58_spill] sm:$0xff] (%p1115_p0) }
 0x467   : > { %2201 = vxpose.xlu2.b32.cont [5/8] (short) (narrow) %v2185_v7, 8  ;;  %v2193_v63 = vmul.f32 %v2491_v26, %v4503_v19  ;;  %2329 = vst [vmem:[#allocation2 + $0x1] sm:$0x1] (%p1115_p0), %v5299_v48  ;;  %v5301_v7 = vld [vmem:[#allocation92_spill] sm:$0xff] (%p1115_p0) }
 0x468   : > { %v2812_v0 = vpop.eup %2811  ;;  %2815 = vpow2.f32 %v2067_v1  ;;  %v2269_v1 = vadd.f32 (%p1115_p0), %v5301_v7, %v5300_v37 }
 0x469   : > { %v2128_v54 = vmul.f32 0.6931472, %v2812_v0  ;;  %v2110_v9 = vpop.xlane.xlu0 %2109  ;;  %2233 = vxpose.xlu0.b32.cont [5/8] (short) (narrow) %v2193_v63, 8  ;;  %v2814_v50 = vpop.eup %2813  ;;  %v5302_v63 = vld [vmem:[#allocation89_spill] sm:$0xff] (%p1115_p0) }
 0x46a   : > { %2817 = vlog2.f32 %v2110_v9  ;;  %v2146_v25 = vmul.f32 0.6931472, %v2814_v50  ;;  %v2270_v0 = vadd.f32 (%p1115_p0), %v2269_v1, %v5302_v63 }
 0x46b   : > { %v2154_v40 = vadd.f32 %v2128_v54, %v4808_v59  ;;  %v2089_v57 = vpop.xlane.xlu1 %2088  ;;  %v5303_v54 = vld [vmem:[#allocation93_spill] sm:$0xff] (%p1115_p0) }
 0x46c   : > { %2819 = vlog2.f32 %v2089_v57  ;;  %v2163_v52 = vadd.f32 %v2146_v25, %v4820_v28  ;;  %v5294_v57 = vld [vmem:[#allocation65_spill] sm:$0xff]  ;;  %v2271_v9 = vadd.f32 (%p1115_p0), %v2270_v0, %v5303_v54 }
 0x46d   : > { %v2484_v62 = vadd.f32 -4.158883, %v2154_v40  ;;  %v5295_v57 = vmax.f32 %v5294_v57, 0.0025   ;;  %v5304_v40 = vld [vmem:[#allocation96_spill] sm:$0xff] (%p1115_p0) }
 0x46e   : > { %v2816_v21 = vpop.eup %2815  ;;  %v2493_v43 = vadd.f32 -4.158883, %v2163_v52 }
 0x46f   : > { %v2186_v3 = vmul.f32 %v2484_v62, %v4419_v23  ;;  %v2114_v49 = vsel %vm917_vm0, %v2816_v21, 0.0  ;;  %v5306_v62 = vld [vmem:[#allocation94_spill] sm:$0xff] (%p1115_p0)  ;;  %v5307_v21 = vld [vmem:[#allocation101_spill] sm:$0xff] (%p1115_p0) }
 0x470   : > { %v2818_v14 = vpop.eup %2817  ;;  %2115 = vadd.xlane.f32.xlu1 %v2114_v49  ;;  %v2272_v50 = vadd.f32 (%p1115_p0), %v2271_v9, %v5306_v62 }
 0x471   : > { %v2144_v11 = vmul.f32 0.6931472, %v2818_v14  ;;  %2202 = vxpose.xlu2.b32.cont [6/8] (short) (narrow) %v2186_v3, 8  ;;  %v2092_v55 = vpop.xlane.xlu0 %2091  ;;  %v5308_v14 = vld [vmem:[#allocation91_spill] sm:$0xff] (%p1115_p0) }
 0x472   : > { %2821 = vlog2.f32 %v2092_v55  ;;  %v2820_v8 = vpop.eup %2819  ;;  %v2273_v49 = vadd.f32 (%p1115_p0), %v2272_v50, %v5308_v14 }
 0x473   : > { %v2162_v44 = vadd.f32 %v2144_v11, %v4813_v35  ;;  %v2130_v59 = vmul.f32 0.6931472, %v2820_v8  ;;  %v2195_v35 = vmul.f32 %v2493_v43, %v4503_v19  ;;  %v5309_v11 = vld [vmem:[#allocation97_spill] sm:$0xff] (%p1115_p0)  ;;  %v5310_v8 = vld [vmem:[#allocation95_spill] sm:$0xff] (%p1115_p0) }
 0x474   :  { %v2274_v25 = vadd.f32 (%p1115_p0), %v2273_v49, %v5310_v8 }
 0x475   : > { %v2492_v29 = vadd.f32 -4.158883, %v2162_v44  ;;  %v2155_v38 = vadd.f32 %v2130_v59, %v4835_v18  ;;  %v5285_v18 = vld [vmem:[#allocation61_spill] sm:$0xff]  ;;  %v5311_v59 = vld [vmem:[#allocation98_spill] sm:$0xff] (%p1115_p0) }
 0x477   : > { %v2194_v4 = vmul.f32 %v2492_v29, %v4503_v19  ;;  %v2485_v34 = vadd.f32 -4.158883, %v2155_v38  ;;  %v5296_v29 = vld [vmem:[#allocation64_spill] sm:$0xff] }
 0x478   : > { %v2822_v30 = vpop.eup %2821  ;;  %v5297_v29 = vmax.f32 %v5296_v29, 0.0025   ;;  %2309 = vadd.xlane.f32.xlu1 (%p1115_p0), %v2308_v61 }
 0x479   : > { %v2132_v27 = vmul.f32 0.6931472, %v2822_v30  ;;  %2234 = vxpose.xlu0.b32.cont [6/8] (short) (narrow) %v2194_v4, 8  ;;  %v2187_v51 = vmul.f32 %v2485_v34, %v4419_v23  ;;  %v2275_v29 = vadd.f32 (%p1115_p0), %v2274_v25, %v5311_v59  ;;  %v5312_v4 = vld [vmem:[#allocation100_spill] sm:$0xff] (%p1115_p0) }
 0x47b   : > { %v2156_v46 = vadd.f32 %v2132_v27, %v4842_v17  ;;  %2203 = vxpose.xlu2.b32.cont [7/8] (short) (narrow) %v2187_v51, 8  ;;  %v2276_v52 = vrot.slane (%p1115_p0), %v2275_v29, 4 }
 0x47d   : > { %v2486_v47 = vadd.f32 -4.158883, %v2156_v46  ;;  %v5292_v46 = vmov %v4788_v13  ;;  %v2277_v34 = vadd.f32 (%p1115_p0), %v2276_v52, %v2275_v29 }
 0x47f   : > { %v2188_v15 = vmul.f32 %v2486_v47, %v4419_v23  ;;  %v2278_v51 = vrot.slane (%p1115_p0), %v2277_v34, 2 }
 0x481   : > { %2235 = vxpose.xlu0.b32.cont [7/8] (short) (narrow) %v2195_v35, 8  ;;  %v2279_v46 = vadd.f32 (%p1115_p0), %v2278_v51, %v2277_v34 }
 0x483   : > { %2204 = vxpose.xlu2.b32.end [8/8] (short) (narrow) %v2188_v15, 8  ;;  %v2280_v35 = vrot.slane (%p1115_p0), %v2279_v46, 1 }
 0x4a0   : > { %v1933_v28 = vpop.trf.xlu2 }
 0x4a1   : > { %v1950_v24 = vadd.f32 %v5285_v18, %v1933_v28  ;;  %v2281_v28 = vadd.f32 (%p1115_p0), %v2280_v35, %v2279_v46 }
 0x4a3   : > { %v1952_v31 = vmul.f32 0.5, %v1950_v24   ;;  %v5313_v24 = vld [vmem:[#allocation56_spill] sm:$0xff] (%p1115_p0) }
 0x4a5   :  { %v2311_v42 = vsel (%p1115_p0), %vm2307_vm10, %v1952_v31, 0.0 }
 0x4a6   :  { %2312 = vadd.xlane.f32.xlu1 (%p1115_p0), %v2311_v42 }
 0x4e3   : > { %v2116_v39 = vpop.xlane.xlu1 %2115 }
 0x4e4   : > { %2823 = vlog2.f32 %v2116_v39  ;;  %v2213_v58 = vpop.trf.xlu2 }
 0x4e5   : > { %v2261_v10 = vadd.f32 %v5286_v53, %v2213_v58 }
 0x4e7   : > { %v2263_v2 = vmul.f32 0.5, %v2261_v10  }
 0x4e9   : > { %v5289_v39 = vmov %v2263_v2  ;;  %v2318_v26 = vsel (%p1115_p0), %vm2307_vm10, %v2263_v2, 0.0 }
 0x4ea   : > { %v2824_v36 = vpop.eup %2823 }
 0x4eb   : > { %v2148_v17 = vmul.f32 0.6931472, %v2824_v36  ;;  %v2310_v58 = vpop.xlane.xlu1 (%p1115_p0), %2309 }
 0x4ec   :  { %v2314_v10 = vmul.f32 (%p1115_p0), %v2310_v58, %v5313_v24 }
 0x4ed   : > { %v2164_v12 = vadd.f32 %v2148_v17, %v2020_v22  ;;  %v5298_v22 = vld [vmem:[#allocation57_spill] sm:$0xff] (%p1115_p0) }
 0x4ee   :  { %2328 = vst [vmem:[#allocation2] sm:$0x1] (%p1115_p0), %v5298_v22 }
 0x4ef   : > { %v2494_v33 = vadd.f32 -4.158883, %v2164_v12  ;;  %2344 = dma.vmem_to_hbm [thread:$0]  (%p1115_p0), %s2337_s12, 32, %s2339_s15, [#allocation3], %s2954_s16, %s2954_s16, %s2955_s17  }
 0x4f1   : > { %v2196_v41 = vmul.f32 %v2494_v33, %v4503_v19  ;;  %v5290_v33 = vmov %v1952_v31  ;;  %v2297_v19 = vsel (%p1115_p0), %vm917_vm0, %v4778_v16, 0.0  ;;  %v2300_v16 = vsel (%p1115_p0), %vm917_vm0, %v4788_v13, 0.0  ;;  %v5305_v13 = vld [vmem:[#allocation99_spill] sm:$0xff] (%p1115_p0) }
 0x4f2   :  { %v2282_v57 = vadd.f32 (%p1115_p0), %v5305_v13, %v5304_v40 }
 0x4f3   : > { %2236 = vxpose.xlu0.b32.end [8/8] (short) (narrow) %v2196_v41, 8 }
 0x4f4   :  { %2319 = vadd.xlane.f32.xlu2 (%p1115_p0), %v2318_v26  ;;  %v2283_v3 = vadd.f32 (%p1115_p0), %v2282_v57, %v5307_v21 }
 0x4f6   :  { %v2284_v55 = vadd.f32 (%p1115_p0), %v2283_v3, %v5309_v11 }
 0x4f8   :  { %v2285_v44 = vadd.f32 (%p1115_p0), %v2284_v55, %v5261_v45  ;;  %v2295_v45 = vmul.f32 (%p1115_p0), %v2281_v28, %v5313_v24 }
 0x4fa   :  { %v2286_v38 = vadd.f32 (%p1115_p0), %v2285_v44, %v4637_v60 }
 0x4fc   :  { %v2287_v30 = vadd.f32 (%p1115_p0), %v2286_v38, %v5312_v4 }
 0x4fe   :  { %v2288_v27 = vadd.f32 (%p1115_p0), %v2287_v30, %v5266_v6 }
 0x500   :  { %v2289_v43 = vrot.slane (%p1115_p0), %v2288_v27, 4 }
 0x502   :  { %v2290_v47 = vadd.f32 (%p1115_p0), %v2289_v43, %v2288_v27 }
 0x504   :  { %v2291_v15 = vrot.slane (%p1115_p0), %v2290_v47, 2 }
 0x506   :  { %v2292_v18 = vadd.f32 (%p1115_p0), %v2291_v15, %v2290_v47 }
 0x508   :  { %v2293_v31 = vrot.slane (%p1115_p0), %v2292_v18, 1 }
 0x55f   : > { %v2245_v23 = vpop.trf.xlu0 }
 0x560   : > { %v2262_v20 = vadd.f32 %v5287_v32, %v2245_v23  ;;  %1117 = sbr.rel (!%p1115_p0) target bundleno = 526 (0x20e), region = 51  ;;  %v2313_v32 = vpop.xlane.xlu1 (%p1115_p0), %2312 }
 0x562   : > { %v2264_v56 = vmul.f32 0.5, %v2262_v20  }
 0x564   : > { %v5288_v36 = vmov %v2264_v56  ;;  %2298 = vadd.xlane.f32.xlu0 (%p1115_p0), %v2297_v19  ;;  %v2321_v5 = vsel (%p1115_p0), %vm2307_vm10, %v2264_v56, 0.0  ;;  %v2315_v56 = vmul.f32 (%p1115_p0), %v2313_v32, %v5313_v24 }
 0x565   :  { %2322 = vadd.xlane.f32.xlu2 %v2321_v5  ;;  %v2294_v36 = vadd.f32 %v2293_v31, %v2292_v18 }
 0x567   :  { %v2320_v53 = vpop.xlane.xlu2 %2319  ;;  %v2296_v33 = vmul.f32 %v2294_v36, %v5313_v24 }
 0x568   :  { %v2324_v6 = vmul.f32 %v2320_v53, %v5313_v24 }
 0x56c   :  { %2301 = vadd.xlane.f32.xlu0 %v2300_v16 }
 0x5d7   :  { %v2299_v39 = vpop.xlane.xlu0 %2298 }
 0x5d8   :  { %v2303_v60 = vmul.f32 %v2299_v39, %v5313_v24  ;;  %v2323_v20 = vpop.xlane.xlu2 %2322 }
 0x5d9   :  { %v2325_v22 = vmul.f32 %v2323_v20, %v5313_v24 }
 0x5da   :  { %v2305_v2 = vadd.f32 %v2303_v60, %v2295_v45 }
 0x5dc   :  { %v2316_v17 = vsub.f32 %v2305_v2, %v2314_v10 }
 0x5de   :  { %v2326_v12 = vsub.f32 %v2316_v17, %v2324_v6 }
 0x5df   :  { %v2302_v41 = vpop.xlane.xlu0 %2301 }
 0x5e0   :  { %2330 = vst [vmem:[#allocation4] sm:$0x1] %v2326_v12  ;;  %v2304_v23 = vmul.f32 %v2302_v41, %v5313_v24 }
 0x5e2   :  { %v2306_v19 = vadd.f32 %v2304_v23, %v2296_v33 }
 0x5e4   :  { %v2317_v61 = vsub.f32 %v2306_v19, %v2315_v56 }
 0x5e6   :  { %v2327_v26 = vsub.f32 %v2317_v61, %v2325_v22 }
 0x5e8   :  { %2331 = vst [vmem:[#allocation4 + $0x1] sm:$0x1] %v2327_v26 }
 0x5e9   :  { %2357 = dma.vmem_to_hbm [thread:$0]  %s2350_s18, 32, %s2352_s21, [#allocation5], %s2954_s16, %s2954_s16, %s2955_s17  }
 0x5ea   :  { %2909 = dma.done.wait [#allocation3], 32  }
 0x5eb   :  { %2910 = vsyncadd [#allocation3], 4294967264 }
 0x5ec   :  { %2911 = dma.done.wait [#allocation5], 32  }
 0x5ed   :  { %2912 = vsyncadd [#allocation5], 4294967264 }
 0x5ee   :  { %2366 = vsyncpa [#allocation3], 1 }
 0x5ef   :  { %2367 = vsyncpa [#allocation5], 1 }

</bundles_post_ra>
